<compile_context>
chip_gen: v6e
topology: v6e:2x2x1
jax: 0.10.0
libtpu: 0.0.40
codegen_flags: <defaults>
</compile_context>

<pallas_src>
import functools

import jax
import jax.numpy as jnp
from jax import lax
from jax.experimental import pallas as pl
from jax.experimental.pallas import tpu as pltpu


def _round_up(x, m):
    return ((x + m - 1) // m) * m


def _largest_divisor(n, limit, align=1):
    best = None
    for d in range(1, n + 1):
        if n % d == 0 and d <= limit and (d == n or d % align == 0):
            best = d
    return best if best is not None else n


# ----------------------------- BiLSTM kernel --------------------------------
def bilstm_kernel(gx_ref, b_ref, wh_hbm, out_ref, wh_vmem, h_scr, c_scr, wh_sem,
                  *, act_dtype):
    d = pl.program_id(0)      # 0 = forward, 1 = backward
    t = pl.program_id(1)      # time-block index (sequential)

    @pl.when(t == 0)
    def _init():
        # One HBM->VMEM copy of the (H, 4H) recurrent weights per direction
        # (single-buffered; no double-buffered BlockSpec DMA of a constant).
        cp = pltpu.make_async_copy(wh_hbm.at[d], wh_vmem, wh_sem)
        cp.start()
        cp.wait()
        h_scr[...] = jnp.zeros_like(h_scr)
        c_scr[...] = jnp.zeros_like(c_scr)

    tb = gx_ref.shape[0]
    H = out_ref.shape[-1]               # padded to a multiple of 128
    cdtype = wh_vmem.dtype
    bias = b_ref[...]                   # (1, 4H) f32, hoisted out of the step loop

    def run_pass(pos_of):
        def step(tt, carry):
            h, c = carry
            pos = pos_of(tt)            # compile-time constant after unroll=True
            gx = gx_ref[pos].astype(jnp.float32)                  # (B, 4H)
            # single fused (B,H) x (H,4H) bf16 MXU pass for all four gates
            pre = gx + bias + jnp.dot(h.astype(cdtype), wh_vmem[...],
                                      preferred_element_type=jnp.float32)
            # PyTorch gate order i, f, g, o; slices are 128-lane aligned.
            i_g = jax.nn.sigmoid(pre[:, 0 * H:1 * H].astype(act_dtype)).astype(jnp.float32)
            f_g = jax.nn.sigmoid(pre[:, 1 * H:2 * H].astype(act_dtype)).astype(jnp.float32)
            g_g = jnp.tanh(pre[:, 2 * H:3 * H].astype(act_dtype)).astype(jnp.float32)
            o_g = jax.nn.sigmoid(pre[:, 3 * H:4 * H].astype(act_dtype)).astype(jnp.float32)
            c_new = f_g * c + i_g * g_g
            h_new = o_g * jnp.tanh(c_new)
            out_ref[pos] = h_new.astype(out_ref.dtype)
            return h_new, c_new

        h, c = lax.fori_loop(0, tb, step, (h_scr[...], c_scr[...]), unroll=True)
        h_scr[...] = h
        c_scr[...] = c

    # Static forward/backward paths so all in-block offsets are static.
    @pl.when(d == 0)
    def _fwd():
        run_pass(lambda tt: tt)

    @pl.when(d == 1)
    def _bwd():
        run_pass(lambda tt: tb - 1 - tt)


def run_bilstm(gx, wh, bias, *, time_block, act_dtype=jnp.float32):
    """gx: (2, S, B, 4H) bf16; wh: (2, H, 4H) bf16; bias: (2, 1, 4H) f32."""
    _, S, B, H4 = gx.shape
    H = H4 // 4
    assert S % time_block == 0
    n_t = S // time_block

    def tblock(d, t):
        # forward walks time blocks 0..n_t-1, backward walks n_t-1..0
        return d * (n_t - 1) + (1 - 2 * d) * t

    # VMEM budget: double-buffered gx/out blocks + resident Wh + state.
    gx_blk = time_block * B * H4 * 2
    out_blk = time_block * B * H * 2
    need = 2 * gx_blk + 2 * out_blk + H * H4 * 2 + 2 * B * H * 4 + (64 << 10)
    # Cap at 64 MiB so it also fits a v7x TensorCore; raise on v5e/v6e (128 MiB
    # physical) if a larger time_block is wanted.
    vmem_limit = int(min(max(4 * need, 32 << 20), 64 << 20))

    return pl.pallas_call(
        functools.partial(bilstm_kernel, act_dtype=act_dtype),
        out_shape=jax.ShapeDtypeStruct((2, S, B, H), jnp.bfloat16),
        grid_spec=pltpu.PrefetchScalarGridSpec(
            num_scalar_prefetch=0,
            grid=(2, n_t),
            in_specs=[
                pl.BlockSpec((None, time_block, B, H4),
                             lambda d, t: (d, tblock(d, t), 0, 0)),
                pl.BlockSpec((None, 1, H4), lambda d, t: (d, 0, 0)),   # f32 bias
                pl.BlockSpec(memory_space=pl.ANY),                     # Wh in HBM
            ],
            out_specs=pl.BlockSpec((None, time_block, B, H),
                                   lambda d, t: (d, tblock(d, t), 0, 0)),
            scratch_shapes=[
                pltpu.VMEM((H, H4), wh.dtype),        # resident fused Wh (1 buffer)
                pltpu.VMEM((B, H), jnp.float32),      # h state
                pltpu.VMEM((B, H), jnp.float32),      # c state
                pltpu.SemaphoreType.DMA(()),
            ],
        ),
        compiler_params=pltpu.CompilerParams(
            # TODO(synk): on v7x use pltpu.CORE_PARALLEL on the direction axis so
            # the fwd/bwd recurrences are guaranteed to land on the two TensorCores.
            dimension_semantics=("parallel", "arbitrary"),
            vmem_limit_bytes=vmem_limit,
        ),
    )(gx, bias, wh)


# ------------------- tiled span mean-pool + FC (fused) kernel ----------------
def pool_fc_kernel(h_ref, offs_ref, offe_ref, sps_ref, spe_ref, w_ref, b_ref,
                   out_ref, pooled_acc, count_acc):
    s = pl.program_id(0)

    @pl.when(s == 0)
    def _init():
        pooled_acc[...] = jnp.zeros_like(pooled_acc)
        count_acc[...] = jnp.zeros_like(count_acc)

    # FC folded into the pooling (linearity: mean(h) @ w == mean(h @ w)):
    # project every token's hidden state to a scalar first.
    h = h_ref[...].astype(jnp.float32)                     # (2, Sb, B, H)
    w = w_ref[...]                                         # (2, H) f32
    y = jnp.sum(h * w[:, None, None, :], axis=(0, 3))      # (Sb, B)

    off_s = offs_ref[...]                                  # (Sb, B) int32
    off_e = offe_ref[...]
    sp_s = sps_ref[...]                                    # (B, P) int32, P padded to 128
    sp_e = spe_ref[...]

    # token j belongs to span p  <=>  s_j >= start_p and e_j <= end_p.
    # Lane axis = padded P -> dense compares / selects / stores.
    mask = ((off_s[:, :, None] >= sp_s[None, :, :]) &
            (off_e[:, :, None] <= sp_e[None, :, :])).astype(jnp.float32)   # (Sb, B, P)
    count_acc[...] += jnp.sum(mask, axis=0)                                # (B, P)
    pooled_acc[...] += jnp.sum(mask * y[:, :, None], axis=0)               # (B, P)

    @pl.when(s == pl.num_programs(0) - 1)
    def _fin():
        counts = count_acc[...]
        # (0,0) spans and no-match spans pool a zero vector -> logit == fc bias.
        valid = (counts > 0.0) & jnp.logical_not((sp_s == 0) & (sp_e == 0))
        logits = jnp.where(valid, pooled_acc[...] / jnp.maximum(counts, 1.0), 0.0)
        out_ref[...] = logits + b_ref[0]


def run_pool_fc(h_all, off_s_sb, off_e_sb, sp_s, sp_e, fc_w, fc_b):
    _, S, B, H = h_all.shape
    P = sp_s.shape[1]
    s_block = _largest_divisor(S, limit=256, align=8)
    n_s = S // s_block
    return pl.pallas_call(
        pool_fc_kernel,
        out_shape=jax.ShapeDtypeStruct((B, P), jnp.float32),
        grid_spec=pltpu.PrefetchScalarGridSpec(
            num_scalar_prefetch=0,
            grid=(n_s,),
            in_specs=[
                pl.BlockSpec((2, s_block, B, H), lambda s: (0, s, 0, 0)),
                pl.BlockSpec((s_block, B), lambda s: (s, 0)),
                pl.BlockSpec((s_block, B), lambda s: (s, 0)),
                pl.BlockSpec((B, P), lambda s: (0, 0)),
                pl.BlockSpec((B, P), lambda s: (0, 0)),
                pl.BlockSpec((2, H), lambda s: (0, 0)),
                pl.BlockSpec(memory_space=pltpu.MemorySpace.SMEM),   # fc bias scalar
            ],
            out_specs=pl.BlockSpec((B, P), lambda s: (0, 0)),        # resident accumulator
            scratch_shapes=[
                pltpu.VMEM((B, P), jnp.float32),                     # pooled sums
                pltpu.VMEM((B, P), jnp.float32),                     # counts
            ],
        ),
        compiler_params=pltpu.CompilerParams(
            dimension_semantics=("arbitrary",),
        ),
    )(h_all, off_s_sb, off_e_sb, sp_s, sp_e, fc_w, fc_b)


# ------------------------------ full forward ---------------------------------
def bilstm_classifier_forward(input_ids, off_s, off_e, sp_s, sp_e, params,
                              *, act_dtype=jnp.float32):
    # act_dtype: pass jnp.bfloat16 on v6e/v7x to halve EUP time on the serial
    # critical path (bf16 EUP); keep f32 on v5e (no bf16 VPU/EUP).
    B, S = input_ids.shape
    P = sp_s.shape[1]
    E = params["emb"].shape[1]
    H = params["wh"].shape[-1]

    Bp = _round_up(B, 8)
    Hp = _round_up(H, 128)
    Pp = _round_up(P, 128)
    dH = Hp - H

    # ---- zero-padded, gate-fused parameter layouts -------------------------
    # wi (2,4,E,H) -> (2,E,4*Hp): gate k occupies columns [k*Hp, (k+1)*Hp).
    wi_p = jnp.pad(params["wi"], ((0, 0), (0, 0), (0, 0), (0, dH)))
    wi_f = jnp.transpose(wi_p, (0, 2, 1, 3)).reshape(2, E, 4 * Hp)
    # wh (2,4,H,H) -> (2,Hp,4*Hp)
    wh_p = jnp.pad(params["wh"], ((0, 0), (0, 0), (0, dH), (0, dH)))
    wh_f = jnp.transpose(wh_p, (0, 2, 1, 3)).reshape(2, Hp, 4 * Hp)
    # bias (2,4,H) -> (2,1,4*Hp) f32 (added inside the kernel)
    b_f = jnp.pad(params["b"], ((0, 0), (0, 0), (0, dH))).reshape(2, 1, 4 * Hp)
    b_f = b_f.astype(jnp.float32)
    # fc
    fc_w_p = jnp.pad(params["fc_w"], ((0, 0), (0, dH))).astype(jnp.float32)   # (2, Hp)
    fc_b_p = jnp.reshape(params["fc_b"], (1,)).astype(jnp.float32)

    # ---- padded inputs (padded hidden lanes / batch rows stay exactly zero) --
    ids_p = jnp.pad(input_ids.astype(jnp.int32), ((0, Bp - B), (0, 0)))
    offs_p = jnp.pad(off_s.astype(jnp.int32), ((0, Bp - B), (0, 0)))
    offe_p = jnp.pad(off_e.astype(jnp.int32), ((0, Bp - B), (0, 0)))
    sps_p = jnp.pad(sp_s.astype(jnp.int32), ((0, Bp - B), (0, Pp - P)))
    spe_p = jnp.pad(sp_e.astype(jnp.int32), ((0, Bp - B), (0, Pp - P)))

    # TODO(synk): embedding gather is left to XLA (jnp.take); an in-kernel DMA row
    # gather (scalar prefetch + pl.Element) is possible but not worth it here.
    x = jnp.take(params["emb"], ids_p, axis=0)                 # (Bp, S, E)
    x_sbe = jnp.transpose(x, (1, 0, 2)).astype(jnp.bfloat16)   # time-major (S, Bp, E)

    # Hoisted input projection: one batched bf16 matmul over all timesteps/both
    # directions, stored bf16 in the einsum-natural (2, S, B, 4H) layout.
    gx = jnp.einsum("sbe,def->dsbf", x_sbe, wi_f.astype(jnp.bfloat16),
                    preferred_element_type=jnp.float32).astype(jnp.bfloat16)

    time_block = _largest_divisor(S, limit=32)
    h_all = run_bilstm(gx, wh_f.astype(jnp.bfloat16), b_f,
                       time_block=time_block, act_dtype=act_dtype)   # (2,S,Bp,Hp) bf16

    logits_p = run_pool_fc(
        h_all,
        jnp.transpose(offs_p), jnp.transpose(offe_p),   # (S, Bp)
        sps_p, spe_p, fc_w_p, fc_b_p,
    )                                                    # (Bp, Pp)
    return logits_p[:B, :P]


# -------------------------- deterministic params ------------------------------
def init_params(key, vocab_size, embed_dim, hidden_dim):
    ks = jax.random.split(key, 6)
    s = 0.1
    emb = s * jax.random.normal(ks[0], (vocab_size, embed_dim), jnp.float32)
    emb = emb.at[0].set(0.0)                                  # padding_idx=0
    return {
        "emb": emb,
        # [direction, gate(i,f,g,o), in, out]
        "wi": s * jax.random.normal(ks[1], (2, 4, embed_dim, hidden_dim), jnp.float32),
        "wh": s * jax.random.normal(ks[2], (2, 4, hidden_dim, hidden_dim), jnp.float32),
        # represents PyTorch's b_ih + b_hh summed
        "b": s * jax.random.normal(ks[3], (2, 4, hidden_dim), jnp.float32),
        # Linear(2H, 1) weight split into forward/backward halves, shape (2, H)
        "fc_w": s * jax.random.normal(ks[4], (2, hidden_dim), jnp.float32),
        "fc_b": s * jax.random.normal(ks[5], (), jnp.float32),
    }


# ----------------------------- pure-JAX reference -----------------------------
def reference_forward(input_ids, off_s, off_e, sp_s, sp_e, params):
    H = params["wh"].shape[-1]
    x = jnp.take(params["emb"], input_ids, axis=0)
    x_sbe = jnp.transpose(x, (1, 0, 2))

    def run_dir(xs, wi, wh, b):        # wi (4,E,H), wh (4,H,H), b (4,H)
        Bn = xs.shape[1]

        def step(carry, xt):
            h, c = carry
            gi = xt @ wi[0] + h @ wh[0] + b[0]
            gf = xt @ wi[1] + h @ wh[1] + b[1]
            gg = xt @ wi[2] + h @ wh[2] + b[2]
            go = xt @ wi[3] + h @ wh[3] + b[3]
            i = jax.nn.sigmoid(gi)
            f = jax.nn.sigmoid(gf)
            g = jnp.tanh(gg)
            o = jax.nn.sigmoid(go)
            c = f * c + i * g
            h = o * jnp.tanh(c)
            return (h, c), h

        init = (jnp.zeros((Bn, H), jnp.float32), jnp.zeros((Bn, H), jnp.float32))
        _, hs = lax.scan(step, init, xs)
        return hs                       # (S, B, H)

    fwd = run_dir(x_sbe, params["wi"][0], params["wh"][0], params["b"][0])
    bwd = run_dir(x_sbe[::-1], params["wi"][1], params["wh"][1], params["b"][1])[::-1]
    lstm_out = jnp.concatenate([jnp.transpose(fwd, (1, 0, 2)),
                                jnp.transpose(bwd, (1, 0, 2))], axis=-1)   # (B,S,2H)
    fc_w = jnp.concatenate([params["fc_w"][0], params["fc_w"][1]])         # (2H,)

    mask = ((off_s[:, None, :] >= sp_s[:, :, None]) &
            (off_e[:, None, :] <= sp_e[:, :, None])).astype(jnp.float32)   # (B,P,S)
    counts = mask.sum(-1)
    pooled = jnp.einsum("bps,bsh->bph", mask, lstm_out)
    avg = pooled / jnp.maximum(counts, 1.0)[..., None]
    valid = (counts > 0) & ~((sp_s == 0) & (sp_e == 0))
    avg = jnp.where(valid[..., None], avg, 0.0)
    return avg @ fc_w + params["fc_b"]                                     # (B, P)


if __name__ == "__main__":
    B, S, V, E, H, P = 2, 8, 50, 32, 32, 4
    params = init_params(jax.random.PRNGKey(0), V, E, H)

    ids = jax.random.randint(jax.random.PRNGKey(1), (B, S), 1, V).astype(jnp.int32)
    ids = ids.at[:, 0].set(0)          # [CLS]-like special token
    ids = ids.at[1, -2:].set(0)        # padding in sample 1

    # offset_mapping (start/end char offsets); special / pad tokens are (0, 0)
    off_s = jnp.array([[0, 5, 10, 15, 20, 25, 30, 35],
                       [0, 5, 10, 15, 20, 25, 0, 0]], jnp.int32)
    off_e = jnp.array([[0, 9, 14, 19, 24, 29, 34, 39],
                       [0, 9, 14, 19, 24, 29, 0, 0]], jnp.int32)
    # positions -> (start, end) spans; (0, 0) means "no element"; last span matches no token
    sp_s = jnp.array([[5, 20, 0, 100],
                      [10, 5, 0, 200]], jnp.int32)
    sp_e = jnp.array([[14, 34, 0, 110],
                      [29, 9, 0, 210]], jnp.int32)

    logits = bilstm_classifier_forward(ids, off_s, off_e, sp_s, sp_e, params)
    logits = jax.block_until_ready(logits)

    ref = reference_forward(ids, off_s, off_e, sp_s, sp_e, params)
    assert logits.shape == (B, P)
    # bf16 gx / bf16 MXU operands / bf16 hidden-state storage vs. a pure-f32
    # reference: expected deviation is O(1e-3); tolerance has comfortable margin.
    assert jnp.allclose(logits, ref, atol=2e-2, rtol=2e-2), (logits, ref)
    print("KERNEL_OK")
</pallas_src>

<mosaic_0001>
module attributes {stable_mosaic.version = 11 : i64} {
  func.func @bilstm_kernel(%arg0: i32, %arg1: i32, %arg2: memref<1x8x8x512xbf16, #tpu.memory_space<vmem>>, %arg3: memref<1x1x512xf32, #tpu.memory_space<vmem>>, %arg4: memref<2x128x512xbf16, #tpu.memory_space<any>>, %arg5: memref<1x8x8x128xbf16, #tpu.memory_space<vmem>>, %arg6: memref<128x512xbf16, #tpu.memory_space<vmem>>, %arg7: memref<8x128xf32, #tpu.memory_space<vmem>>, %arg8: memref<8x128xf32, #tpu.memory_space<vmem>>, %arg9: memref<!tpu.dma_semaphore, #tpu.memory_space<semaphore_mem>>) attributes {dimension_semantics = [#tpu.dimension_semantics<parallel>, #tpu.dimension_semantics<arbitrary>], iteration_bounds = array<i64: 2, 1>, scalar_prefetch = 0 : i64, scratch_operands = 4 : i64, tpu.core_type = #tpu.core_type<tc>, window_params = [{transform_indices = @transform_0, window_bounds = array<i64: 1, 8, 8, 512>}, {transform_indices = @transform_1, window_bounds = array<i64: 1, 1, 512>}, {}, {transform_indices = @transform_3, window_bounds = array<i64: 1, 8, 8, 128>}]} {
    %c0_i32 = arith.constant 0 : i32
    %0 = arith.cmpi eq, %arg1, %c0_i32 : i32
    %1 = arith.extui %0 : i1 to i32
    %c0_i32_0 = arith.constant 0 : i32
    %2 = arith.cmpi ne, %1, %c0_i32_0 : i32
    scf.if %2 {
      %c0_i32_6 = arith.constant 0 : i32
      %c0_i32_7 = arith.constant 0 : i32
      %11 = tpu.memref_slice %arg4[%arg0, %c0_i32_6, %c0_i32_7] : memref<2x128x512xbf16, #tpu.memory_space<any>> -> memref<1x128x512xbf16, #tpu.memory_space<any>>
      %12 = tpu.memref_squeeze %11 : memref<1x128x512xbf16, #tpu.memory_space<any>> -> memref<128x512xbf16, #tpu.memory_space<any>>
      tpu.enqueue_dma source(%12 : memref<128x512xbf16, #tpu.memory_space<any>>) target(%arg6 : memref<128x512xbf16, #tpu.memory_space<vmem>>) target_semaphore(%arg9 : memref<!tpu.dma_semaphore, #tpu.memory_space<semaphore_mem>>)
      %c0_i32_8 = arith.constant 0 : i32
      %c0_i32_9 = arith.constant 0 : i32
      %13 = tpu.memref_slice %arg4[%arg0, %c0_i32_8, %c0_i32_9] : memref<2x128x512xbf16, #tpu.memory_space<any>> -> memref<1x128x512xbf16, #tpu.memory_space<any>>
      %14 = tpu.memref_squeeze %13 : memref<1x128x512xbf16, #tpu.memory_space<any>> -> memref<128x512xbf16, #tpu.memory_space<any>>
      tpu.wait_dma2 semaphore(%arg9 : memref<!tpu.dma_semaphore, #tpu.memory_space<semaphore_mem>>) src(%14 : memref<128x512xbf16, #tpu.memory_space<any>>) dst(%arg6 : memref<128x512xbf16, #tpu.memory_space<vmem>>)
      %cst = arith.constant 0.000000e+00 : f32
      %15 = vector.broadcast %cst : f32 to vector<8x128xf32>
      %c0_10 = arith.constant 0 : index
      %c0_11 = arith.constant 0 : index
      %16 = vector.load %arg7[%c0_10, %c0_11] : memref<8x128xf32, #tpu.memory_space<vmem>>, vector<8x128xf32>
      tpu.vector_store %arg7[%c0_10, %c0_11], %15 {strides = array<i32>} : memref<8x128xf32, #tpu.memory_space<vmem>>, vector<8x128xf32>,
      %cst_12 = arith.constant 0.000000e+00 : f32
      %17 = vector.broadcast %cst_12 : f32 to vector<8x128xf32>
      %c0_13 = arith.constant 0 : index
      %c0_14 = arith.constant 0 : index
      %18 = vector.load %arg8[%c0_13, %c0_14] : memref<8x128xf32, #tpu.memory_space<vmem>>, vector<8x128xf32>
      tpu.vector_store %arg8[%c0_13, %c0_14], %17 {strides = array<i32>} : memref<8x128xf32, #tpu.memory_space<vmem>>, vector<8x128xf32>,
    } else {
    }
    %c0 = arith.constant 0 : index
    %c0_1 = arith.constant 0 : index
    %c0_2 = arith.constant 0 : index
    %3 = vector.load %arg3[%c0, %c0_1, %c0_2] : memref<1x1x512xf32, #tpu.memory_space<vmem>>, vector<1x1x512xf32>
    %4 = vector.shape_cast %3 : vector<1x1x512xf32> to vector<1x512xf32>
    %c0_i32_3 = arith.constant 0 : i32
    %5 = arith.cmpi eq, %arg0, %c0_i32_3 : i32
    %6 = arith.extui %5 : i1 to i32
    %c0_i32_4 = arith.constant 0 : i32
    %7 = arith.cmpi ne, %6, %c0_i32_4 : i32
    scf.if %7 {
      %c0_6 = arith.constant 0 : index
      %c0_7 = arith.constant 0 : index
      %11 = vector.load %arg7[%c0_6, %c0_7] : memref<8x128xf32, #tpu.memory_space<vmem>>, vector<8x128xf32>
      %c0_8 = arith.constant 0 : index
      %c0_9 = arith.constant 0 : index
      %12 = vector.load %arg8[%c0_8, %c0_9] : memref<8x128xf32, #tpu.memory_space<vmem>>, vector<8x128xf32>
      %c0_i32_10 = arith.constant 0 : i32
      %c0_11 = arith.constant 0 : index
      %13 = arith.index_cast %c0_i32_10 : i32 to index
      %c0_12 = arith.constant 0 : index
      %c0_13 = arith.constant 0 : index
      %14 = vector.load %arg2[%c0_11, %13, %c0_12, %c0_13] : memref<1x8x8x512xbf16, #tpu.memory_space<vmem>>, vector<1x1x8x512xbf16>
      %15 = vector.shape_cast %14 : vector<1x1x8x512xbf16> to vector<8x512xbf16>
      %16 = arith.extf %15 : vector<8x512xbf16> to vector<8x512xf32>
      %17 = vector.broadcast %4 : vector<1x512xf32> to vector<8x512xf32>
      %18 = arith.addf %16, %17 : vector<8x512xf32>
      %19 = arith.truncf %11 : vector<8x128xf32> to vector<8x128xbf16>
      %c0_14 = arith.constant 0 : index
      %c0_15 = arith.constant 0 : index
      %20 = vector.load %arg6[%c0_14, %c0_15] : memref<128x512xbf16, #tpu.memory_space<vmem>>, vector<128x512xbf16>
      %cst = arith.constant dense<0.000000e+00> : vector<8x512xf32>
      %21 = tpu.matmul %19, %20, %cst {dimension_numbers = #tpu.dot_dimension_numbers<[1], [0], [0], [1], [0, 0, 1, 1], [], []>} : vector<8x128xbf16>, vector<128x512xbf16>, vector<8x512xf32> -> vector<8x512xf32>
      %22 = arith.addf %18, %21 : vector<8x512xf32>
      %23 = vector.extract_strided_slice %22 {offsets = [0, 0], sizes = [8, 128], strides = [1, 1]} : vector<8x512xf32> to vector<8x128xf32>
      %24 = arith.negf %23 : vector<8x128xf32>
      %25 = math.exp %24 : vector<8x128xf32>
      %cst_16 = arith.constant 1.000000e+00 : f32
      %26 = vector.broadcast %cst_16 : f32 to vector<8x128xf32>
      %27 = arith.addf %26, %25 : vector<8x128xf32>
      %28 = arith.divf %26, %27 : vector<8x128xf32>
      %29 = vector.extract_strided_slice %22 {offsets = [0, 128], sizes = [8, 128], strides = [1, 1]} : vector<8x512xf32> to vector<8x128xf32>
      %30 = arith.negf %29 : vector<8x128xf32>
      %31 = math.exp %30 : vector<8x128xf32>
      %cst_17 = arith.constant 1.000000e+00 : f32
      %32 = vector.broadcast %cst_17 : f32 to vector<8x128xf32>
      %33 = arith.addf %32, %31 : vector<8x128xf32>
      %34 = arith.divf %32, %33 : vector<8x128xf32>
      %35 = vector.extract_strided_slice %22 {offsets = [0, 256], sizes = [8, 128], strides = [1, 1]} : vector<8x512xf32> to vector<8x128xf32>
      %36 = math.tanh %35 : vector<8x128xf32>
      %37 = vector.extract_strided_slice %22 {offsets = [0, 384], sizes = [8, 128], strides = [1, 1]} : vector<8x512xf32> to vector<8x128xf32>
      %38 = arith.negf %37 : vector<8x128xf32>
      %39 = math.exp %38 : vector<8x128xf32>
      %cst_18 = arith.constant 1.000000e+00 : f32
      %40 = vector.broadcast %cst_18 : f32 to vector<8x128xf32>
      %41 = arith.addf %40, %39 : vector<8x128xf32>
      %42 = arith.divf %40, %41 : vector<8x128xf32>
      %43 = arith.mulf %34, %12 : vector<8x128xf32>
      %44 = arith.mulf %28, %36 : vector<8x128xf32>
      %45 = arith.addf %43, %44 : vector<8x128xf32>
      %46 = math.tanh %45 : vector<8x128xf32>
      %47 = arith.mulf %42, %46 : vector<8x128xf32>
      %48 = arith.truncf %47 : vector<8x128xf32> to vector<8x128xbf16>
      %c0_19 = arith.constant 0 : index
      %49 = arith.index_cast %c0_i32_10 : i32 to index
      %c0_20 = arith.constant 0 : index
      %c0_21 = arith.constant 0 : index
      %50 = vector.load %arg5[%c0_19, %49, %c0_20, %c0_21] : memref<1x8x8x128xbf16, #tpu.memory_space<vmem>>, vector<1x1x8x128xbf16>
      %51 = vector.shape_cast %50 : vector<1x1x8x128xbf16> to vector<8x128xbf16>
      %52 = vector.shape_cast %48 : vector<8x128xbf16> to vector<1x1x8x128xbf16>
      tpu.vector_store %arg5[%c0_19, %49, %c0_20, %c0_21], %52 {strides = array<i32>} : memref<1x8x8x128xbf16, #tpu.memory_space<vmem>>, vector<1x1x8x128xbf16>,
      %c1_i32_22 = arith.constant 1 : i32
      %c0_23 = arith.constant 0 : index
      %53 = arith.index_cast %c1_i32_22 : i32 to index
      %c0_24 = arith.constant 0 : index
      %c0_25 = arith.constant 0 : index
      %54 = vector.load %arg2[%c0_23, %53, %c0_24, %c0_25] : memref<1x8x8x512xbf16, #tpu.memory_space<vmem>>, vector<1x1x8x512xbf16>
      %55 = vector.shape_cast %54 : vector<1x1x8x512xbf16> to vector<8x512xbf16>
      %56 = arith.extf %55 : vector<8x512xbf16> to vector<8x512xf32>
      %57 = vector.broadcast %4 : vector<1x512xf32> to vector<8x512xf32>
      %58 = arith.addf %56, %57 : vector<8x512xf32>
      %59 = arith.truncf %47 : vector<8x128xf32> to vector<8x128xbf16>
      %c0_26 = arith.constant 0 : index
      %c0_27 = arith.constant 0 : index
      %60 = vector.load %arg6[%c0_26, %c0_27] : memref<128x512xbf16, #tpu.memory_space<vmem>>, vector<128x512xbf16>
      %cst_28 = arith.constant dense<0.000000e+00> : vector<8x512xf32>
      %61 = tpu.matmul %59, %60, %cst_28 {dimension_numbers = #tpu.dot_dimension_numbers<[1], [0], [0], [1], [0, 0, 1, 1], [], []>} : vector<8x128xbf16>, vector<128x512xbf16>, vector<8x512xf32> -> vector<8x512xf32>
      %62 = arith.addf %58, %61 : vector<8x512xf32>
      %63 = vector.extract_strided_slice %62 {offsets = [0, 0], sizes = [8, 128], strides = [1, 1]} : vector<8x512xf32> to vector<8x128xf32>
      %64 = arith.negf %63 : vector<8x128xf32>
      %65 = math.exp %64 : vector<8x128xf32>
      %cst_29 = arith.constant 1.000000e+00 : f32
      %66 = vector.broadcast %cst_29 : f32 to vector<8x128xf32>
      %67 = arith.addf %66, %65 : vector<8x128xf32>
      %68 = arith.divf %66, %67 : vector<8x128xf32>
      %69 = vector.extract_strided_slice %62 {offsets = [0, 128], sizes = [8, 128], strides = [1, 1]} : vector<8x512xf32> to vector<8x128xf32>
      %70 = arith.negf %69 : vector<8x128xf32>
      %71 = math.exp %70 : vector<8x128xf32>
      %cst_30 = arith.constant 1.000000e+00 : f32
      %72 = vector.broadcast %cst_30 : f32 to vector<8x128xf32>
      %73 = arith.addf %72, %71 : vector<8x128xf32>
      %74 = arith.divf %72, %73 : vector<8x128xf32>
      %75 = vector.extract_strided_slice %62 {offsets = [0, 256], sizes = [8, 128], strides = [1, 1]} : vector<8x512xf32> to vector<8x128xf32>
      %76 = math.tanh %75 : vector<8x128xf32>
      %77 = vector.extract_strided_slice %62 {offsets = [0, 384], sizes = [8, 128], strides = [1, 1]} : vector<8x512xf32> to vector<8x128xf32>
      %78 = arith.negf %77 : vector<8x128xf32>
      %79 = math.exp %78 : vector<8x128xf32>
      %cst_31 = arith.constant 1.000000e+00 : f32
      %80 = vector.broadcast %cst_31 : f32 to vector<8x128xf32>
      %81 = arith.addf %80, %79 : vector<8x128xf32>
      %82 = arith.divf %80, %81 : vector<8x128xf32>
      %83 = arith.mulf %74, %45 : vector<8x128xf32>
      %84 = arith.mulf %68, %76 : vector<8x128xf32>
      %85 = arith.addf %83, %84 : vector<8x128xf32>
      %86 = math.tanh %85 : vector<8x128xf32>
      %87 = arith.mulf %82, %86 : vector<8x128xf32>
      %88 = arith.truncf %87 : vector<8x128xf32> to vector<8x128xbf16>
      %c0_32 = arith.constant 0 : index
      %89 = arith.index_cast %c1_i32_22 : i32 to index
      %c0_33 = arith.constant 0 : index
      %c0_34 = arith.constant 0 : index
      %90 = vector.load %arg5[%c0_32, %89, %c0_33, %c0_34] : memref<1x8x8x128xbf16, #tpu.memory_space<vmem>>, vector<1x1x8x128xbf16>
      %91 = vector.shape_cast %90 : vector<1x1x8x128xbf16> to vector<8x128xbf16>
      %92 = vector.shape_cast %88 : vector<8x128xbf16> to vector<1x1x8x128xbf16>
      tpu.vector_store %arg5[%c0_32, %89, %c0_33, %c0_34], %92 {strides = array<i32>} : memref<1x8x8x128xbf16, #tpu.memory_space<vmem>>, vector<1x1x8x128xbf16>,
      %c2_i32 = arith.constant 2 : i32
      %c0_35 = arith.constant 0 : index
      %93 = arith.index_cast %c2_i32 : i32 to index
      %c0_36 = arith.constant 0 : index
      %c0_37 = arith.constant 0 : index
      %94 = vector.load %arg2[%c0_35, %93, %c0_36, %c0_37] : memref<1x8x8x512xbf16, #tpu.memory_space<vmem>>, vector<1x1x8x512xbf16>
      %95 = vector.shape_cast %94 : vector<1x1x8x512xbf16> to vector<8x512xbf16>
      %96 = arith.extf %95 : vector<8x512xbf16> to vector<8x512xf32>
      %97 = vector.broadcast %4 : vector<1x512xf32> to vector<8x512xf32>
      %98 = arith.addf %96, %97 : vector<8x512xf32>
      %99 = arith.truncf %87 : vector<8x128xf32> to vector<8x128xbf16>
      %c0_38 = arith.constant 0 : index
      %c0_39 = arith.constant 0 : index
      %100 = vector.load %arg6[%c0_38, %c0_39] : memref<128x512xbf16, #tpu.memory_space<vmem>>, vector<128x512xbf16>
      %cst_40 = arith.constant dense<0.000000e+00> : vector<8x512xf32>
      %101 = tpu.matmul %99, %100, %cst_40 {dimension_numbers = #tpu.dot_dimension_numbers<[1], [0], [0], [1], [0, 0, 1, 1], [], []>} : vector<8x128xbf16>, vector<128x512xbf16>, vector<8x512xf32> -> vector<8x512xf32>
      %102 = arith.addf %98, %101 : vector<8x512xf32>
      %103 = vector.extract_strided_slice %102 {offsets = [0, 0], sizes = [8, 128], strides = [1, 1]} : vector<8x512xf32> to vector<8x128xf32>
      %104 = arith.negf %103 : vector<8x128xf32>
      %105 = math.exp %104 : vector<8x128xf32>
      %cst_41 = arith.constant 1.000000e+00 : f32
      %106 = vector.broadcast %cst_41 : f32 to vector<8x128xf32>
      %107 = arith.addf %106, %105 : vector<8x128xf32>
      %108 = arith.divf %106, %107 : vector<8x128xf32>
      %109 = vector.extract_strided_slice %102 {offsets = [0, 128], sizes = [8, 128], strides = [1, 1]} : vector<8x512xf32> to vector<8x128xf32>
      %110 = arith.negf %109 : vector<8x128xf32>
      %111 = math.exp %110 : vector<8x128xf32>
      %cst_42 = arith.constant 1.000000e+00 : f32
      %112 = vector.broadcast %cst_42 : f32 to vector<8x128xf32>
      %113 = arith.addf %112, %111 : vector<8x128xf32>
      %114 = arith.divf %112, %113 : vector<8x128xf32>
      %115 = vector.extract_strided_slice %102 {offsets = [0, 256], sizes = [8, 128], strides = [1, 1]} : vector<8x512xf32> to vector<8x128xf32>
      %116 = math.tanh %115 : vector<8x128xf32>
      %117 = vector.extract_strided_slice %102 {offsets = [0, 384], sizes = [8, 128], strides = [1, 1]} : vector<8x512xf32> to vector<8x128xf32>
      %118 = arith.negf %117 : vector<8x128xf32>
      %119 = math.exp %118 : vector<8x128xf32>
      %cst_43 = arith.constant 1.000000e+00 : f32
      %120 = vector.broadcast %cst_43 : f32 to vector<8x128xf32>
      %121 = arith.addf %120, %119 : vector<8x128xf32>
      %122 = arith.divf %120, %121 : vector<8x128xf32>
      %123 = arith.mulf %114, %85 : vector<8x128xf32>
      %124 = arith.mulf %108, %116 : vector<8x128xf32>
      %125 = arith.addf %123, %124 : vector<8x128xf32>
      %126 = math.tanh %125 : vector<8x128xf32>
      %127 = arith.mulf %122, %126 : vector<8x128xf32>
      %128 = arith.truncf %127 : vector<8x128xf32> to vector<8x128xbf16>
      %c0_44 = arith.constant 0 : index
      %129 = arith.index_cast %c2_i32 : i32 to index
      %c0_45 = arith.constant 0 : index
      %c0_46 = arith.constant 0 : index
      %130 = vector.load %arg5[%c0_44, %129, %c0_45, %c0_46] : memref<1x8x8x128xbf16, #tpu.memory_space<vmem>>, vector<1x1x8x128xbf16>
      %131 = vector.shape_cast %130 : vector<1x1x8x128xbf16> to vector<8x128xbf16>
      %132 = vector.shape_cast %128 : vector<8x128xbf16> to vector<1x1x8x128xbf16>
      tpu.vector_store %arg5[%c0_44, %129, %c0_45, %c0_46], %132 {strides = array<i32>} : memref<1x8x8x128xbf16, #tpu.memory_space<vmem>>, vector<1x1x8x128xbf16>,
      %c3_i32 = arith.constant 3 : i32
      %c0_47 = arith.constant 0 : index
      %133 = arith.index_cast %c3_i32 : i32 to index
      %c0_48 = arith.constant 0 : index
      %c0_49 = arith.constant 0 : index
      %134 = vector.load %arg2[%c0_47, %133, %c0_48, %c0_49] : memref<1x8x8x512xbf16, #tpu.memory_space<vmem>>, vector<1x1x8x512xbf16>
      %135 = vector.shape_cast %134 : vector<1x1x8x512xbf16> to vector<8x512xbf16>
      %136 = arith.extf %135 : vector<8x512xbf16> to vector<8x512xf32>
      %137 = vector.broadcast %4 : vector<1x512xf32> to vector<8x512xf32>
      %138 = arith.addf %136, %137 : vector<8x512xf32>
      %139 = arith.truncf %127 : vector<8x128xf32> to vector<8x128xbf16>
      %c0_50 = arith.constant 0 : index
      %c0_51 = arith.constant 0 : index
      %140 = vector.load %arg6[%c0_50, %c0_51] : memref<128x512xbf16, #tpu.memory_space<vmem>>, vector<128x512xbf16>
      %cst_52 = arith.constant dense<0.000000e+00> : vector<8x512xf32>
      %141 = tpu.matmul %139, %140, %cst_52 {dimension_numbers = #tpu.dot_dimension_numbers<[1], [0], [0], [1], [0, 0, 1, 1], [], []>} : vector<8x128xbf16>, vector<128x512xbf16>, vector<8x512xf32> -> vector<8x512xf32>
      %142 = arith.addf %138, %141 : vector<8x512xf32>
      %143 = vector.extract_strided_slice %142 {offsets = [0, 0], sizes = [8, 128], strides = [1, 1]} : vector<8x512xf32> to vector<8x128xf32>
      %144 = arith.negf %143 : vector<8x128xf32>
      %145 = math.exp %144 : vector<8x128xf32>
      %cst_53 = arith.constant 1.000000e+00 : f32
      %146 = vector.broadcast %cst_53 : f32 to vector<8x128xf32>
      %147 = arith.addf %146, %145 : vector<8x128xf32>
      %148 = arith.divf %146, %147 : vector<8x128xf32>
      %149 = vector.extract_strided_slice %142 {offsets = [0, 128], sizes = [8, 128], strides = [1, 1]} : vector<8x512xf32> to vector<8x128xf32>
      %150 = arith.negf %149 : vector<8x128xf32>
      %151 = math.exp %150 : vector<8x128xf32>
      %cst_54 = arith.constant 1.000000e+00 : f32
      %152 = vector.broadcast %cst_54 : f32 to vector<8x128xf32>
      %153 = arith.addf %152, %151 : vector<8x128xf32>
      %154 = arith.divf %152, %153 : vector<8x128xf32>
      %155 = vector.extract_strided_slice %142 {offsets = [0, 256], sizes = [8, 128], strides = [1, 1]} : vector<8x512xf32> to vector<8x128xf32>
      %156 = math.tanh %155 : vector<8x128xf32>
      %157 = vector.extract_strided_slice %142 {offsets = [0, 384], sizes = [8, 128], strides = [1, 1]} : vector<8x512xf32> to vector<8x128xf32>
      %158 = arith.negf %157 : vector<8x128xf32>
      %159 = math.exp %158 : vector<8x128xf32>
      %cst_55 = arith.constant 1.000000e+00 : f32
      %160 = vector.broadcast %cst_55 : f32 to vector<8x128xf32>
      %161 = arith.addf %160, %159 : vector<8x128xf32>
      %162 = arith.divf %160, %161 : vector<8x128xf32>
      %163 = arith.mulf %154, %125 : vector<8x128xf32>
      %164 = arith.mulf %148, %156 : vector<8x128xf32>
      %165 = arith.addf %163, %164 : vector<8x128xf32>
      %166 = math.tanh %165 : vector<8x128xf32>
      %167 = arith.mulf %162, %166 : vector<8x128xf32>
      %168 = arith.truncf %167 : vector<8x128xf32> to vector<8x128xbf16>
      %c0_56 = arith.constant 0 : index
      %169 = arith.index_cast %c3_i32 : i32 to index
      %c0_57 = arith.constant 0 : index
      %c0_58 = arith.constant 0 : index
      %170 = vector.load %arg5[%c0_56, %169, %c0_57, %c0_58] : memref<1x8x8x128xbf16, #tpu.memory_space<vmem>>, vector<1x1x8x128xbf16>
      %171 = vector.shape_cast %170 : vector<1x1x8x128xbf16> to vector<8x128xbf16>
      %172 = vector.shape_cast %168 : vector<8x128xbf16> to vector<1x1x8x128xbf16>
      tpu.vector_store %arg5[%c0_56, %169, %c0_57, %c0_58], %172 {strides = array<i32>} : memref<1x8x8x128xbf16, #tpu.memory_space<vmem>>, vector<1x1x8x128xbf16>,
      %c4_i32 = arith.constant 4 : i32
      %c0_59 = arith.constant 0 : index
      %173 = arith.index_cast %c4_i32 : i32 to index
      %c0_60 = arith.constant 0 : index
      %c0_61 = arith.constant 0 : index
      %174 = vector.load %arg2[%c0_59, %173, %c0_60, %c0_61] : memref<1x8x8x512xbf16, #tpu.memory_space<vmem>>, vector<1x1x8x512xbf16>
      %175 = vector.shape_cast %174 : vector<1x1x8x512xbf16> to vector<8x512xbf16>
      %176 = arith.extf %175 : vector<8x512xbf16> to vector<8x512xf32>
      %177 = vector.broadcast %4 : vector<1x512xf32> to vector<8x512xf32>
      %178 = arith.addf %176, %177 : vector<8x512xf32>
      %179 = arith.truncf %167 : vector<8x128xf32> to vector<8x128xbf16>
      %c0_62 = arith.constant 0 : index
      %c0_63 = arith.constant 0 : index
      %180 = vector.load %arg6[%c0_62, %c0_63] : memref<128x512xbf16, #tpu.memory_space<vmem>>, vector<128x512xbf16>
      %cst_64 = arith.constant dense<0.000000e+00> : vector<8x512xf32>
      %181 = tpu.matmul %179, %180, %cst_64 {dimension_numbers = #tpu.dot_dimension_numbers<[1], [0], [0], [1], [0, 0, 1, 1], [], []>} : vector<8x128xbf16>, vector<128x512xbf16>, vector<8x512xf32> -> vector<8x512xf32>
      %182 = arith.addf %178, %181 : vector<8x512xf32>
      %183 = vector.extract_strided_slice %182 {offsets = [0, 0], sizes = [8, 128], strides = [1, 1]} : vector<8x512xf32> to vector<8x128xf32>
      %184 = arith.negf %183 : vector<8x128xf32>
      %185 = math.exp %184 : vector<8x128xf32>
      %cst_65 = arith.constant 1.000000e+00 : f32
      %186 = vector.broadcast %cst_65 : f32 to vector<8x128xf32>
      %187 = arith.addf %186, %185 : vector<8x128xf32>
      %188 = arith.divf %186, %187 : vector<8x128xf32>
      %189 = vector.extract_strided_slice %182 {offsets = [0, 128], sizes = [8, 128], strides = [1, 1]} : vector<8x512xf32> to vector<8x128xf32>
      %190 = arith.negf %189 : vector<8x128xf32>
      %191 = math.exp %190 : vector<8x128xf32>
      %cst_66 = arith.constant 1.000000e+00 : f32
      %192 = vector.broadcast %cst_66 : f32 to vector<8x128xf32>
      %193 = arith.addf %192, %191 : vector<8x128xf32>
      %194 = arith.divf %192, %193 : vector<8x128xf32>
      %195 = vector.extract_strided_slice %182 {offsets = [0, 256], sizes = [8, 128], strides = [1, 1]} : vector<8x512xf32> to vector<8x128xf32>
      %196 = math.tanh %195 : vector<8x128xf32>
      %197 = vector.extract_strided_slice %182 {offsets = [0, 384], sizes = [8, 128], strides = [1, 1]} : vector<8x512xf32> to vector<8x128xf32>
      %198 = arith.negf %197 : vector<8x128xf32>
      %199 = math.exp %198 : vector<8x128xf32>
      %cst_67 = arith.constant 1.000000e+00 : f32
      %200 = vector.broadcast %cst_67 : f32 to vector<8x128xf32>
      %201 = arith.addf %200, %199 : vector<8x128xf32>
      %202 = arith.divf %200, %201 : vector<8x128xf32>
      %203 = arith.mulf %194, %165 : vector<8x128xf32>
      %204 = arith.mulf %188, %196 : vector<8x128xf32>
      %205 = arith.addf %203, %204 : vector<8x128xf32>
      %206 = math.tanh %205 : vector<8x128xf32>
      %207 = arith.mulf %202, %206 : vector<8x128xf32>
      %208 = arith.truncf %207 : vector<8x128xf32> to vector<8x128xbf16>
      %c0_68 = arith.constant 0 : index
      %209 = arith.index_cast %c4_i32 : i32 to index
      %c0_69 = arith.constant 0 : index
      %c0_70 = arith.constant 0 : index
      %210 = vector.load %arg5[%c0_68, %209, %c0_69, %c0_70] : memref<1x8x8x128xbf16, #tpu.memory_space<vmem>>, vector<1x1x8x128xbf16>
      %211 = vector.shape_cast %210 : vector<1x1x8x128xbf16> to vector<8x128xbf16>
      %212 = vector.shape_cast %208 : vector<8x128xbf16> to vector<1x1x8x128xbf16>
      tpu.vector_store %arg5[%c0_68, %209, %c0_69, %c0_70], %212 {strides = array<i32>} : memref<1x8x8x128xbf16, #tpu.memory_space<vmem>>, vector<1x1x8x128xbf16>,
      %c5_i32 = arith.constant 5 : i32
      %c0_71 = arith.constant 0 : index
      %213 = arith.index_cast %c5_i32 : i32 to index
      %c0_72 = arith.constant 0 : index
      %c0_73 = arith.constant 0 : index
      %214 = vector.load %arg2[%c0_71, %213, %c0_72, %c0_73] : memref<1x8x8x512xbf16, #tpu.memory_space<vmem>>, vector<1x1x8x512xbf16>
      %215 = vector.shape_cast %214 : vector<1x1x8x512xbf16> to vector<8x512xbf16>
      %216 = arith.extf %215 : vector<8x512xbf16> to vector<8x512xf32>
      %217 = vector.broadcast %4 : vector<1x512xf32> to vector<8x512xf32>
      %218 = arith.addf %216, %217 : vector<8x512xf32>
      %219 = arith.truncf %207 : vector<8x128xf32> to vector<8x128xbf16>
      %c0_74 = arith.constant 0 : index
      %c0_75 = arith.constant 0 : index
      %220 = vector.load %arg6[%c0_74, %c0_75] : memref<128x512xbf16, #tpu.memory_space<vmem>>, vector<128x512xbf16>
      %cst_76 = arith.constant dense<0.000000e+00> : vector<8x512xf32>
      %221 = tpu.matmul %219, %220, %cst_76 {dimension_numbers = #tpu.dot_dimension_numbers<[1], [0], [0], [1], [0, 0, 1, 1], [], []>} : vector<8x128xbf16>, vector<128x512xbf16>, vector<8x512xf32> -> vector<8x512xf32>
      %222 = arith.addf %218, %221 : vector<8x512xf32>
      %223 = vector.extract_strided_slice %222 {offsets = [0, 0], sizes = [8, 128], strides = [1, 1]} : vector<8x512xf32> to vector<8x128xf32>
      %224 = arith.negf %223 : vector<8x128xf32>
      %225 = math.exp %224 : vector<8x128xf32>
      %cst_77 = arith.constant 1.000000e+00 : f32
      %226 = vector.broadcast %cst_77 : f32 to vector<8x128xf32>
      %227 = arith.addf %226, %225 : vector<8x128xf32>
      %228 = arith.divf %226, %227 : vector<8x128xf32>
      %229 = vector.extract_strided_slice %222 {offsets = [0, 128], sizes = [8, 128], strides = [1, 1]} : vector<8x512xf32> to vector<8x128xf32>
      %230 = arith.negf %229 : vector<8x128xf32>
      %231 = math.exp %230 : vector<8x128xf32>
      %cst_78 = arith.constant 1.000000e+00 : f32
      %232 = vector.broadcast %cst_78 : f32 to vector<8x128xf32>
      %233 = arith.addf %232, %231 : vector<8x128xf32>
      %234 = arith.divf %232, %233 : vector<8x128xf32>
      %235 = vector.extract_strided_slice %222 {offsets = [0, 256], sizes = [8, 128], strides = [1, 1]} : vector<8x512xf32> to vector<8x128xf32>
      %236 = math.tanh %235 : vector<8x128xf32>
      %237 = vector.extract_strided_slice %222 {offsets = [0, 384], sizes = [8, 128], strides = [1, 1]} : vector<8x512xf32> to vector<8x128xf32>
      %238 = arith.negf %237 : vector<8x128xf32>
      %239 = math.exp %238 : vector<8x128xf32>
      %cst_79 = arith.constant 1.000000e+00 : f32
      %240 = vector.broadcast %cst_79 : f32 to vector<8x128xf32>
      %241 = arith.addf %240, %239 : vector<8x128xf32>
      %242 = arith.divf %240, %241 : vector<8x128xf32>
      %243 = arith.mulf %234, %205 : vector<8x128xf32>
      %244 = arith.mulf %228, %236 : vector<8x128xf32>
      %245 = arith.addf %243, %244 : vector<8x128xf32>
      %246 = math.tanh %245 : vector<8x128xf32>
      %247 = arith.mulf %242, %246 : vector<8x128xf32>
      %248 = arith.truncf %247 : vector<8x128xf32> to vector<8x128xbf16>
      %c0_80 = arith.constant 0 : index
      %249 = arith.index_cast %c5_i32 : i32 to index
      %c0_81 = arith.constant 0 : index
      %c0_82 = arith.constant 0 : index
      %250 = vector.load %arg5[%c0_80, %249, %c0_81, %c0_82] : memref<1x8x8x128xbf16, #tpu.memory_space<vmem>>, vector<1x1x8x128xbf16>
      %251 = vector.shape_cast %250 : vector<1x1x8x128xbf16> to vector<8x128xbf16>
      %252 = vector.shape_cast %248 : vector<8x128xbf16> to vector<1x1x8x128xbf16>
      tpu.vector_store %arg5[%c0_80, %249, %c0_81, %c0_82], %252 {strides = array<i32>} : memref<1x8x8x128xbf16, #tpu.memory_space<vmem>>, vector<1x1x8x128xbf16>,
      %c6_i32 = arith.constant 6 : i32
      %c0_83 = arith.constant 0 : index
      %253 = arith.index_cast %c6_i32 : i32 to index
      %c0_84 = arith.constant 0 : index
      %c0_85 = arith.constant 0 : index
      %254 = vector.load %arg2[%c0_83, %253, %c0_84, %c0_85] : memref<1x8x8x512xbf16, #tpu.memory_space<vmem>>, vector<1x1x8x512xbf16>
      %255 = vector.shape_cast %254 : vector<1x1x8x512xbf16> to vector<8x512xbf16>
      %256 = arith.extf %255 : vector<8x512xbf16> to vector<8x512xf32>
      %257 = vector.broadcast %4 : vector<1x512xf32> to vector<8x512xf32>
      %258 = arith.addf %256, %257 : vector<8x512xf32>
      %259 = arith.truncf %247 : vector<8x128xf32> to vector<8x128xbf16>
      %c0_86 = arith.constant 0 : index
      %c0_87 = arith.constant 0 : index
      %260 = vector.load %arg6[%c0_86, %c0_87] : memref<128x512xbf16, #tpu.memory_space<vmem>>, vector<128x512xbf16>
      %cst_88 = arith.constant dense<0.000000e+00> : vector<8x512xf32>
      %261 = tpu.matmul %259, %260, %cst_88 {dimension_numbers = #tpu.dot_dimension_numbers<[1], [0], [0], [1], [0, 0, 1, 1], [], []>} : vector<8x128xbf16>, vector<128x512xbf16>, vector<8x512xf32> -> vector<8x512xf32>
      %262 = arith.addf %258, %261 : vector<8x512xf32>
      %263 = vector.extract_strided_slice %262 {offsets = [0, 0], sizes = [8, 128], strides = [1, 1]} : vector<8x512xf32> to vector<8x128xf32>
      %264 = arith.negf %263 : vector<8x128xf32>
      %265 = math.exp %264 : vector<8x128xf32>
      %cst_89 = arith.constant 1.000000e+00 : f32
      %266 = vector.broadcast %cst_89 : f32 to vector<8x128xf32>
      %267 = arith.addf %266, %265 : vector<8x128xf32>
      %268 = arith.divf %266, %267 : vector<8x128xf32>
      %269 = vector.extract_strided_slice %262 {offsets = [0, 128], sizes = [8, 128], strides = [1, 1]} : vector<8x512xf32> to vector<8x128xf32>
      %270 = arith.negf %269 : vector<8x128xf32>
      %271 = math.exp %270 : vector<8x128xf32>
      %cst_90 = arith.constant 1.000000e+00 : f32
      %272 = vector.broadcast %cst_90 : f32 to vector<8x128xf32>
      %273 = arith.addf %272, %271 : vector<8x128xf32>
      %274 = arith.divf %272, %273 : vector<8x128xf32>
      %275 = vector.extract_strided_slice %262 {offsets = [0, 256], sizes = [8, 128], strides = [1, 1]} : vector<8x512xf32> to vector<8x128xf32>
      %276 = math.tanh %275 : vector<8x128xf32>
      %277 = vector.extract_strided_slice %262 {offsets = [0, 384], sizes = [8, 128], strides = [1, 1]} : vector<8x512xf32> to vector<8x128xf32>
      %278 = arith.negf %277 : vector<8x128xf32>
      %279 = math.exp %278 : vector<8x128xf32>
      %cst_91 = arith.constant 1.000000e+00 : f32
      %280 = vector.broadcast %cst_91 : f32 to vector<8x128xf32>
      %281 = arith.addf %280, %279 : vector<8x128xf32>
      %282 = arith.divf %280, %281 : vector<8x128xf32>
      %283 = arith.mulf %274, %245 : vector<8x128xf32>
      %284 = arith.mulf %268, %276 : vector<8x128xf32>
      %285 = arith.addf %283, %284 : vector<8x128xf32>
      %286 = math.tanh %285 : vector<8x128xf32>
      %287 = arith.mulf %282, %286 : vector<8x128xf32>
      %288 = arith.truncf %287 : vector<8x128xf32> to vector<8x128xbf16>
      %c0_92 = arith.constant 0 : index
      %289 = arith.index_cast %c6_i32 : i32 to index
      %c0_93 = arith.constant 0 : index
      %c0_94 = arith.constant 0 : index
      %290 = vector.load %arg5[%c0_92, %289, %c0_93, %c0_94] : memref<1x8x8x128xbf16, #tpu.memory_space<vmem>>, vector<1x1x8x128xbf16>
      %291 = vector.shape_cast %290 : vector<1x1x8x128xbf16> to vector<8x128xbf16>
      %292 = vector.shape_cast %288 : vector<8x128xbf16> to vector<1x1x8x128xbf16>
      tpu.vector_store %arg5[%c0_92, %289, %c0_93, %c0_94], %292 {strides = array<i32>} : memref<1x8x8x128xbf16, #tpu.memory_space<vmem>>, vector<1x1x8x128xbf16>,
      %c7_i32 = arith.constant 7 : i32
      %c0_95 = arith.constant 0 : index
      %293 = arith.index_cast %c7_i32 : i32 to index
      %c0_96 = arith.constant 0 : index
      %c0_97 = arith.constant 0 : index
      %294 = vector.load %arg2[%c0_95, %293, %c0_96, %c0_97] : memref<1x8x8x512xbf16, #tpu.memory_space<vmem>>, vector<1x1x8x512xbf16>
      %295 = vector.shape_cast %294 : vector<1x1x8x512xbf16> to vector<8x512xbf16>
      %296 = arith.extf %295 : vector<8x512xbf16> to vector<8x512xf32>
      %297 = vector.broadcast %4 : vector<1x512xf32> to vector<8x512xf32>
      %298 = arith.addf %296, %297 : vector<8x512xf32>
      %299 = arith.truncf %287 : vector<8x128xf32> to vector<8x128xbf16>
      %c0_98 = arith.constant 0 : index
      %c0_99 = arith.constant 0 : index
      %300 = vector.load %arg6[%c0_98, %c0_99] : memref<128x512xbf16, #tpu.memory_space<vmem>>, vector<128x512xbf16>
      %cst_100 = arith.constant dense<0.000000e+00> : vector<8x512xf32>
      %301 = tpu.matmul %299, %300, %cst_100 {dimension_numbers = #tpu.dot_dimension_numbers<[1], [0], [0], [1], [0, 0, 1, 1], [], []>} : vector<8x128xbf16>, vector<128x512xbf16>, vector<8x512xf32> -> vector<8x512xf32>
      %302 = arith.addf %298, %301 : vector<8x512xf32>
      %303 = vector.extract_strided_slice %302 {offsets = [0, 0], sizes = [8, 128], strides = [1, 1]} : vector<8x512xf32> to vector<8x128xf32>
      %304 = arith.negf %303 : vector<8x128xf32>
      %305 = math.exp %304 : vector<8x128xf32>
      %cst_101 = arith.constant 1.000000e+00 : f32
      %306 = vector.broadcast %cst_101 : f32 to vector<8x128xf32>
      %307 = arith.addf %306, %305 : vector<8x128xf32>
      %308 = arith.divf %306, %307 : vector<8x128xf32>
      %309 = vector.extract_strided_slice %302 {offsets = [0, 128], sizes = [8, 128], strides = [1, 1]} : vector<8x512xf32> to vector<8x128xf32>
      %310 = arith.negf %309 : vector<8x128xf32>
      %311 = math.exp %310 : vector<8x128xf32>
      %cst_102 = arith.constant 1.000000e+00 : f32
      %312 = vector.broadcast %cst_102 : f32 to vector<8x128xf32>
      %313 = arith.addf %312, %311 : vector<8x128xf32>
      %314 = arith.divf %312, %313 : vector<8x128xf32>
      %315 = vector.extract_strided_slice %302 {offsets = [0, 256], sizes = [8, 128], strides = [1, 1]} : vector<8x512xf32> to vector<8x128xf32>
      %316 = math.tanh %315 : vector<8x128xf32>
      %317 = vector.extract_strided_slice %302 {offsets = [0, 384], sizes = [8, 128], strides = [1, 1]} : vector<8x512xf32> to vector<8x128xf32>
      %318 = arith.negf %317 : vector<8x128xf32>
      %319 = math.exp %318 : vector<8x128xf32>
      %cst_103 = arith.constant 1.000000e+00 : f32
      %320 = vector.broadcast %cst_103 : f32 to vector<8x128xf32>
      %321 = arith.addf %320, %319 : vector<8x128xf32>
      %322 = arith.divf %320, %321 : vector<8x128xf32>
      %323 = arith.mulf %314, %285 : vector<8x128xf32>
      %324 = arith.mulf %308, %316 : vector<8x128xf32>
      %325 = arith.addf %323, %324 : vector<8x128xf32>
      %326 = math.tanh %325 : vector<8x128xf32>
      %327 = arith.mulf %322, %326 : vector<8x128xf32>
      %328 = arith.truncf %327 : vector<8x128xf32> to vector<8x128xbf16>
      %c0_104 = arith.constant 0 : index
      %329 = arith.index_cast %c7_i32 : i32 to index
      %c0_105 = arith.constant 0 : index
      %c0_106 = arith.constant 0 : index
      %330 = vector.load %arg5[%c0_104, %329, %c0_105, %c0_106] : memref<1x8x8x128xbf16, #tpu.memory_space<vmem>>, vector<1x1x8x128xbf16>
      %331 = vector.shape_cast %330 : vector<1x1x8x128xbf16> to vector<8x128xbf16>
      %332 = vector.shape_cast %328 : vector<8x128xbf16> to vector<1x1x8x128xbf16>
      tpu.vector_store %arg5[%c0_104, %329, %c0_105, %c0_106], %332 {strides = array<i32>} : memref<1x8x8x128xbf16, #tpu.memory_space<vmem>>, vector<1x1x8x128xbf16>,
      %c8_i32 = arith.constant 8 : i32
      %c0_107 = arith.constant 0 : index
      %c0_108 = arith.constant 0 : index
      %333 = vector.load %arg7[%c0_107, %c0_108] : memref<8x128xf32, #tpu.memory_space<vmem>>, vector<8x128xf32>
      tpu.vector_store %arg7[%c0_107, %c0_108], %327 {strides = array<i32>} : memref<8x128xf32, #tpu.memory_space<vmem>>, vector<8x128xf32>,
      %c0_109 = arith.constant 0 : index
      %c0_110 = arith.constant 0 : index
      %334 = vector.load %arg8[%c0_109, %c0_110] : memref<8x128xf32, #tpu.memory_space<vmem>>, vector<8x128xf32>
      tpu.vector_store %arg8[%c0_109, %c0_110], %325 {strides = array<i32>} : memref<8x128xf32, #tpu.memory_space<vmem>>, vector<8x128xf32>,
    } else {
    }
    %c1_i32 = arith.constant 1 : i32
    %8 = arith.cmpi eq, %arg0, %c1_i32 : i32
    %9 = arith.extui %8 : i1 to i32
    %c0_i32_5 = arith.constant 0 : i32
    %10 = arith.cmpi ne, %9, %c0_i32_5 : i32
    scf.if %10 {
      %c0_6 = arith.constant 0 : index
      %c0_7 = arith.constant 0 : index
      %11 = vector.load %arg7[%c0_6, %c0_7] : memref<8x128xf32, #tpu.memory_space<vmem>>, vector<8x128xf32>
      %c0_8 = arith.constant 0 : index
      %c0_9 = arith.constant 0 : index
      %12 = vector.load %arg8[%c0_8, %c0_9] : memref<8x128xf32, #tpu.memory_space<vmem>>, vector<8x128xf32>
      %c0_i32_10 = arith.constant 0 : i32
      %c7_i32 = arith.constant 7 : i32
      %13 = arith.subi %c7_i32, %c0_i32_10 : i32
      %c0_11 = arith.constant 0 : index
      %14 = arith.index_cast %13 : i32 to index
      %c0_12 = arith.constant 0 : index
      %c0_13 = arith.constant 0 : index
      %15 = vector.load %arg2[%c0_11, %14, %c0_12, %c0_13] : memref<1x8x8x512xbf16, #tpu.memory_space<vmem>>, vector<1x1x8x512xbf16>
      %16 = vector.shape_cast %15 : vector<1x1x8x512xbf16> to vector<8x512xbf16>
      %17 = arith.extf %16 : vector<8x512xbf16> to vector<8x512xf32>
      %18 = vector.broadcast %4 : vector<1x512xf32> to vector<8x512xf32>
      %19 = arith.addf %17, %18 : vector<8x512xf32>
      %20 = arith.truncf %11 : vector<8x128xf32> to vector<8x128xbf16>
      %c0_14 = arith.constant 0 : index
      %c0_15 = arith.constant 0 : index
      %21 = vector.load %arg6[%c0_14, %c0_15] : memref<128x512xbf16, #tpu.memory_space<vmem>>, vector<128x512xbf16>
      %cst = arith.constant dense<0.000000e+00> : vector<8x512xf32>
      %22 = tpu.matmul %20, %21, %cst {dimension_numbers = #tpu.dot_dimension_numbers<[1], [0], [0], [1], [0, 0, 1, 1], [], []>} : vector<8x128xbf16>, vector<128x512xbf16>, vector<8x512xf32> -> vector<8x512xf32>
      %23 = arith.addf %19, %22 : vector<8x512xf32>
      %24 = vector.extract_strided_slice %23 {offsets = [0, 0], sizes = [8, 128], strides = [1, 1]} : vector<8x512xf32> to vector<8x128xf32>
      %25 = arith.negf %24 : vector<8x128xf32>
      %26 = math.exp %25 : vector<8x128xf32>
      %cst_16 = arith.constant 1.000000e+00 : f32
      %27 = vector.broadcast %cst_16 : f32 to vector<8x128xf32>
      %28 = arith.addf %27, %26 : vector<8x128xf32>
      %29 = arith.divf %27, %28 : vector<8x128xf32>
      %30 = vector.extract_strided_slice %23 {offsets = [0, 128], sizes = [8, 128], strides = [1, 1]} : vector<8x512xf32> to vector<8x128xf32>
      %31 = arith.negf %30 : vector<8x128xf32>
      %32 = math.exp %31 : vector<8x128xf32>
      %cst_17 = arith.constant 1.000000e+00 : f32
      %33 = vector.broadcast %cst_17 : f32 to vector<8x128xf32>
      %34 = arith.addf %33, %32 : vector<8x128xf32>
      %35 = arith.divf %33, %34 : vector<8x128xf32>
      %36 = vector.extract_strided_slice %23 {offsets = [0, 256], sizes = [8, 128], strides = [1, 1]} : vector<8x512xf32> to vector<8x128xf32>
      %37 = math.tanh %36 : vector<8x128xf32>
      %38 = vector.extract_strided_slice %23 {offsets = [0, 384], sizes = [8, 128], strides = [1, 1]} : vector<8x512xf32> to vector<8x128xf32>
      %39 = arith.negf %38 : vector<8x128xf32>
      %40 = math.exp %39 : vector<8x128xf32>
      %cst_18 = arith.constant 1.000000e+00 : f32
      %41 = vector.broadcast %cst_18 : f32 to vector<8x128xf32>
      %42 = arith.addf %41, %40 : vector<8x128xf32>
      %43 = arith.divf %41, %42 : vector<8x128xf32>
      %44 = arith.mulf %35, %12 : vector<8x128xf32>
      %45 = arith.mulf %29, %37 : vector<8x128xf32>
      %46 = arith.addf %44, %45 : vector<8x128xf32>
      %47 = math.tanh %46 : vector<8x128xf32>
      %48 = arith.mulf %43, %47 : vector<8x128xf32>
      %49 = arith.truncf %48 : vector<8x128xf32> to vector<8x128xbf16>
      %c0_19 = arith.constant 0 : index
      %50 = arith.index_cast %13 : i32 to index
      %c0_20 = arith.constant 0 : index
      %c0_21 = arith.constant 0 : index
      %51 = vector.load %arg5[%c0_19, %50, %c0_20, %c0_21] : memref<1x8x8x128xbf16, #tpu.memory_space<vmem>>, vector<1x1x8x128xbf16>
      %52 = vector.shape_cast %51 : vector<1x1x8x128xbf16> to vector<8x128xbf16>
      %53 = vector.shape_cast %49 : vector<8x128xbf16> to vector<1x1x8x128xbf16>
      tpu.vector_store %arg5[%c0_19, %50, %c0_20, %c0_21], %53 {strides = array<i32>} : memref<1x8x8x128xbf16, #tpu.memory_space<vmem>>, vector<1x1x8x128xbf16>,
      %c1_i32_22 = arith.constant 1 : i32
      %c7_i32_23 = arith.constant 7 : i32
      %54 = arith.subi %c7_i32_23, %c1_i32_22 : i32
      %c0_24 = arith.constant 0 : index
      %55 = arith.index_cast %54 : i32 to index
      %c0_25 = arith.constant 0 : index
      %c0_26 = arith.constant 0 : index
      %56 = vector.load %arg2[%c0_24, %55, %c0_25, %c0_26] : memref<1x8x8x512xbf16, #tpu.memory_space<vmem>>, vector<1x1x8x512xbf16>
      %57 = vector.shape_cast %56 : vector<1x1x8x512xbf16> to vector<8x512xbf16>
      %58 = arith.extf %57 : vector<8x512xbf16> to vector<8x512xf32>
      %59 = vector.broadcast %4 : vector<1x512xf32> to vector<8x512xf32>
      %60 = arith.addf %58, %59 : vector<8x512xf32>
      %61 = arith.truncf %48 : vector<8x128xf32> to vector<8x128xbf16>
      %c0_27 = arith.constant 0 : index
      %c0_28 = arith.constant 0 : index
      %62 = vector.load %arg6[%c0_27, %c0_28] : memref<128x512xbf16, #tpu.memory_space<vmem>>, vector<128x512xbf16>
      %cst_29 = arith.constant dense<0.000000e+00> : vector<8x512xf32>
      %63 = tpu.matmul %61, %62, %cst_29 {dimension_numbers = #tpu.dot_dimension_numbers<[1], [0], [0], [1], [0, 0, 1, 1], [], []>} : vector<8x128xbf16>, vector<128x512xbf16>, vector<8x512xf32> -> vector<8x512xf32>
      %64 = arith.addf %60, %63 : vector<8x512xf32>
      %65 = vector.extract_strided_slice %64 {offsets = [0, 0], sizes = [8, 128], strides = [1, 1]} : vector<8x512xf32> to vector<8x128xf32>
      %66 = arith.negf %65 : vector<8x128xf32>
      %67 = math.exp %66 : vector<8x128xf32>
      %cst_30 = arith.constant 1.000000e+00 : f32
      %68 = vector.broadcast %cst_30 : f32 to vector<8x128xf32>
      %69 = arith.addf %68, %67 : vector<8x128xf32>
      %70 = arith.divf %68, %69 : vector<8x128xf32>
      %71 = vector.extract_strided_slice %64 {offsets = [0, 128], sizes = [8, 128], strides = [1, 1]} : vector<8x512xf32> to vector<8x128xf32>
      %72 = arith.negf %71 : vector<8x128xf32>
      %73 = math.exp %72 : vector<8x128xf32>
      %cst_31 = arith.constant 1.000000e+00 : f32
      %74 = vector.broadcast %cst_31 : f32 to vector<8x128xf32>
      %75 = arith.addf %74, %73 : vector<8x128xf32>
      %76 = arith.divf %74, %75 : vector<8x128xf32>
      %77 = vector.extract_strided_slice %64 {offsets = [0, 256], sizes = [8, 128], strides = [1, 1]} : vector<8x512xf32> to vector<8x128xf32>
      %78 = math.tanh %77 : vector<8x128xf32>
      %79 = vector.extract_strided_slice %64 {offsets = [0, 384], sizes = [8, 128], strides = [1, 1]} : vector<8x512xf32> to vector<8x128xf32>
      %80 = arith.negf %79 : vector<8x128xf32>
      %81 = math.exp %80 : vector<8x128xf32>
      %cst_32 = arith.constant 1.000000e+00 : f32
      %82 = vector.broadcast %cst_32 : f32 to vector<8x128xf32>
      %83 = arith.addf %82, %81 : vector<8x128xf32>
      %84 = arith.divf %82, %83 : vector<8x128xf32>
      %85 = arith.mulf %76, %46 : vector<8x128xf32>
      %86 = arith.mulf %70, %78 : vector<8x128xf32>
      %87 = arith.addf %85, %86 : vector<8x128xf32>
      %88 = math.tanh %87 : vector<8x128xf32>
      %89 = arith.mulf %84, %88 : vector<8x128xf32>
      %90 = arith.truncf %89 : vector<8x128xf32> to vector<8x128xbf16>
      %c0_33 = arith.constant 0 : index
      %91 = arith.index_cast %54 : i32 to index
      %c0_34 = arith.constant 0 : index
      %c0_35 = arith.constant 0 : index
      %92 = vector.load %arg5[%c0_33, %91, %c0_34, %c0_35] : memref<1x8x8x128xbf16, #tpu.memory_space<vmem>>, vector<1x1x8x128xbf16>
      %93 = vector.shape_cast %92 : vector<1x1x8x128xbf16> to vector<8x128xbf16>
      %94 = vector.shape_cast %90 : vector<8x128xbf16> to vector<1x1x8x128xbf16>
      tpu.vector_store %arg5[%c0_33, %91, %c0_34, %c0_35], %94 {strides = array<i32>} : memref<1x8x8x128xbf16, #tpu.memory_space<vmem>>, vector<1x1x8x128xbf16>,
      %c2_i32 = arith.constant 2 : i32
      %c7_i32_36 = arith.constant 7 : i32
      %95 = arith.subi %c7_i32_36, %c2_i32 : i32
      %c0_37 = arith.constant 0 : index
      %96 = arith.index_cast %95 : i32 to index
      %c0_38 = arith.constant 0 : index
      %c0_39 = arith.constant 0 : index
      %97 = vector.load %arg2[%c0_37, %96, %c0_38, %c0_39] : memref<1x8x8x512xbf16, #tpu.memory_space<vmem>>, vector<1x1x8x512xbf16>
      %98 = vector.shape_cast %97 : vector<1x1x8x512xbf16> to vector<8x512xbf16>
      %99 = arith.extf %98 : vector<8x512xbf16> to vector<8x512xf32>
      %100 = vector.broadcast %4 : vector<1x512xf32> to vector<8x512xf32>
      %101 = arith.addf %99, %100 : vector<8x512xf32>
      %102 = arith.truncf %89 : vector<8x128xf32> to vector<8x128xbf16>
      %c0_40 = arith.constant 0 : index
      %c0_41 = arith.constant 0 : index
      %103 = vector.load %arg6[%c0_40, %c0_41] : memref<128x512xbf16, #tpu.memory_space<vmem>>, vector<128x512xbf16>
      %cst_42 = arith.constant dense<0.000000e+00> : vector<8x512xf32>
      %104 = tpu.matmul %102, %103, %cst_42 {dimension_numbers = #tpu.dot_dimension_numbers<[1], [0], [0], [1], [0, 0, 1, 1], [], []>} : vector<8x128xbf16>, vector<128x512xbf16>, vector<8x512xf32> -> vector<8x512xf32>
      %105 = arith.addf %101, %104 : vector<8x512xf32>
      %106 = vector.extract_strided_slice %105 {offsets = [0, 0], sizes = [8, 128], strides = [1, 1]} : vector<8x512xf32> to vector<8x128xf32>
      %107 = arith.negf %106 : vector<8x128xf32>
      %108 = math.exp %107 : vector<8x128xf32>
      %cst_43 = arith.constant 1.000000e+00 : f32
      %109 = vector.broadcast %cst_43 : f32 to vector<8x128xf32>
      %110 = arith.addf %109, %108 : vector<8x128xf32>
      %111 = arith.divf %109, %110 : vector<8x128xf32>
      %112 = vector.extract_strided_slice %105 {offsets = [0, 128], sizes = [8, 128], strides = [1, 1]} : vector<8x512xf32> to vector<8x128xf32>
      %113 = arith.negf %112 : vector<8x128xf32>
      %114 = math.exp %113 : vector<8x128xf32>
      %cst_44 = arith.constant 1.000000e+00 : f32
      %115 = vector.broadcast %cst_44 : f32 to vector<8x128xf32>
      %116 = arith.addf %115, %114 : vector<8x128xf32>
      %117 = arith.divf %115, %116 : vector<8x128xf32>
      %118 = vector.extract_strided_slice %105 {offsets = [0, 256], sizes = [8, 128], strides = [1, 1]} : vector<8x512xf32> to vector<8x128xf32>
      %119 = math.tanh %118 : vector<8x128xf32>
      %120 = vector.extract_strided_slice %105 {offsets = [0, 384], sizes = [8, 128], strides = [1, 1]} : vector<8x512xf32> to vector<8x128xf32>
      %121 = arith.negf %120 : vector<8x128xf32>
      %122 = math.exp %121 : vector<8x128xf32>
      %cst_45 = arith.constant 1.000000e+00 : f32
      %123 = vector.broadcast %cst_45 : f32 to vector<8x128xf32>
      %124 = arith.addf %123, %122 : vector<8x128xf32>
      %125 = arith.divf %123, %124 : vector<8x128xf32>
      %126 = arith.mulf %117, %87 : vector<8x128xf32>
      %127 = arith.mulf %111, %119 : vector<8x128xf32>
      %128 = arith.addf %126, %127 : vector<8x128xf32>
      %129 = math.tanh %128 : vector<8x128xf32>
      %130 = arith.mulf %125, %129 : vector<8x128xf32>
      %131 = arith.truncf %130 : vector<8x128xf32> to vector<8x128xbf16>
      %c0_46 = arith.constant 0 : index
      %132 = arith.index_cast %95 : i32 to index
      %c0_47 = arith.constant 0 : index
      %c0_48 = arith.constant 0 : index
      %133 = vector.load %arg5[%c0_46, %132, %c0_47, %c0_48] : memref<1x8x8x128xbf16, #tpu.memory_space<vmem>>, vector<1x1x8x128xbf16>
      %134 = vector.shape_cast %133 : vector<1x1x8x128xbf16> to vector<8x128xbf16>
      %135 = vector.shape_cast %131 : vector<8x128xbf16> to vector<1x1x8x128xbf16>
      tpu.vector_store %arg5[%c0_46, %132, %c0_47, %c0_48], %135 {strides = array<i32>} : memref<1x8x8x128xbf16, #tpu.memory_space<vmem>>, vector<1x1x8x128xbf16>,
      %c3_i32 = arith.constant 3 : i32
      %c7_i32_49 = arith.constant 7 : i32
      %136 = arith.subi %c7_i32_49, %c3_i32 : i32
      %c0_50 = arith.constant 0 : index
      %137 = arith.index_cast %136 : i32 to index
      %c0_51 = arith.constant 0 : index
      %c0_52 = arith.constant 0 : index
      %138 = vector.load %arg2[%c0_50, %137, %c0_51, %c0_52] : memref<1x8x8x512xbf16, #tpu.memory_space<vmem>>, vector<1x1x8x512xbf16>
      %139 = vector.shape_cast %138 : vector<1x1x8x512xbf16> to vector<8x512xbf16>
      %140 = arith.extf %139 : vector<8x512xbf16> to vector<8x512xf32>
      %141 = vector.broadcast %4 : vector<1x512xf32> to vector<8x512xf32>
      %142 = arith.addf %140, %141 : vector<8x512xf32>
      %143 = arith.truncf %130 : vector<8x128xf32> to vector<8x128xbf16>
      %c0_53 = arith.constant 0 : index
      %c0_54 = arith.constant 0 : index
      %144 = vector.load %arg6[%c0_53, %c0_54] : memref<128x512xbf16, #tpu.memory_space<vmem>>, vector<128x512xbf16>
      %cst_55 = arith.constant dense<0.000000e+00> : vector<8x512xf32>
      %145 = tpu.matmul %143, %144, %cst_55 {dimension_numbers = #tpu.dot_dimension_numbers<[1], [0], [0], [1], [0, 0, 1, 1], [], []>} : vector<8x128xbf16>, vector<128x512xbf16>, vector<8x512xf32> -> vector<8x512xf32>
      %146 = arith.addf %142, %145 : vector<8x512xf32>
      %147 = vector.extract_strided_slice %146 {offsets = [0, 0], sizes = [8, 128], strides = [1, 1]} : vector<8x512xf32> to vector<8x128xf32>
      %148 = arith.negf %147 : vector<8x128xf32>
      %149 = math.exp %148 : vector<8x128xf32>
      %cst_56 = arith.constant 1.000000e+00 : f32
      %150 = vector.broadcast %cst_56 : f32 to vector<8x128xf32>
      %151 = arith.addf %150, %149 : vector<8x128xf32>
      %152 = arith.divf %150, %151 : vector<8x128xf32>
      %153 = vector.extract_strided_slice %146 {offsets = [0, 128], sizes = [8, 128], strides = [1, 1]} : vector<8x512xf32> to vector<8x128xf32>
      %154 = arith.negf %153 : vector<8x128xf32>
      %155 = math.exp %154 : vector<8x128xf32>
      %cst_57 = arith.constant 1.000000e+00 : f32
      %156 = vector.broadcast %cst_57 : f32 to vector<8x128xf32>
      %157 = arith.addf %156, %155 : vector<8x128xf32>
      %158 = arith.divf %156, %157 : vector<8x128xf32>
      %159 = vector.extract_strided_slice %146 {offsets = [0, 256], sizes = [8, 128], strides = [1, 1]} : vector<8x512xf32> to vector<8x128xf32>
      %160 = math.tanh %159 : vector<8x128xf32>
      %161 = vector.extract_strided_slice %146 {offsets = [0, 384], sizes = [8, 128], strides = [1, 1]} : vector<8x512xf32> to vector<8x128xf32>
      %162 = arith.negf %161 : vector<8x128xf32>
      %163 = math.exp %162 : vector<8x128xf32>
      %cst_58 = arith.constant 1.000000e+00 : f32
      %164 = vector.broadcast %cst_58 : f32 to vector<8x128xf32>
      %165 = arith.addf %164, %163 : vector<8x128xf32>
      %166 = arith.divf %164, %165 : vector<8x128xf32>
      %167 = arith.mulf %158, %128 : vector<8x128xf32>
      %168 = arith.mulf %152, %160 : vector<8x128xf32>
      %169 = arith.addf %167, %168 : vector<8x128xf32>
      %170 = math.tanh %169 : vector<8x128xf32>
      %171 = arith.mulf %166, %170 : vector<8x128xf32>
      %172 = arith.truncf %171 : vector<8x128xf32> to vector<8x128xbf16>
      %c0_59 = arith.constant 0 : index
      %173 = arith.index_cast %136 : i32 to index
      %c0_60 = arith.constant 0 : index
      %c0_61 = arith.constant 0 : index
      %174 = vector.load %arg5[%c0_59, %173, %c0_60, %c0_61] : memref<1x8x8x128xbf16, #tpu.memory_space<vmem>>, vector<1x1x8x128xbf16>
      %175 = vector.shape_cast %174 : vector<1x1x8x128xbf16> to vector<8x128xbf16>
      %176 = vector.shape_cast %172 : vector<8x128xbf16> to vector<1x1x8x128xbf16>
      tpu.vector_store %arg5[%c0_59, %173, %c0_60, %c0_61], %176 {strides = array<i32>} : memref<1x8x8x128xbf16, #tpu.memory_space<vmem>>, vector<1x1x8x128xbf16>,
      %c4_i32 = arith.constant 4 : i32
      %c7_i32_62 = arith.constant 7 : i32
      %177 = arith.subi %c7_i32_62, %c4_i32 : i32
      %c0_63 = arith.constant 0 : index
      %178 = arith.index_cast %177 : i32 to index
      %c0_64 = arith.constant 0 : index
      %c0_65 = arith.constant 0 : index
      %179 = vector.load %arg2[%c0_63, %178, %c0_64, %c0_65] : memref<1x8x8x512xbf16, #tpu.memory_space<vmem>>, vector<1x1x8x512xbf16>
      %180 = vector.shape_cast %179 : vector<1x1x8x512xbf16> to vector<8x512xbf16>
      %181 = arith.extf %180 : vector<8x512xbf16> to vector<8x512xf32>
      %182 = vector.broadcast %4 : vector<1x512xf32> to vector<8x512xf32>
      %183 = arith.addf %181, %182 : vector<8x512xf32>
      %184 = arith.truncf %171 : vector<8x128xf32> to vector<8x128xbf16>
      %c0_66 = arith.constant 0 : index
      %c0_67 = arith.constant 0 : index
      %185 = vector.load %arg6[%c0_66, %c0_67] : memref<128x512xbf16, #tpu.memory_space<vmem>>, vector<128x512xbf16>
      %cst_68 = arith.constant dense<0.000000e+00> : vector<8x512xf32>
      %186 = tpu.matmul %184, %185, %cst_68 {dimension_numbers = #tpu.dot_dimension_numbers<[1], [0], [0], [1], [0, 0, 1, 1], [], []>} : vector<8x128xbf16>, vector<128x512xbf16>, vector<8x512xf32> -> vector<8x512xf32>
      %187 = arith.addf %183, %186 : vector<8x512xf32>
      %188 = vector.extract_strided_slice %187 {offsets = [0, 0], sizes = [8, 128], strides = [1, 1]} : vector<8x512xf32> to vector<8x128xf32>
      %189 = arith.negf %188 : vector<8x128xf32>
      %190 = math.exp %189 : vector<8x128xf32>
      %cst_69 = arith.constant 1.000000e+00 : f32
      %191 = vector.broadcast %cst_69 : f32 to vector<8x128xf32>
      %192 = arith.addf %191, %190 : vector<8x128xf32>
      %193 = arith.divf %191, %192 : vector<8x128xf32>
      %194 = vector.extract_strided_slice %187 {offsets = [0, 128], sizes = [8, 128], strides = [1, 1]} : vector<8x512xf32> to vector<8x128xf32>
      %195 = arith.negf %194 : vector<8x128xf32>
      %196 = math.exp %195 : vector<8x128xf32>
      %cst_70 = arith.constant 1.000000e+00 : f32
      %197 = vector.broadcast %cst_70 : f32 to vector<8x128xf32>
      %198 = arith.addf %197, %196 : vector<8x128xf32>
      %199 = arith.divf %197, %198 : vector<8x128xf32>
      %200 = vector.extract_strided_slice %187 {offsets = [0, 256], sizes = [8, 128], strides = [1, 1]} : vector<8x512xf32> to vector<8x128xf32>
      %201 = math.tanh %200 : vector<8x128xf32>
      %202 = vector.extract_strided_slice %187 {offsets = [0, 384], sizes = [8, 128], strides = [1, 1]} : vector<8x512xf32> to vector<8x128xf32>
      %203 = arith.negf %202 : vector<8x128xf32>
      %204 = math.exp %203 : vector<8x128xf32>
      %cst_71 = arith.constant 1.000000e+00 : f32
      %205 = vector.broadcast %cst_71 : f32 to vector<8x128xf32>
      %206 = arith.addf %205, %204 : vector<8x128xf32>
      %207 = arith.divf %205, %206 : vector<8x128xf32>
      %208 = arith.mulf %199, %169 : vector<8x128xf32>
      %209 = arith.mulf %193, %201 : vector<8x128xf32>
      %210 = arith.addf %208, %209 : vector<8x128xf32>
      %211 = math.tanh %210 : vector<8x128xf32>
      %212 = arith.mulf %207, %211 : vector<8x128xf32>
      %213 = arith.truncf %212 : vector<8x128xf32> to vector<8x128xbf16>
      %c0_72 = arith.constant 0 : index
      %214 = arith.index_cast %177 : i32 to index
      %c0_73 = arith.constant 0 : index
      %c0_74 = arith.constant 0 : index
      %215 = vector.load %arg5[%c0_72, %214, %c0_73, %c0_74] : memref<1x8x8x128xbf16, #tpu.memory_space<vmem>>, vector<1x1x8x128xbf16>
      %216 = vector.shape_cast %215 : vector<1x1x8x128xbf16> to vector<8x128xbf16>
      %217 = vector.shape_cast %213 : vector<8x128xbf16> to vector<1x1x8x128xbf16>
      tpu.vector_store %arg5[%c0_72, %214, %c0_73, %c0_74], %217 {strides = array<i32>} : memref<1x8x8x128xbf16, #tpu.memory_space<vmem>>, vector<1x1x8x128xbf16>,
      %c5_i32 = arith.constant 5 : i32
      %c7_i32_75 = arith.constant 7 : i32
      %218 = arith.subi %c7_i32_75, %c5_i32 : i32
      %c0_76 = arith.constant 0 : index
      %219 = arith.index_cast %218 : i32 to index
      %c0_77 = arith.constant 0 : index
      %c0_78 = arith.constant 0 : index
      %220 = vector.load %arg2[%c0_76, %219, %c0_77, %c0_78] : memref<1x8x8x512xbf16, #tpu.memory_space<vmem>>, vector<1x1x8x512xbf16>
      %221 = vector.shape_cast %220 : vector<1x1x8x512xbf16> to vector<8x512xbf16>
      %222 = arith.extf %221 : vector<8x512xbf16> to vector<8x512xf32>
      %223 = vector.broadcast %4 : vector<1x512xf32> to vector<8x512xf32>
      %224 = arith.addf %222, %223 : vector<8x512xf32>
      %225 = arith.truncf %212 : vector<8x128xf32> to vector<8x128xbf16>
      %c0_79 = arith.constant 0 : index
      %c0_80 = arith.constant 0 : index
      %226 = vector.load %arg6[%c0_79, %c0_80] : memref<128x512xbf16, #tpu.memory_space<vmem>>, vector<128x512xbf16>
      %cst_81 = arith.constant dense<0.000000e+00> : vector<8x512xf32>
      %227 = tpu.matmul %225, %226, %cst_81 {dimension_numbers = #tpu.dot_dimension_numbers<[1], [0], [0], [1], [0, 0, 1, 1], [], []>} : vector<8x128xbf16>, vector<128x512xbf16>, vector<8x512xf32> -> vector<8x512xf32>
      %228 = arith.addf %224, %227 : vector<8x512xf32>
      %229 = vector.extract_strided_slice %228 {offsets = [0, 0], sizes = [8, 128], strides = [1, 1]} : vector<8x512xf32> to vector<8x128xf32>
      %230 = arith.negf %229 : vector<8x128xf32>
      %231 = math.exp %230 : vector<8x128xf32>
      %cst_82 = arith.constant 1.000000e+00 : f32
      %232 = vector.broadcast %cst_82 : f32 to vector<8x128xf32>
      %233 = arith.addf %232, %231 : vector<8x128xf32>
      %234 = arith.divf %232, %233 : vector<8x128xf32>
      %235 = vector.extract_strided_slice %228 {offsets = [0, 128], sizes = [8, 128], strides = [1, 1]} : vector<8x512xf32> to vector<8x128xf32>
      %236 = arith.negf %235 : vector<8x128xf32>
      %237 = math.exp %236 : vector<8x128xf32>
      %cst_83 = arith.constant 1.000000e+00 : f32
      %238 = vector.broadcast %cst_83 : f32 to vector<8x128xf32>
      %239 = arith.addf %238, %237 : vector<8x128xf32>
      %240 = arith.divf %238, %239 : vector<8x128xf32>
      %241 = vector.extract_strided_slice %228 {offsets = [0, 256], sizes = [8, 128], strides = [1, 1]} : vector<8x512xf32> to vector<8x128xf32>
      %242 = math.tanh %241 : vector<8x128xf32>
      %243 = vector.extract_strided_slice %228 {offsets = [0, 384], sizes = [8, 128], strides = [1, 1]} : vector<8x512xf32> to vector<8x128xf32>
      %244 = arith.negf %243 : vector<8x128xf32>
      %245 = math.exp %244 : vector<8x128xf32>
      %cst_84 = arith.constant 1.000000e+00 : f32
      %246 = vector.broadcast %cst_84 : f32 to vector<8x128xf32>
      %247 = arith.addf %246, %245 : vector<8x128xf32>
      %248 = arith.divf %246, %247 : vector<8x128xf32>
      %249 = arith.mulf %240, %210 : vector<8x128xf32>
      %250 = arith.mulf %234, %242 : vector<8x128xf32>
      %251 = arith.addf %249, %250 : vector<8x128xf32>
      %252 = math.tanh %251 : vector<8x128xf32>
      %253 = arith.mulf %248, %252 : vector<8x128xf32>
      %254 = arith.truncf %253 : vector<8x128xf32> to vector<8x128xbf16>
      %c0_85 = arith.constant 0 : index
      %255 = arith.index_cast %218 : i32 to index
      %c0_86 = arith.constant 0 : index
      %c0_87 = arith.constant 0 : index
      %256 = vector.load %arg5[%c0_85, %255, %c0_86, %c0_87] : memref<1x8x8x128xbf16, #tpu.memory_space<vmem>>, vector<1x1x8x128xbf16>
      %257 = vector.shape_cast %256 : vector<1x1x8x128xbf16> to vector<8x128xbf16>
      %258 = vector.shape_cast %254 : vector<8x128xbf16> to vector<1x1x8x128xbf16>
      tpu.vector_store %arg5[%c0_85, %255, %c0_86, %c0_87], %258 {strides = array<i32>} : memref<1x8x8x128xbf16, #tpu.memory_space<vmem>>, vector<1x1x8x128xbf16>,
      %c6_i32 = arith.constant 6 : i32
      %c7_i32_88 = arith.constant 7 : i32
      %259 = arith.subi %c7_i32_88, %c6_i32 : i32
      %c0_89 = arith.constant 0 : index
      %260 = arith.index_cast %259 : i32 to index
      %c0_90 = arith.constant 0 : index
      %c0_91 = arith.constant 0 : index
      %261 = vector.load %arg2[%c0_89, %260, %c0_90, %c0_91] : memref<1x8x8x512xbf16, #tpu.memory_space<vmem>>, vector<1x1x8x512xbf16>
      %262 = vector.shape_cast %261 : vector<1x1x8x512xbf16> to vector<8x512xbf16>
      %263 = arith.extf %262 : vector<8x512xbf16> to vector<8x512xf32>
      %264 = vector.broadcast %4 : vector<1x512xf32> to vector<8x512xf32>
      %265 = arith.addf %263, %264 : vector<8x512xf32>
      %266 = arith.truncf %253 : vector<8x128xf32> to vector<8x128xbf16>
      %c0_92 = arith.constant 0 : index
      %c0_93 = arith.constant 0 : index
      %267 = vector.load %arg6[%c0_92, %c0_93] : memref<128x512xbf16, #tpu.memory_space<vmem>>, vector<128x512xbf16>
      %cst_94 = arith.constant dense<0.000000e+00> : vector<8x512xf32>
      %268 = tpu.matmul %266, %267, %cst_94 {dimension_numbers = #tpu.dot_dimension_numbers<[1], [0], [0], [1], [0, 0, 1, 1], [], []>} : vector<8x128xbf16>, vector<128x512xbf16>, vector<8x512xf32> -> vector<8x512xf32>
      %269 = arith.addf %265, %268 : vector<8x512xf32>
      %270 = vector.extract_strided_slice %269 {offsets = [0, 0], sizes = [8, 128], strides = [1, 1]} : vector<8x512xf32> to vector<8x128xf32>
      %271 = arith.negf %270 : vector<8x128xf32>
      %272 = math.exp %271 : vector<8x128xf32>
      %cst_95 = arith.constant 1.000000e+00 : f32
      %273 = vector.broadcast %cst_95 : f32 to vector<8x128xf32>
      %274 = arith.addf %273, %272 : vector<8x128xf32>
      %275 = arith.divf %273, %274 : vector<8x128xf32>
      %276 = vector.extract_strided_slice %269 {offsets = [0, 128], sizes = [8, 128], strides = [1, 1]} : vector<8x512xf32> to vector<8x128xf32>
      %277 = arith.negf %276 : vector<8x128xf32>
      %278 = math.exp %277 : vector<8x128xf32>
      %cst_96 = arith.constant 1.000000e+00 : f32
      %279 = vector.broadcast %cst_96 : f32 to vector<8x128xf32>
      %280 = arith.addf %279, %278 : vector<8x128xf32>
      %281 = arith.divf %279, %280 : vector<8x128xf32>
      %282 = vector.extract_strided_slice %269 {offsets = [0, 256], sizes = [8, 128], strides = [1, 1]} : vector<8x512xf32> to vector<8x128xf32>
      %283 = math.tanh %282 : vector<8x128xf32>
      %284 = vector.extract_strided_slice %269 {offsets = [0, 384], sizes = [8, 128], strides = [1, 1]} : vector<8x512xf32> to vector<8x128xf32>
      %285 = arith.negf %284 : vector<8x128xf32>
      %286 = math.exp %285 : vector<8x128xf32>
      %cst_97 = arith.constant 1.000000e+00 : f32
      %287 = vector.broadcast %cst_97 : f32 to vector<8x128xf32>
      %288 = arith.addf %287, %286 : vector<8x128xf32>
      %289 = arith.divf %287, %288 : vector<8x128xf32>
      %290 = arith.mulf %281, %251 : vector<8x128xf32>
      %291 = arith.mulf %275, %283 : vector<8x128xf32>
      %292 = arith.addf %290, %291 : vector<8x128xf32>
      %293 = math.tanh %292 : vector<8x128xf32>
      %294 = arith.mulf %289, %293 : vector<8x128xf32>
      %295 = arith.truncf %294 : vector<8x128xf32> to vector<8x128xbf16>
      %c0_98 = arith.constant 0 : index
      %296 = arith.index_cast %259 : i32 to index
      %c0_99 = arith.constant 0 : index
      %c0_100 = arith.constant 0 : index
      %297 = vector.load %arg5[%c0_98, %296, %c0_99, %c0_100] : memref<1x8x8x128xbf16, #tpu.memory_space<vmem>>, vector<1x1x8x128xbf16>
      %298 = vector.shape_cast %297 : vector<1x1x8x128xbf16> to vector<8x128xbf16>
      %299 = vector.shape_cast %295 : vector<8x128xbf16> to vector<1x1x8x128xbf16>
      tpu.vector_store %arg5[%c0_98, %296, %c0_99, %c0_100], %299 {strides = array<i32>} : memref<1x8x8x128xbf16, #tpu.memory_space<vmem>>, vector<1x1x8x128xbf16>,
      %c7_i32_101 = arith.constant 7 : i32
      %c7_i32_102 = arith.constant 7 : i32
      %300 = arith.subi %c7_i32_102, %c7_i32_101 : i32
      %c0_103 = arith.constant 0 : index
      %301 = arith.index_cast %300 : i32 to index
      %c0_104 = arith.constant 0 : index
      %c0_105 = arith.constant 0 : index
      %302 = vector.load %arg2[%c0_103, %301, %c0_104, %c0_105] : memref<1x8x8x512xbf16, #tpu.memory_space<vmem>>, vector<1x1x8x512xbf16>
      %303 = vector.shape_cast %302 : vector<1x1x8x512xbf16> to vector<8x512xbf16>
      %304 = arith.extf %303 : vector<8x512xbf16> to vector<8x512xf32>
      %305 = vector.broadcast %4 : vector<1x512xf32> to vector<8x512xf32>
      %306 = arith.addf %304, %305 : vector<8x512xf32>
      %307 = arith.truncf %294 : vector<8x128xf32> to vector<8x128xbf16>
      %c0_106 = arith.constant 0 : index
      %c0_107 = arith.constant 0 : index
      %308 = vector.load %arg6[%c0_106, %c0_107] : memref<128x512xbf16, #tpu.memory_space<vmem>>, vector<128x512xbf16>
      %cst_108 = arith.constant dense<0.000000e+00> : vector<8x512xf32>
      %309 = tpu.matmul %307, %308, %cst_108 {dimension_numbers = #tpu.dot_dimension_numbers<[1], [0], [0], [1], [0, 0, 1, 1], [], []>} : vector<8x128xbf16>, vector<128x512xbf16>, vector<8x512xf32> -> vector<8x512xf32>
      %310 = arith.addf %306, %309 : vector<8x512xf32>
      %311 = vector.extract_strided_slice %310 {offsets = [0, 0], sizes = [8, 128], strides = [1, 1]} : vector<8x512xf32> to vector<8x128xf32>
      %312 = arith.negf %311 : vector<8x128xf32>
      %313 = math.exp %312 : vector<8x128xf32>
      %cst_109 = arith.constant 1.000000e+00 : f32
      %314 = vector.broadcast %cst_109 : f32 to vector<8x128xf32>
      %315 = arith.addf %314, %313 : vector<8x128xf32>
      %316 = arith.divf %314, %315 : vector<8x128xf32>
      %317 = vector.extract_strided_slice %310 {offsets = [0, 128], sizes = [8, 128], strides = [1, 1]} : vector<8x512xf32> to vector<8x128xf32>
      %318 = arith.negf %317 : vector<8x128xf32>
      %319 = math.exp %318 : vector<8x128xf32>
      %cst_110 = arith.constant 1.000000e+00 : f32
      %320 = vector.broadcast %cst_110 : f32 to vector<8x128xf32>
      %321 = arith.addf %320, %319 : vector<8x128xf32>
      %322 = arith.divf %320, %321 : vector<8x128xf32>
      %323 = vector.extract_strided_slice %310 {offsets = [0, 256], sizes = [8, 128], strides = [1, 1]} : vector<8x512xf32> to vector<8x128xf32>
      %324 = math.tanh %323 : vector<8x128xf32>
      %325 = vector.extract_strided_slice %310 {offsets = [0, 384], sizes = [8, 128], strides = [1, 1]} : vector<8x512xf32> to vector<8x128xf32>
      %326 = arith.negf %325 : vector<8x128xf32>
      %327 = math.exp %326 : vector<8x128xf32>
      %cst_111 = arith.constant 1.000000e+00 : f32
      %328 = vector.broadcast %cst_111 : f32 to vector<8x128xf32>
      %329 = arith.addf %328, %327 : vector<8x128xf32>
      %330 = arith.divf %328, %329 : vector<8x128xf32>
      %331 = arith.mulf %322, %292 : vector<8x128xf32>
      %332 = arith.mulf %316, %324 : vector<8x128xf32>
      %333 = arith.addf %331, %332 : vector<8x128xf32>
      %334 = math.tanh %333 : vector<8x128xf32>
      %335 = arith.mulf %330, %334 : vector<8x128xf32>
      %336 = arith.truncf %335 : vector<8x128xf32> to vector<8x128xbf16>
      %c0_112 = arith.constant 0 : index
      %337 = arith.index_cast %300 : i32 to index
      %c0_113 = arith.constant 0 : index
      %c0_114 = arith.constant 0 : index
      %338 = vector.load %arg5[%c0_112, %337, %c0_113, %c0_114] : memref<1x8x8x128xbf16, #tpu.memory_space<vmem>>, vector<1x1x8x128xbf16>
      %339 = vector.shape_cast %338 : vector<1x1x8x128xbf16> to vector<8x128xbf16>
      %340 = vector.shape_cast %336 : vector<8x128xbf16> to vector<1x1x8x128xbf16>
      tpu.vector_store %arg5[%c0_112, %337, %c0_113, %c0_114], %340 {strides = array<i32>} : memref<1x8x8x128xbf16, #tpu.memory_space<vmem>>, vector<1x1x8x128xbf16>,
      %c8_i32 = arith.constant 8 : i32
      %c0_115 = arith.constant 0 : index
      %c0_116 = arith.constant 0 : index
      %341 = vector.load %arg7[%c0_115, %c0_116] : memref<8x128xf32, #tpu.memory_space<vmem>>, vector<8x128xf32>
      tpu.vector_store %arg7[%c0_115, %c0_116], %335 {strides = array<i32>} : memref<8x128xf32, #tpu.memory_space<vmem>>, vector<8x128xf32>,
      %c0_117 = arith.constant 0 : index
      %c0_118 = arith.constant 0 : index
      %342 = vector.load %arg8[%c0_117, %c0_118] : memref<8x128xf32, #tpu.memory_space<vmem>>, vector<8x128xf32>
      tpu.vector_store %arg8[%c0_117, %c0_118], %333 {strides = array<i32>} : memref<8x128xf32, #tpu.memory_space<vmem>>, vector<8x128xf32>,
    } else {
    }
    return
  }
  func.func @transform_0(%arg0: i32, %arg1: i32) -> (i32, i32, i32, i32) {
    %c0_i32 = arith.constant 0 : i32
    %0 = arith.muli %arg0, %c0_i32 : i32
    %c2_i32 = arith.constant 2 : i32
    %1 = arith.muli %c2_i32, %arg0 : i32
    %c1_i32 = arith.constant 1 : i32
    %2 = arith.subi %c1_i32, %1 : i32
    %3 = arith.muli %2, %arg1 : i32
    %4 = arith.addi %0, %3 : i32
    %c0_i32_0 = arith.constant 0 : i32
    %c0_i32_1 = arith.constant 0 : i32
    %c0_i32_2 = arith.constant 0 : i32
    return %arg0, %4, %c0_i32_0, %c0_i32_1 : i32, i32, i32, i32
  }
  func.func @transform_1(%arg0: i32, %arg1: i32) -> (i32, i32, i32) {
    %c0_i32 = arith.constant 0 : i32
    %c0_i32_0 = arith.constant 0 : i32
    %c0_i32_1 = arith.constant 0 : i32
    return %arg0, %c0_i32, %c0_i32_0 : i32, i32, i32
  }
  func.func @transform_3(%arg0: i32, %arg1: i32) -> (i32, i32, i32, i32) {
    %c0_i32 = arith.constant 0 : i32
    %0 = arith.muli %arg0, %c0_i32 : i32
    %c2_i32 = arith.constant 2 : i32
    %1 = arith.muli %c2_i32, %arg0 : i32
    %c1_i32 = arith.constant 1 : i32
    %2 = arith.subi %c1_i32, %1 : i32
    %3 = arith.muli %2, %arg1 : i32
    %4 = arith.addi %0, %3 : i32
    %c0_i32_0 = arith.constant 0 : i32
    %c0_i32_1 = arith.constant 0 : i32
    %c0_i32_2 = arith.constant 0 : i32
    return %arg0, %4, %c0_i32_0, %c0_i32_1 : i32, i32, i32, i32
  }
}

</mosaic_0001>

<bundles_post_ra>
// kernel: tpu_custom_call.1
= control target key start
LH: loop header
LB: loop body
LE: loop exit
PB: predicated region body
PF: predicated region fallthrough
CT: control target
= control target key end

     0   :  { %s8057_s0 = inlined_call_operand.hbm [shape: bf16[2,8,8,512], index: 0, kind: input, shape index: {}]   ;;  %s8058_s1 = inlined_call_operand.hbm [shape: f32[2,1,512], index: 1, kind: input, shape index: {}]   ;;  %s8059_s2 = inlined_call_operand.hbm [shape: bf16[2,128,512], index: 2, kind: input, shape index: {}]   ;;  %s8060_s3 = inlined_call_operand.hbm [shape: bf16[2,8,8,128], index: 3, kind: output, shape index: {}]  }
   0x1   :  { %8061 = sst [smem:[#allocation20_spill]] %s8057_s0 }
   0x2   :  { %8 = vsyncpa [#allocation7], 0 }
   0x3   :  { %10 = vsyncpa [#allocation7 + $0x1], 0 }
   0x4   :  { %11 = vsyncpa [#allocation10], 0 }
   0x5   :  { %13 = vsyncpa [#allocation10 + $0x1], 0 }
   0x6   :  { %14 = vsyncpa [#allocation8], 0 }
   0x7   :  { %16 = vsyncpa [#allocation8 + $0x1], 0  ;;  %s6874_s12 = smov 0   ;;  %s6876_s13 = smov 0  }
   0x8   :  { %s6878_s14 = smov 0   ;;  %s6880_s15 = smov 0  }
   0x9   :  { %s6882_s16 = smov 0   ;;  %s6884_s17 = smov 0  }
   0xa LB: > { %s5518_s18 = sadd.s32 4294967295, %s6841_s17   ;;  %s5519_s19 = sadd.s32 4294967294, %s6841_s17   ;;  %s6841_s17 = sphi %s6884_s17, %s22_s17   ;;  %s6837_s16 = sphi %s6882_s16, %s8073_s16   ;;  %s6833_s15 = sphi %s6880_s15, %s8072_s15   ;;  %s6829_s14 = sphi %s6878_s14, %s8071_s14   ;;  %s6825_s13 = sphi %s6876_s13, %s8070_s13   ;;  %s6821_s12 = sphi %s6874_s12, %s8069_s12  }
   0xb   : > { %s34_s20 = sadd.s32 1, %s6837_s16  ;;  %s49_s21 = sadd.s32 1, %s6829_s14 }
   0xc   : > { %p36_p0 = scmp.ge.s32.totalorder %s34_s20, 2  ;;  %p56_p1 = scmp.ne.s32.totalorder %s6829_s14, %s6825_s13 }
   0xd   : > { %p57_p2 = scmp.eq.s32.totalorder %s6841_s17, 0  ;;  %p62_p3 = scmp.ne.s32.totalorder %s6825_s13, %s6821_s12 }
   0xe   : > { %s8075_s20 = smov (%p36_p0, %s34_s20), 0  ;;  %p63_p5 = scmp.eq.s32.totalorder %s5518_s18, 0 }
   0xf   : > { %p6915_p4 = por %p57_p2, %p56_p1  ;;  %s44_s23 = ssub.s32 %s6837_s16, %s8075_s20 }
  0x10   : > { %p120_p6 = scmp.eq.s32.totalorder %s5518_s18, 1  ;;  %p47_p7 = scmp.eq.s32.totalorder %s44_s23, 0 }
  0x11   : > { %p6921_p8 = por %p63_p5, %p62_p3  ;;  %p126_p10 = scmp.eq.s32.totalorder %s5519_s19, 1 }
  0x12   : > { %p6925_p9 = por %p120_p6, %p56_p1  ;;  %p5525_p12 = scmp.ge.s32.totalorder %s6841_s17, 2 }
  0x13   : > { %s6930_s26 = scalar_select %p47_p7, %s6829_s14, %s49_s21  }
  0x14   : > { %p6932_p11 = por %p126_p10, %p62_p3  ;;  %p6171_p13 = scmp.lt.s32.totalorder %s6841_s17, 2 }
  0x15   : > { %s6939_s28 = sand.u32 1, %s6829_s14   ;;  %s6150_s30 = sshll.u32 %s6837_s16, 11 }
  0x16   : > { %s5526_s29 = sshll.u32 %s6939_s28, 7  ;;  %s8066_s0 = sld [smem:[#allocation20_spill]] }
  0x17   : > { %s150_s7 = scalar_lea.vmem [#allocation6], %s5526_s29  ;;  %p6948_p0 = pnand %p6171_p13, %p6915_p4 }
  0x18   : > { %s163_s8 = sshll.u32 %s150_s7, 4  ;;  %p5533_p1 = scmp.ge.s32.totalorder %s6841_s17, 1  ;;  %s164_s8 = int_to_ptr.vmem [resolvable:$true] %s163_s8 }
  0x19   : > { %s147_s10 = scalar_lea.sflag [#allocation7], %s6939_s28  ;;  %p6679_p2 = pneg %p6948_p0 }
  0x1a   : > { %s6690_s11 = scalar_lea.vmem %s164_s8, 2048  ;;  %s6843_s18 = smov [#allocation6]  }
  0x1b   : > { %p6691_p3 = scmp.ne.s32.totalorder %s164_s8, %s6690_s11  ;;  %s6695_s19 = sshll.u32 %s6843_s18, 4  ;;  %s6696_s19 = int_to_ptr.vmem [resolvable:$false] %s6695_s19 }
  0x1c   : > { %s162_s6 = scalar_lea.hbm %s8066_s0, %s6150_s30  ;;  %s6697_s21 = scalar_lea.vmem %s6696_s19, 4096 }
  0x1d   : > { %p6693_p5 = pnand %p6691_p3, %p6679_p2  ;;  %p6698_p4 = scmp.lt.s32.totalorder %s164_s8, %s6696_s19 }
  0x1e   : > { %p6699_p7 = scmp.lt.s32.totalorder %s6697_s21, %s6690_s11 }
  0x1f   : > { %p6694_p6 = pneg %p6693_p5 }
  0x20   : > { %p6700_p10 = por %p6699_p7, %p6698_p4 }
  0x22   : > { %p6701_p13 = pnand %p6700_p10, %p6694_p6 }
  0x24   : > { %6704 = shalt.err (!%p6701_p13)
}
  0x25   : > { %s6844_s22 = smov 256   ;;  %s6845_s23 = smov 16  }
  0x26   : > { %6163 = dma.hbm_to_vmem [thread:$0]  (!%p6948_p0), %s162_s6, 2048, %s164_s8, %s147_s10, %s6844_s22, %s6844_s22, %s6845_s23  }
  0x27   : > { %p190_p3 = scmp.lt.s32.totalorder %s6841_s17, 3  ;;  %s5530_s29 = sshll.u32 %s6939_s28, 2 }
  0x28   : > { %s6151_s30 = sshll.u32 %s6837_s16, 6  ;;  %s177_s18 = scalar_lea.vmem [#allocation9], %s5530_s29 }
  0x29   : > { %p6966_p5 = pnand %p5533_p1, %p190_p3  ;;  %s183_s11 = scalar_lea.hbm %s8058_s1, %s6151_s30 }
  0x2a   : > { %s185_s19 = sshll.u32 %s177_s18, 4  ;;  %s174_s21 = scalar_lea.sflag [#allocation10], %s6939_s28  ;;  %s186_s19 = int_to_ptr.vmem [resolvable:$true] %s185_s19 }
  0x2b   : > { %s6718_s0 = scalar_lea.vmem %s186_s19, 64  ;;  %s6846_s6 = smov [#allocation9]  }
  0x2c   : > { %p6719_p6 = scmp.ne.s32.totalorder %s186_s19, %s6718_s0  ;;  %s6723_s8 = sshll.u32 %s6846_s6, 4  ;;  %s6724_s8 = int_to_ptr.vmem [resolvable:$false] %s6723_s8 }
  0x2d   : > { %s6725_s10 = scalar_lea.vmem %s6724_s8, 128  ;;  %p6726_p1 = scmp.lt.s32.totalorder %s186_s19, %s6724_s8 }
  0x2e   : > { %p6721_p4 = pnand %p6719_p6, %p6679_p2  ;;  %p6727_p10 = scmp.lt.s32.totalorder %s6725_s10, %s6718_s0 }
  0x30   : > { %p6722_p7 = pneg %p6721_p4  ;;  %p6728_p13 = por %p6727_p10, %p6726_p1 }
  0x32   : > { %p6729_p3 = pnand %p6728_p13, %p6722_p7 }
  0x34   : > { %6732 = shalt.err (!%p6729_p3)
}
  0x35   : > { %6166 = dma.hbm_to_vmem [thread:$0]  (!%p6948_p0), %s183_s11, 64, %s186_s19, %s174_s21  }
  0x36   : > { %194 = sbr.rel (%p6966_p5) target bundleno = 4209 (0x1071), region = 28  ;;  %s6982_s28 = sand.u32 (!%p6966_p5), 1, %s6825_s13  }
  0x37   : > { %s5534_s22 = sshll.u32 (!%p6966_p5), %s6982_s28, 7  ;;  %s197_s23 = scalar_lea.sflag (!%p6966_p5), [#allocation7], %s6982_s28 }
  0x38   : > { %s6986_s29 = scalar_lea.vmem (!%p6966_p5), [#allocation6], %s5534_s22 }
  0x3b   : > { %6806 = dma.done.wait (%p6921_p8), %s197_s23, 2048  }
  0x3c   : > { %6808 = vsyncadd (%p6921_p8), %s197_s23, 4294965248  ;;  %s5535_s0 = sshll.u32 %s6982_s28, 2  ;;  %s206_s9 = scalar_lea.sflag [#allocation10], %s6982_s28 }
  0x3d   : > { %s6994_s30 = scalar_lea.vmem [#allocation9], %s5535_s0 }
  0x3e   : > { %6810 = dma.done.wait (%p6921_p8), %s206_s9, 64  }
  0x3f   : > { %6812 = vsyncadd (%p6921_p8), %s206_s9, 4294967232  ;;  %s5536_s4 = sshll.u32 %s6982_s28, 5  ;;  %s6152_s5 = sshll.u32 %s6833_s15, 12 }
  0x40   : > { %s250_s18 = scalar_lea.hbm %s8059_s2, %s6152_s5  ;;  %s6847_s19 = smov [#allocation2]  }
  0x41   : > { %s258_s21 = sshll.u32 %s6847_s19, 4  ;;  %s6733_s6 = scalar_lea.hbm %s250_s18, 4096  ;;  %s259_s21 = int_to_ptr.vmem [resolvable:$true] %s258_s21 }
  0x42   : > { %p6734_p0 = scmp.ne.s32.totalorder %s250_s18, %s6733_s6  ;;  %s6735_s22 = scalar_lea.hbm %s8059_s2, 8192 }
  0x43   : > { %p6736_p8 = scmp.lt.s32.totalorder %s250_s18, %s8059_s2  ;;  %p6737_p2 = scmp.lt.s32.totalorder %s6735_s22, %s6733_s6 }
  0x45   : > { %p6738_p5 = por %p6737_p2, %p6736_p8 }
  0x47   : > { %p6739_p6 = pnand %p6738_p5, %p6734_p0 }
  0x49   : > { %6742 = shalt.err (!%p6739_p6)  }
  0x4a   : > { %s6743_s0 = scalar_lea.vmem %s259_s21, 4096  ;;  %p6748_p7 = scmp.lt.s32.totalorder %s259_s21, %s259_s21 }
  0x4b   : > { %p6744_p4 = scmp.ne.s32.totalorder %s259_s21, %s6743_s0  ;;  %p6749_p1 = scmp.lt.s32.totalorder %s6743_s0, %s6743_s0 }
  0x4d   : > { %p6750_p10 = por %p6749_p1, %p6748_p7 }
  0x4f   : > { %p6751_p13 = pnand %p6750_p10, %p6744_p4 }
  0x51   : > { %6754 = shalt.err (!%p6751_p13)  }
  0x52   : > { %261 = dma.hbm_to_vmem [thread:$0]  %s250_s18, 4096, %s259_s21, [#allocation5] }
  0x53   : > { %s7011_s9 = scalar_lea.vmem [#allocation11], %s5536_s4 }
  0x54   : > { %6813 = dma.done.wait [#allocation5], 4096 }
  0x55   : > { %6814 = vsyncadd [#allocation5], 4294963200  ;;  %v6848_v0 = vmov 0.0   ;;  %v7014_v1 = vld [vmem:[%s6994_s30] sm:$0xf]  ;;  %p5539_p3 = scmp.ne.s32.totalorder %s6833_s15, 0 }
  0x56   : > { %266 = vst [vmem:[#allocation3] sm:$0xff] %v6848_v0  ;;  %267 = vst [vmem:[#allocation4] sm:$0xff] %v6848_v0 }
  0x57   : > { %272 = sbr.rel (%p5539_p3) target bundleno = 2135 (0x857), region = 48 }
  0x5c   : > { %v7017_v2 = vld [vmem:[#allocation2 + $0xe4] ss:$16 sps:$4 sm:$0xff]   ;;  %v7019_v3 = vld [vmem:[#allocation2 + $0xe0] ss:$16 sps:$4 sm:$0xff]   ;;  %v6849_v4 = vmov 0   ;;  %v282_v37 = vlaneseq  ;;  %v276_v51 = vld [vmem:[%s6986_s29 + $0x8] sm:$0xff] }
  0x5d   : > { %531 = vmatprep.mubr.bf16.mxu0 %v6849_v4  ;;  %572 = vmatprep.mubr.bf16.mxu1 %v6849_v4  ;;  %v7024_v5 = vld [vmem:[#allocation2 + $0xc4] ss:$16 sps:$4 sm:$0xff]   ;;  %v7027_v6 = vld [vmem:[#allocation2 + $0xc0] ss:$16 sps:$4 sm:$0xff]   ;;  %v7032_v8 = vld [vmem:[#allocation2 + $0xec] ss:$16 sps:$4 sm:$0xff]   ;;  %v280_v57 = vunpack.c.h.bf16 %v276_v51  ;;  %v279_v62 = vunpack.c.l.bf16 %v276_v51 }
  0x5e   : > { %499 = vmatprep.subr.bf16.mxu0 %v7017_v2  ;;  %v7030_v7 = vld [vmem:[#allocation2 + $0xa4] ss:$16 sps:$4 sm:$0xff]   ;;  %v7034_v9 = vld [vmem:[#allocation2 + $0xe8] ss:$16 sps:$4 sm:$0xff]   ;;  %v7037_v10 = vld [vmem:[#allocation2 + $0xa0] ss:$16 sps:$4 sm:$0xff]   ;;  %540 = vmatprep.subr.bf16.mxu1 %v7032_v8 }
  0x5f   : > { %500 = vmatpush1.bf16.msra.mxu0 %v7019_v3  ;;  %v7041_v11 = vld [vmem:[#allocation2 + $0x84] ss:$16 sps:$4 sm:$0xff]   ;;  %541 = vmatpush1.bf16.msra.mxu1 %v7034_v9  ;;  %v7044_v12 = vld [vmem:[#allocation2 + $0xcc] ss:$16 sps:$4 sm:$0xff]   ;;  %v7046_v13 = vld [vmem:[#allocation2 + $0xc8] ss:$16 sps:$4 sm:$0xff]  }
  0x60   : > { %501 = vmatprep.subr.bf16.mxu0 %v7024_v5  ;;  %542 = vmatprep.subr.bf16.mxu1 %v7044_v12  ;;  %v7050_v14 = vld [vmem:[#allocation2 + $0x80] ss:$16 sps:$4 sm:$0xff]   ;;  %v7052_v15 = vld [vmem:[#allocation2 + $0x64] ss:$16 sps:$4 sm:$0xff]   ;;  %v7054_v16 = vld [vmem:[#allocation2 + $0xac] ss:$16 sps:$4 sm:$0xff]  }
  0x61   : > { %v7058_v17 = vld [vmem:[#allocation2 + $0xa8] ss:$16 sps:$4 sm:$0xff]   ;;  %v7061_v18 = vld [vmem:[#allocation2 + $0x8c] ss:$16 sps:$4 sm:$0xff]   ;;  %v7064_v19 = vld [vmem:[#allocation2 + $0x60] ss:$16 sps:$4 sm:$0xff]  }
  0x62   : > { %v7067_v20 = vld [vmem:[#allocation2 + $0x44] ss:$16 sps:$4 sm:$0xff]   ;;  %v7070_v21 = vld [vmem:[#allocation2 + $0x88] ss:$16 sps:$4 sm:$0xff]   ;;  %v7073_v22 = vld [vmem:[#allocation2 + $0x6c] ss:$16 sps:$4 sm:$0xff]  }
  0x63   : > { %502 = vmatpush1.bf16.msra.mxu0 %v7027_v6  ;;  %543 = vmatpush1.bf16.msra.mxu1 %v7046_v13  ;;  %v7075_v23 = vld [vmem:[#allocation2 + $0x40] ss:$16 sps:$4 sm:$0xff]   ;;  %v7078_v24 = vld [vmem:[#allocation2 + $0x24] ss:$16 sps:$4 sm:$0xff]   ;;  %v7082_v25 = vld [vmem:[#allocation2 + $0x68] ss:$16 sps:$4 sm:$0xff]  }
  0x64   : > { %503 = vmatprep.subr.bf16.mxu0 %v7030_v7  ;;  %544 = vmatprep.subr.bf16.mxu1 %v7054_v16  ;;  %v7084_v26 = vld [vmem:[#allocation2 + $0x20] ss:$16 sps:$4 sm:$0xff]   ;;  %v7087_v27 = vld [vmem:[#allocation2 + $0x4c] ss:$16 sps:$4 sm:$0xff]   ;;  %v7089_v28 = vld [vmem:[#allocation2 + $0x4] ss:$16 sps:$4 sm:$0xff]  }
  0x65   : > { %v7091_v29 = vld [vmem:[#allocation2 + $0x48] ss:$16 sps:$4 sm:$0xff]   ;;  %v7094_v30 = vld [vmem:[#allocation2 + $0x2c] ss:$16 sps:$4 sm:$0xff]   ;;  %v7098_v31 = vld [vmem:[#allocation2] ss:$16 sps:$4 sm:$0xff]  }
  0x66   : > { %v273_v32 = vld [vmem:[#allocation3] sm:$0xff]  ;;  %v7101_v33 = vld [vmem:[#allocation2 + $0x28] ss:$16 sps:$4 sm:$0xff]   ;;  %v7104_v34 = vld [vmem:[#allocation2 + $0xc] ss:$16 sps:$4 sm:$0xff]   ;;  %v283_v38 = vshrl.u32 %v282_v37, 7 }
  0x67   : > { %504 = vmatpush1.bf16.msra.mxu0 %v7037_v10  ;;  %545 = vmatpush1.bf16.msra.mxu1 %v7058_v17  ;;  %v306_v35 = vpack.c.bf16 %v273_v32, %v273_v32  ;;  %v7111_v36 = vld [vmem:[#allocation2 + $0x8] ss:$16 sps:$4 sm:$0xff]   ;;  %v275_v40 = vld [vmem:[%s6986_s29] sm:$0xff] }
  0x68   : > { %505 = vmatprep.subr.bf16.mxu0 %v7041_v11  ;;  %546 = vmatprep.subr.bf16.mxu1 %v7061_v18  ;;  %v284_v39 = vsub.s32 0, %v283_v38  ;;  %v288_v41 = vsub.s32 1, %v283_v38  ;;  %v277_v42 = vunpack.c.l.bf16 %v275_v40  ;;  %v278_v44 = vunpack.c.h.bf16 %v275_v40  ;;  %v274_v51 = vld [vmem:[#allocation4] sm:$0xff] }
  0x69   : > { %v296_v49 = vsub.s32 3, %v283_v38  ;;  %v292_v55 = vsub.s32 2, %v283_v38 }
  0x6a   : > { %v7153_v43 = vrot.slane %v7014_v1, %v284_v39  ;;  %v7156_v45 = vrot.slane %v7014_v1, %v288_v41 }
  0x6b   : > { %506 = vmatpush1.bf16.msra.mxu0 %v7050_v14  ;;  %547 = vmatpush1.bf16.msra.mxu1 %v7070_v21  ;;  %v7162_v58 = vrot.slane %v7014_v1, %v296_v49  ;;  %v7165_v63 = vrot.slane %v7014_v1, %v292_v55 }
  0x6c   : > { %507 = vmatprep.subr.bf16.mxu0 %v7052_v15  ;;  %548 = vmatprep.subr.bf16.mxu1 %v7073_v22  ;;  %v302_v46 = vadd.f32 %v7153_v43, %v277_v42  ;;  %v303_v47 = vadd.f32 %v7156_v45, %v278_v44 }
  0x6d   : > { %v305_v32 = vadd.f32 %v7162_v58, %v280_v57  ;;  %v304_v37 = vadd.f32 %v7165_v63, %v279_v62  ;;  %v5575_v62 = vld [vmem:[%s6986_s29 + $0x10] sm:$0xff] }
  0x6f   : > { %508 = vmatpush1.bf16.msra.mxu0 %v7064_v19  ;;  %549 = vmatpush1.bf16.msra.mxu1 %v7082_v25 }
  0x70   : > { %509 = vmatprep.subr.bf16.mxu0 %v7067_v20  ;;  %550 = vmatprep.subr.bf16.mxu1 %v7087_v27 }
  0x73   : > { %510 = vmatpush1.bf16.msra.mxu0 %v7075_v23  ;;  %551 = vmatpush1.bf16.msra.mxu1 %v7091_v29 }
  0x74   : > { %511 = vmatprep.subr.bf16.mxu0 %v7078_v24  ;;  %552 = vmatprep.subr.bf16.mxu1 %v7094_v30 }
  0x77   : > { %512 = vmatpush1.bf16.msra.mxu0 %v7084_v26  ;;  %553 = vmatpush1.bf16.msra.mxu1 %v7101_v33 }
  0x78   : > { %513 = vmatprep.subr.bf16.mxu0 %v7089_v28  ;;  %554 = vmatprep.subr.bf16.mxu1 %v7104_v34 }
  0x7b   : > { %514 = vmatpush1.bf16.msra.mxu0 %v7098_v31  ;;  %555 = vmatpush1.bf16.msra.mxu1 %v7111_v36 }
  0x7c   : > { %814 = vmatprep.subr.bf16.mxu0 %v7017_v2  ;;  %855 = vmatprep.subr.bf16.mxu1 %v7032_v8 }
  0x7e   : > { %532 = vmatmul.mubr.bf16.vlgmr.msra.gmra.mxu0 %v306_v35  ;;  %573 = vmatmul.mubr.bf16.vlgmr.msra.gmra.mxu1 %v306_v35 }
  0x7f   : > { %815 = vmatpush1.bf16.msra.mxu0 %v7019_v3  ;;  %846 = vmatprep.mubr.bf16.mxu0 %v6849_v4 }
  0x80   : > { %816 = vmatprep.subr.bf16.mxu0 %v7024_v5  ;;  %856 = vmatpush1.bf16.msra.mxu1 %v7034_v9 }
  0x81   : > { %857 = vmatprep.subr.bf16.mxu1 %v7044_v12  ;;  %887 = vmatprep.mubr.bf16.mxu1 %v6849_v4 }
  0x83   : > { %817 = vmatpush1.bf16.msra.mxu0 %v7027_v6 }
  0x84   : > { %818 = vmatprep.subr.bf16.mxu0 %v7030_v7  ;;  %858 = vmatpush1.bf16.msra.mxu1 %v7046_v13 }
  0x85   : > { %859 = vmatprep.subr.bf16.mxu1 %v7054_v16 }
  0x87   : > { %819 = vmatpush1.bf16.msra.mxu0 %v7037_v10 }
  0x88   : > { %820 = vmatprep.subr.bf16.mxu0 %v7041_v11  ;;  %860 = vmatpush1.bf16.msra.mxu1 %v7058_v17 }
  0x89   : > { %861 = vmatprep.subr.bf16.mxu1 %v7061_v18 }
  0x8b   : > { %821 = vmatpush1.bf16.msra.mxu0 %v7050_v14 }
  0x8c   : > { %822 = vmatprep.subr.bf16.mxu0 %v7052_v15  ;;  %862 = vmatpush1.bf16.msra.mxu1 %v7070_v21 }
  0x8d   : > { %863 = vmatprep.subr.bf16.mxu1 %v7073_v22 }
  0x8f   : > { %823 = vmatpush1.bf16.msra.mxu0 %v7064_v19 }
  0x90   : > { %824 = vmatprep.subr.bf16.mxu0 %v7067_v20  ;;  %864 = vmatpush1.bf16.msra.mxu1 %v7082_v25 }
  0x91   : > { %865 = vmatprep.subr.bf16.mxu1 %v7087_v27 }
  0x93   : > { %825 = vmatpush1.bf16.msra.mxu0 %v7075_v23 }
  0x94   : > { %826 = vmatprep.subr.bf16.mxu0 %v7078_v24  ;;  %866 = vmatpush1.bf16.msra.mxu1 %v7091_v29 }
  0x95   : > { %867 = vmatprep.subr.bf16.mxu1 %v7094_v30 }
  0x97   : > { %827 = vmatpush1.bf16.msra.mxu0 %v7084_v26 }
  0x98   : > { %828 = vmatprep.subr.bf16.mxu0 %v7089_v28  ;;  %868 = vmatpush1.bf16.msra.mxu1 %v7101_v33 }
  0x99   : > { %869 = vmatprep.subr.bf16.mxu1 %v7104_v34 }
  0x9b   : > { %829 = vmatpush1.bf16.msra.mxu0 %v7098_v31 }
  0x9c   : > { %1130 = vmatprep.subr.bf16.mxu0 %v7017_v2  ;;  %870 = vmatpush1.bf16.msra.mxu1 %v7111_v36 }
  0x9d   : > { %1171 = vmatprep.subr.bf16.mxu1 %v7032_v8 }
 0x13e   : > { %v533_v48 = vpop.f32.mrf.mxu0  ;;  %v574_v60 = vpop.f32.mrf.mxu1 }
 0x13f   : > { %v581_v50 = vadd.f32 %v533_v48, %v302_v46  ;;  %v583_v40 = vadd.f32 %v574_v60, %v304_v37 }
 0x140   : > { %v535_v52 = vpop.f32.mrf.mxu0  ;;  %v576_v0 = vpop.f32.mrf.mxu1 }
 0x141   : > { %v5572_v53 = vmul.f32 -1.442695, %v581_v50  ;;  %v582_v54 = vadd.f32 %v535_v52, %v303_v47  ;;  %v584_v39 = vadd.f32 %v576_v0, %v305_v32  ;;  %v614_v0 = vunpack.c.l.bf16 %v5575_v62 }
 0x142   : > { %v537_v56 = vpop.f32.mrf.mxu0  ;;  %v578_v35 = vpop.f32.mrf.mxu1  ;;  %v615_v32 = vunpack.c.h.bf16 %v5575_v62 }
 0x143   : > { %6325 = vpow2.f32 %v5572_v53  ;;  %v5573_v59 = vmul.f32 -1.442695, %v582_v54  ;;  %v5574_v41 = vmul.f32 -1.442695, %v584_v39  ;;  %v618_v35 = vadd.f32 %v614_v0, %v7153_v43 }
 0x144   : > { %v538_v61 = vpop.f32.mrf.mxu0  ;;  %v579_v38 = vpop.f32.mrf.mxu1  ;;  %v619_v37 = vadd.f32 %v615_v32, %v7156_v45 }
 0x145   : > { %6327 = vpow2.f32 %v5573_v59 }
 0x146   : > { %6329 = vtanh.f32 %v583_v40 }
 0x147   : > { %6331 = vpow2.f32 %v5574_v41 }
 0x150   : > { %v6326_v42 = vpop.eup %6325 }
 0x151   : > { %v588_v44 = vadd.f32 1.0, %v6326_v42 }
 0x152   : > { %v6328_v46 = vpop.eup %6327 }
 0x153   : > { %6333 = vrcp.f32 %v588_v44  ;;  %v594_v47 = vadd.f32 1.0, %v6328_v46  ;;  %v6330_v48 = vpop.eup %6329  ;;  %v5576_v46 = vld [vmem:[%s6986_s29 + $0x18] sm:$0xff] }
 0x154   : > { %v6332_v49 = vpop.eup %6331 }
 0x155   : > { %6335 = vrcp.f32 %v594_v47  ;;  %v601_v53 = vadd.f32 1.0, %v6332_v49 }
 0x157   : > { %6337 = vrcp.f32 %v601_v53  ;;  %v616_v53 = vunpack.c.l.bf16 %v5576_v46 }
 0x160   : > { %v6334_v50 = vpop.eup %6333 }
 0x161   : > { %v605_v55 = vmul.f32 %v6334_v50, %v6330_v48  ;;  %v617_v48 = vunpack.c.h.bf16 %v5576_v46 }
 0x162   : > { %v6336_v52 = vpop.eup %6335 }
 0x163   : > { %v604_v54 = vmul.f32 %v6336_v52, %v274_v51  ;;  %v621_v52 = vadd.f32 %v617_v48, %v7162_v58 }
 0x164   : > { %v6338_v57 = vpop.eup %6337 }
 0x165   : > { %v7169_v56 = vadd.f32 %v605_v55, %v604_v54  ;;  %v620_v55 = vadd.f32 %v616_v53, %v7165_v63 }
 0x167   : > { %6339 = vtanh.f32 %v7169_v56 }
 0x174   : > { %v6340_v59 = vpop.eup %6339 }
 0x175   : > { %v608_v60 = vmul.f32 %v6340_v59, %v6338_v57 }
 0x177   : > { %v609_v61 = vpack.c.bf16 %v608_v60, %v608_v60 }
 0x179   : > { %610 = vst [vmem:[%s7011_s9] sm:$0xf] %v609_v61  ;;  %847 = vmatmul.mubr.bf16.vlgmr.msra.gmra.mxu0 %v609_v61  ;;  %888 = vmatmul.mubr.bf16.vlgmr.msra.gmra.mxu1 %v609_v61 }
 0x17a   : > { %1131 = vmatpush1.bf16.msra.mxu0 %v7019_v3  ;;  %1172 = vmatpush1.bf16.msra.mxu1 %v7034_v9 }
 0x17b   : > { %1132 = vmatprep.subr.bf16.mxu0 %v7024_v5  ;;  %1173 = vmatprep.subr.bf16.mxu1 %v7044_v12 }
 0x17c   : > { %1162 = vmatprep.mubr.bf16.mxu0 %v6849_v4  ;;  %1203 = vmatprep.mubr.bf16.mxu1 %v6849_v4 }
 0x17e   : > { %1133 = vmatpush1.bf16.msra.mxu0 %v7027_v6  ;;  %1174 = vmatpush1.bf16.msra.mxu1 %v7046_v13 }
 0x17f   : > { %1134 = vmatprep.subr.bf16.mxu0 %v7030_v7  ;;  %1175 = vmatprep.subr.bf16.mxu1 %v7054_v16 }
 0x182   : > { %1135 = vmatpush1.bf16.msra.mxu0 %v7037_v10  ;;  %1176 = vmatpush1.bf16.msra.mxu1 %v7058_v17 }
 0x183   : > { %1136 = vmatprep.subr.bf16.mxu0 %v7041_v11  ;;  %1177 = vmatprep.subr.bf16.mxu1 %v7061_v18 }
 0x186   : > { %1137 = vmatpush1.bf16.msra.mxu0 %v7050_v14  ;;  %1178 = vmatpush1.bf16.msra.mxu1 %v7070_v21 }
 0x187   : > { %1138 = vmatprep.subr.bf16.mxu0 %v7052_v15  ;;  %1179 = vmatprep.subr.bf16.mxu1 %v7073_v22 }
 0x18a   : > { %1139 = vmatpush1.bf16.msra.mxu0 %v7064_v19  ;;  %1180 = vmatpush1.bf16.msra.mxu1 %v7082_v25 }
 0x18b   : > { %1140 = vmatprep.subr.bf16.mxu0 %v7067_v20  ;;  %1181 = vmatprep.subr.bf16.mxu1 %v7087_v27 }
 0x18e   : > { %1141 = vmatpush1.bf16.msra.mxu0 %v7075_v23  ;;  %1182 = vmatpush1.bf16.msra.mxu1 %v7091_v29 }
 0x18f   : > { %1142 = vmatprep.subr.bf16.mxu0 %v7078_v24  ;;  %1183 = vmatprep.subr.bf16.mxu1 %v7094_v30 }
 0x192   : > { %1143 = vmatpush1.bf16.msra.mxu0 %v7084_v26  ;;  %1184 = vmatpush1.bf16.msra.mxu1 %v7101_v33 }
 0x193   : > { %1144 = vmatprep.subr.bf16.mxu0 %v7089_v28  ;;  %1185 = vmatprep.subr.bf16.mxu1 %v7104_v34 }
 0x196   : > { %1145 = vmatpush1.bf16.msra.mxu0 %v7098_v31  ;;  %1186 = vmatpush1.bf16.msra.mxu1 %v7111_v36 }
 0x197   : > { %1446 = vmatprep.subr.bf16.mxu0 %v7017_v2  ;;  %1487 = vmatprep.subr.bf16.mxu1 %v7032_v8 }
 0x239   : > { %v848_v38 = vpop.f32.mrf.mxu0  ;;  %v889_v39 = vpop.f32.mrf.mxu1 }
 0x23a   : > { %v896_v40 = vadd.f32 %v848_v38, %v618_v35  ;;  %v898_v60 = vadd.f32 %v889_v39, %v620_v55 }
 0x23b   : > { %v850_v41 = vpop.f32.mrf.mxu0  ;;  %v891_v42 = vpop.f32.mrf.mxu1 }
 0x23c   : > { %v5609_v44 = vmul.f32 -1.442695, %v896_v40  ;;  %v897_v47 = vadd.f32 %v850_v41, %v619_v37  ;;  %v899_v54 = vadd.f32 %v891_v42, %v621_v52 }
 0x23d   : > { %v852_v49 = vpop.f32.mrf.mxu0  ;;  %v893_v2 = vpop.f32.mrf.mxu1 }
 0x23e   : > { %6341 = vpow2.f32 %v5609_v44  ;;  %v5610_v8 = vmul.f32 -1.442695, %v897_v47  ;;  %v5611_v57 = vmul.f32 -1.442695, %v899_v54 }
 0x23f   : > { %v853_v50 = vpop.f32.mrf.mxu0  ;;  %v894_v51 = vpop.f32.mrf.mxu1 }
 0x240   : > { %6343 = vpow2.f32 %v5610_v8 }
 0x241   : > { %6345 = vpow2.f32 %v5611_v57 }
 0x24b   : > { %v6342_v59 = vpop.eup %6341 }
 0x24c   : > { %v903_v61 = vadd.f32 1.0, %v6342_v59  ;;  %v7263_v59 = vld [vmem:[#allocation2 + $0xe4] ss:$16 sps:$4 sm:$0xff]  }
 0x24d   : > { %v6344_v62 = vpop.eup %6343 }
 0x24e   : > { %6347 = vrcp.f32 %v903_v61  ;;  %v909_v0 = vadd.f32 1.0, %v6344_v62  ;;  %v6346_v32 = vpop.eup %6345  ;;  %v7267_v61 = vld [vmem:[#allocation2 + $0xe0] ss:$16 sps:$4 sm:$0xff]   ;;  %v7269_v62 = vld [vmem:[#allocation2 + $0xe8] ss:$16 sps:$4 sm:$0xff]  }
 0x24f   : > { %6349 = vtanh.f32 %v898_v60  ;;  %v916_v40 = vadd.f32 1.0, %v6346_v32  ;;  %v7265_v60 = vld [vmem:[#allocation2 + $0xec] ss:$16 sps:$4 sm:$0xff]  }
 0x250   : > { %6351 = vrcp.f32 %v909_v0  ;;  %v7275_v0 = vld [vmem:[#allocation2 + $0xc4] ss:$16 sps:$4 sm:$0xff]   ;;  %v7277_v32 = vld [vmem:[#allocation2 + $0xcc] ss:$16 sps:$4 sm:$0xff]  }
 0x251   : > { %6353 = vrcp.f32 %v916_v40  ;;  %v7289_v40 = vld [vmem:[#allocation2 + $0xac] ss:$16 sps:$4 sm:$0xff]  }
 0x25b   : > { %v6348_v35 = vpop.eup %6347 }
 0x25c   : > { %v6350_v37 = vpop.eup %6349 }
 0x25d   : > { %v6352_v38 = vpop.eup %6351  ;;  %v920_v41 = vmul.f32 %v6350_v37, %v6348_v35  ;;  %v7279_v35 = vld [vmem:[#allocation2 + $0xc0] ss:$16 sps:$4 sm:$0xff]   ;;  %v7281_v37 = vld [vmem:[#allocation2 + $0xc8] ss:$16 sps:$4 sm:$0xff]  }
 0x25e   : > { %v919_v42 = vmul.f32 %v6352_v38, %v7169_v56  ;;  %v6354_v39 = vpop.eup %6353  ;;  %v7287_v38 = vld [vmem:[#allocation2 + $0xa4] ss:$16 sps:$4 sm:$0xff]  }
 0x260   : > { %v7214_v44 = vadd.f32 %v920_v41, %v919_v42  ;;  %v7291_v41 = vld [vmem:[#allocation2 + $0xa0] ss:$16 sps:$4 sm:$0xff]   ;;  %v7293_v42 = vld [vmem:[#allocation2 + $0xa8] ss:$16 sps:$4 sm:$0xff]  }
 0x262   : > { %6355 = vtanh.f32 %v7214_v44 }
 0x26f   : > { %v6356_v46 = vpop.eup %6355 }
 0x270   : > { %v923_v47 = vmul.f32 %v6356_v46, %v6354_v39  ;;  %v7301_v39 = vld [vmem:[#allocation2 + $0x8c] ss:$16 sps:$4 sm:$0xff]   ;;  %v7303_v46 = vld [vmem:[#allocation2 + $0x80] ss:$16 sps:$4 sm:$0xff]  }
 0x272   : > { %v924_v48 = vpack.c.bf16 %v923_v47, %v923_v47  ;;  %v7305_v47 = vld [vmem:[#allocation2 + $0x88] ss:$16 sps:$4 sm:$0xff]  }
 0x274   : > { %5612 = vst [vmem:[%s7011_s9 + $0x4] sm:$0xf] %v924_v48  ;;  %1163 = vmatmul.mubr.bf16.vlgmr.msra.gmra.mxu0 %v924_v48  ;;  %1204 = vmatmul.mubr.bf16.vlgmr.msra.gmra.mxu1 %v924_v48  ;;  %v7309_v48 = vld [vmem:[#allocation2 + $0x64] ss:$16 sps:$4 sm:$0xff]  }
 0x275   : > { %1447 = vmatpush1.bf16.msra.mxu0 %v7019_v3  ;;  %1488 = vmatpush1.bf16.msra.mxu1 %v7034_v9  ;;  %v5613_v3 = vld [vmem:[%s6986_s29 + $0x20] sm:$0xff] }
 0x276   : > { %1448 = vmatprep.subr.bf16.mxu0 %v7024_v5  ;;  %1489 = vmatprep.subr.bf16.mxu1 %v7044_v12  ;;  %v930_v5 = vunpack.c.l.bf16 %v5613_v3 }
 0x277   : > { %1478 = vmatprep.mubr.bf16.mxu0 %v6849_v4  ;;  %1519 = vmatprep.mubr.bf16.mxu1 %v6849_v4 }
 0x279   : > { %1449 = vmatpush1.bf16.msra.mxu0 %v7027_v6  ;;  %1490 = vmatpush1.bf16.msra.mxu1 %v7046_v13  ;;  %v931_v6 = vunpack.c.h.bf16 %v5613_v3  ;;  %v7311_v3 = vld [vmem:[#allocation2 + $0x6c] ss:$16 sps:$4 sm:$0xff]  }
 0x27a   : > { %1450 = vmatprep.subr.bf16.mxu0 %v7030_v7  ;;  %1491 = vmatprep.subr.bf16.mxu1 %v7054_v16  ;;  %v934_v7 = vadd.f32 %v930_v5, %v7153_v43  ;;  %v5614_v16 = vld [vmem:[%s6986_s29 + $0x28] sm:$0xff]  ;;  %v7315_v5 = vld [vmem:[#allocation2 + $0x60] ss:$16 sps:$4 sm:$0xff]  }
 0x27b   : > { %v935_v9 = vadd.f32 %v931_v6, %v7156_v45  ;;  %v7317_v6 = vld [vmem:[#allocation2 + $0x68] ss:$16 sps:$4 sm:$0xff]  }
 0x27d   : > { %1451 = vmatpush1.bf16.msra.mxu0 %v7037_v10  ;;  %1492 = vmatpush1.bf16.msra.mxu1 %v7058_v17 }
 0x27e   : > { %1452 = vmatprep.subr.bf16.mxu0 %v7041_v11  ;;  %1493 = vmatprep.subr.bf16.mxu1 %v7061_v18  ;;  %v933_v18 = vunpack.c.h.bf16 %v5614_v16 }
 0x281   : > { %1453 = vmatpush1.bf16.msra.mxu0 %v7050_v14  ;;  %1494 = vmatpush1.bf16.msra.mxu1 %v7070_v21 }
 0x282   : > { %1454 = vmatprep.subr.bf16.mxu0 %v7052_v15  ;;  %1495 = vmatprep.subr.bf16.mxu1 %v7073_v22 }
 0x285   : > { %1455 = vmatpush1.bf16.msra.mxu0 %v7064_v19  ;;  %1496 = vmatpush1.bf16.msra.mxu1 %v7082_v25  ;;  %v932_v25 = vunpack.c.l.bf16 %v5614_v16  ;;  %v7345_v16 = vld [vmem:[#allocation2 + $0x4] ss:$16 sps:$4 sm:$0xff]  }
 0x286   : > { %1456 = vmatprep.subr.bf16.mxu0 %v7067_v20  ;;  %1497 = vmatprep.subr.bf16.mxu1 %v7087_v27 }
 0x287   : > { %v936_v27 = vadd.f32 %v932_v25, %v7165_v63 }
 0x289   : > { %1457 = vmatpush1.bf16.msra.mxu0 %v7075_v23  ;;  %1498 = vmatpush1.bf16.msra.mxu1 %v7091_v29 }
 0x28a   : > { %1458 = vmatprep.subr.bf16.mxu0 %v7078_v24  ;;  %1499 = vmatprep.subr.bf16.mxu1 %v7094_v30  ;;  %v937_v24 = vadd.f32 %v933_v18, %v7162_v58  ;;  %v7351_v18 = vld [vmem:[#allocation2] ss:$16 sps:$4 sm:$0xff]  }
 0x28d   : > { %1459 = vmatpush1.bf16.msra.mxu0 %v7084_v26  ;;  %1500 = vmatpush1.bf16.msra.mxu1 %v7101_v33 }
 0x28e   : > { %1460 = vmatprep.subr.bf16.mxu0 %v7089_v28  ;;  %1501 = vmatprep.subr.bf16.mxu1 %v7104_v34 }
 0x291   : > { %1461 = vmatpush1.bf16.msra.mxu0 %v7098_v31  ;;  %1502 = vmatpush1.bf16.msra.mxu1 %v7111_v36 }
 0x292   : > { %1762 = vmatprep.subr.bf16.mxu0 %v7263_v59  ;;  %1803 = vmatprep.subr.bf16.mxu1 %v7265_v60 }
 0x334   : > { %v1164_v10 = vpop.f32.mrf.mxu0  ;;  %v1205_v11 = vpop.f32.mrf.mxu1 }
 0x335   : > { %v1212_v12 = vadd.f32 %v1164_v10, %v934_v7  ;;  %v1214_v30 = vadd.f32 %v1205_v11, %v936_v27  ;;  %v7321_v7 = vld [vmem:[#allocation2 + $0x44] ss:$16 sps:$4 sm:$0xff]   ;;  %v7327_v10 = vld [vmem:[#allocation2 + $0x40] ss:$16 sps:$4 sm:$0xff]   ;;  %v7329_v11 = vld [vmem:[#allocation2 + $0x48] ss:$16 sps:$4 sm:$0xff]  }
 0x336   : > { %v1166_v13 = vpop.f32.mrf.mxu0  ;;  %v1207_v14 = vpop.f32.mrf.mxu1 }
 0x337   : > { %v5647_v15 = vmul.f32 -1.442695, %v1212_v12  ;;  %v1213_v17 = vadd.f32 %v1166_v13, %v935_v9  ;;  %v1215_v26 = vadd.f32 %v1207_v14, %v937_v24  ;;  %v7323_v9 = vld [vmem:[#allocation2 + $0x4c] ss:$16 sps:$4 sm:$0xff]   ;;  %v7333_v12 = vld [vmem:[#allocation2 + $0x24] ss:$16 sps:$4 sm:$0xff]  }
 0x338   : > { %v1168_v19 = vpop.f32.mrf.mxu0  ;;  %v1209_v20 = vpop.f32.mrf.mxu1  ;;  %v7335_v13 = vld [vmem:[#allocation2 + $0x2c] ss:$16 sps:$4 sm:$0xff]   ;;  %v7339_v14 = vld [vmem:[#allocation2 + $0x20] ss:$16 sps:$4 sm:$0xff]  }
 0x339   : > { %6357 = vpow2.f32 %v5647_v15  ;;  %v5648_v21 = vmul.f32 -1.442695, %v1213_v17  ;;  %v5649_v28 = vmul.f32 -1.442695, %v1215_v26  ;;  %v7341_v15 = vld [vmem:[#allocation2 + $0x28] ss:$16 sps:$4 sm:$0xff]  }
 0x33a   : > { %v1169_v22 = vpop.f32.mrf.mxu0  ;;  %v1210_v23 = vpop.f32.mrf.mxu1  ;;  %v7347_v17 = vld [vmem:[#allocation2 + $0xc] ss:$16 sps:$4 sm:$0xff]   ;;  %v7353_v19 = vld [vmem:[#allocation2 + $0x8] ss:$16 sps:$4 sm:$0xff]   ;;  %v5651_v20 = vld [vmem:[%s6986_s29 + $0x30] sm:$0xff] }
 0x33b   : > { %6359 = vpow2.f32 %v5648_v21  ;;  %v1246_v21 = vunpack.c.l.bf16 %v5651_v20  ;;  %v1247_v22 = vunpack.c.h.bf16 %v5651_v20 }
 0x33c   : > { %6361 = vpow2.f32 %v5649_v28 }
 0x33d   : > { %v1250_v23 = vadd.f32 %v1246_v21, %v7153_v43  ;;  %v1251_v24 = vadd.f32 %v1247_v22, %v7156_v45 }
 0x346   : > { %v6358_v29 = vpop.eup %6357 }
 0x347   : > { %v1219_v31 = vadd.f32 1.0, %v6358_v29 }
 0x348   : > { %v6360_v33 = vpop.eup %6359 }
 0x349   : > { %6363 = vrcp.f32 %v1219_v31  ;;  %v1225_v34 = vadd.f32 1.0, %v6360_v33  ;;  %v6362_v36 = vpop.eup %6361  ;;  %v5652_v31 = vld [vmem:[%s6986_s29 + $0x38] sm:$0xff] }
 0x34a   : > { %6365 = vtanh.f32 %v1214_v30  ;;  %v1232_v8 = vadd.f32 1.0, %v6362_v36 }
 0x34b   : > { %6367 = vrcp.f32 %v1225_v34  ;;  %v1249_v34 = vunpack.c.h.bf16 %v5652_v31 }
 0x34c   : > { %6369 = vrcp.f32 %v1232_v8 }
 0x356   : > { %v6364_v56 = vpop.eup %6363 }
 0x357   : > { %v6366_v49 = vpop.eup %6365 }
 0x358   : > { %v6368_v2 = vpop.eup %6367  ;;  %v1236_v50 = vmul.f32 %v6366_v49, %v6364_v56 }
 0x359   : > { %v1235_v51 = vmul.f32 %v6368_v2, %v7214_v44  ;;  %v6370_v53 = vpop.eup %6369  ;;  %v7299_v44 = vld [vmem:[#allocation2 + $0x84] ss:$16 sps:$4 sm:$0xff]  }
 0x35b   : > { %v7257_v52 = vadd.f32 %v1236_v50, %v1235_v51  ;;  %v1253_v50 = vadd.f32 %v1249_v34, %v7162_v58  ;;  %v1248_v51 = vunpack.c.l.bf16 %v5652_v31 }
 0x35d   : > { %6371 = vtanh.f32 %v7257_v52 }
 0x36a   : > { %v6372_v54 = vpop.eup %6371 }
 0x36b   : > { %v1239_v55 = vmul.f32 %v6372_v54, %v6370_v53  ;;  %v1252_v54 = vadd.f32 %v1248_v51, %v7165_v63 }
 0x36d   : > { %v1240_v57 = vpack.c.bf16 %v1239_v55, %v1239_v55 }
 0x36f   : > { %5650 = vst [vmem:[%s7011_s9 + $0x8] sm:$0xf] %v1240_v57  ;;  %1479 = vmatmul.mubr.bf16.vlgmr.msra.gmra.mxu0 %v1240_v57  ;;  %1520 = vmatmul.mubr.bf16.vlgmr.msra.gmra.mxu1 %v1240_v57 }
 0x370   : > { %1794 = vmatprep.mubr.bf16.mxu0 %v6849_v4  ;;  %1835 = vmatprep.mubr.bf16.mxu1 %v6849_v4 }
 0x371   : > { %1763 = vmatpush1.bf16.msra.mxu0 %v7267_v61  ;;  %1804 = vmatpush1.bf16.msra.mxu1 %v7269_v62 }
 0x372   : > { %1764 = vmatprep.subr.bf16.mxu0 %v7275_v0  ;;  %1805 = vmatprep.subr.bf16.mxu1 %v7277_v32 }
 0x375   : > { %1765 = vmatpush1.bf16.msra.mxu0 %v7279_v35  ;;  %1806 = vmatpush1.bf16.msra.mxu1 %v7281_v37 }
 0x376   : > { %1766 = vmatprep.subr.bf16.mxu0 %v7287_v38  ;;  %1807 = vmatprep.subr.bf16.mxu1 %v7289_v40 }
 0x379   : > { %1767 = vmatpush1.bf16.msra.mxu0 %v7291_v41  ;;  %1808 = vmatpush1.bf16.msra.mxu1 %v7293_v42 }
 0x37a   : > { %1768 = vmatprep.subr.bf16.mxu0 %v7299_v44  ;;  %1809 = vmatprep.subr.bf16.mxu1 %v7301_v39 }
 0x37d   : > { %1769 = vmatpush1.bf16.msra.mxu0 %v7303_v46  ;;  %1810 = vmatpush1.bf16.msra.mxu1 %v7305_v47 }
 0x37e   : > { %1770 = vmatprep.subr.bf16.mxu0 %v7309_v48  ;;  %1811 = vmatprep.subr.bf16.mxu1 %v7311_v3 }
 0x381   : > { %1771 = vmatpush1.bf16.msra.mxu0 %v7315_v5  ;;  %1812 = vmatpush1.bf16.msra.mxu1 %v7317_v6 }
 0x382   : > { %1772 = vmatprep.subr.bf16.mxu0 %v7321_v7  ;;  %1813 = vmatprep.subr.bf16.mxu1 %v7323_v9 }
 0x385   : > { %1773 = vmatpush1.bf16.msra.mxu0 %v7327_v10  ;;  %1814 = vmatpush1.bf16.msra.mxu1 %v7329_v11 }
 0x386   : > { %1774 = vmatprep.subr.bf16.mxu0 %v7333_v12  ;;  %1815 = vmatprep.subr.bf16.mxu1 %v7335_v13 }
 0x389   : > { %1775 = vmatpush1.bf16.msra.mxu0 %v7339_v14  ;;  %1816 = vmatpush1.bf16.msra.mxu1 %v7341_v15 }
 0x38a   : > { %1776 = vmatprep.subr.bf16.mxu0 %v7345_v16  ;;  %1817 = vmatprep.subr.bf16.mxu1 %v7347_v17 }
 0x38d   : > { %1777 = vmatpush1.bf16.msra.mxu0 %v7351_v18  ;;  %1818 = vmatpush1.bf16.msra.mxu1 %v7353_v19 }
 0x38e   : > { %2078 = vmatprep.subr.bf16.mxu0 %v7263_v59  ;;  %2119 = vmatprep.subr.bf16.mxu1 %v7265_v60 }
 0x42f   : > { %v1480_v25 = vpop.f32.mrf.mxu0  ;;  %v1521_v26 = vpop.f32.mrf.mxu1 }
 0x430   : > { %v1528_v27 = vadd.f32 %v1480_v25, %v1250_v23  ;;  %v1530_v20 = vadd.f32 %v1521_v26, %v1252_v54 }
 0x431   : > { %v1482_v28 = vpop.f32.mrf.mxu0  ;;  %v1523_v29 = vpop.f32.mrf.mxu1 }
 0x432   : > { %v5685_v30 = vmul.f32 -1.442695, %v1528_v27  ;;  %v1529_v33 = vadd.f32 %v1482_v28, %v1251_v24  ;;  %v1531_v53 = vadd.f32 %v1523_v29, %v1253_v50 }
 0x433   : > { %v1484_v36 = vpop.f32.mrf.mxu0  ;;  %v1525_v56 = vpop.f32.mrf.mxu1 }
 0x434   : > { %6373 = vpow2.f32 %v5685_v30  ;;  %v5686_v49 = vmul.f32 -1.442695, %v1529_v33  ;;  %v5687_v55 = vmul.f32 -1.442695, %v1531_v53 }
 0x435   : > { %v1485_v2 = vpop.f32.mrf.mxu0  ;;  %v1526_v8 = vpop.f32.mrf.mxu1 }
 0x436   : > { %6375 = vpow2.f32 %v5686_v49 }
 0x437   : > { %6377 = vpow2.f32 %v5687_v55 }
 0x441   : > { %v6374_v57 = vpop.eup %6373 }
 0x442   : > { %v1535_v21 = vadd.f32 1.0, %v6374_v57 }
 0x443   : > { %v6376_v22 = vpop.eup %6375 }
 0x444   : > { %6379 = vrcp.f32 %v1535_v21  ;;  %v1541_v23 = vadd.f32 1.0, %v6376_v22  ;;  %v6378_v24 = vpop.eup %6377  ;;  %v5690_v21 = vld [vmem:[%s6986_s29 + $0x48] sm:$0xff] }
 0x445   : > { %6381 = vtanh.f32 %v1530_v20  ;;  %v1548_v30 = vadd.f32 1.0, %v6378_v24 }
 0x446   : > { %6383 = vrcp.f32 %v1541_v23  ;;  %v1565_v23 = vunpack.c.h.bf16 %v5690_v21 }
 0x447   : > { %6385 = vrcp.f32 %v1548_v30 }
 0x451   : > { %v6380_v25 = vpop.eup %6379 }
 0x452   : > { %v6382_v27 = vpop.eup %6381 }
 0x453   : > { %v6384_v28 = vpop.eup %6383  ;;  %v1552_v31 = vmul.f32 %v6382_v27, %v6380_v25 }
 0x454   : > { %v1551_v29 = vmul.f32 %v6384_v28, %v7257_v52  ;;  %v6386_v26 = vpop.eup %6385  ;;  %v5689_v52 = vld [vmem:[%s6986_s29 + $0x40] sm:$0xff] }
 0x455   : > { %v1562_v49 = vunpack.c.l.bf16 %v5689_v52  ;;  %v1563_v2 = vunpack.c.h.bf16 %v5689_v52 }
 0x456   : > { %v7368_v33 = vadd.f32 %v1552_v31, %v1551_v29  ;;  %v1569_v31 = vadd.f32 %v1565_v23, %v7162_v58  ;;  %v1564_v29 = vunpack.c.l.bf16 %v5690_v21 }
 0x457   : > { %v1566_v8 = vadd.f32 %v1562_v49, %v7153_v43  ;;  %v1567_v50 = vadd.f32 %v1563_v2, %v7156_v45 }
 0x458   : > { %6387 = vtanh.f32 %v7368_v33 }
 0x465   : > { %v6388_v34 = vpop.eup %6387 }
 0x466   : > { %v1555_v36 = vmul.f32 %v6388_v34, %v6386_v26  ;;  %v1568_v34 = vadd.f32 %v1564_v29, %v7165_v63 }
 0x468   : > { %v1556_v56 = vpack.c.bf16 %v1555_v36, %v1555_v36 }
 0x46a   : > { %5688 = vst [vmem:[%s7011_s9 + $0xc] sm:$0xf] %v1556_v56  ;;  %1795 = vmatmul.mubr.bf16.vlgmr.msra.gmra.mxu0 %v1556_v56  ;;  %1836 = vmatmul.mubr.bf16.vlgmr.msra.gmra.mxu1 %v1556_v56 }
 0x46b   : > { %2079 = vmatpush1.bf16.msra.mxu0 %v7267_v61  ;;  %2120 = vmatpush1.bf16.msra.mxu1 %v7269_v62 }
 0x46c   : > { %2080 = vmatprep.subr.bf16.mxu0 %v7275_v0  ;;  %2121 = vmatprep.subr.bf16.mxu1 %v7277_v32 }
 0x46d   : > { %2110 = vmatprep.mubr.bf16.mxu0 %v6849_v4  ;;  %2151 = vmatprep.mubr.bf16.mxu1 %v6849_v4 }
 0x46f   : > { %2081 = vmatpush1.bf16.msra.mxu0 %v7279_v35  ;;  %2122 = vmatpush1.bf16.msra.mxu1 %v7281_v37 }
 0x470   : > { %2082 = vmatprep.subr.bf16.mxu0 %v7287_v38  ;;  %2123 = vmatprep.subr.bf16.mxu1 %v7289_v40 }
 0x473   : > { %2083 = vmatpush1.bf16.msra.mxu0 %v7291_v41  ;;  %2124 = vmatpush1.bf16.msra.mxu1 %v7293_v42 }
 0x474   : > { %2084 = vmatprep.subr.bf16.mxu0 %v7299_v44  ;;  %2125 = vmatprep.subr.bf16.mxu1 %v7301_v39 }
 0x477   : > { %2085 = vmatpush1.bf16.msra.mxu0 %v7303_v46  ;;  %2126 = vmatpush1.bf16.msra.mxu1 %v7305_v47 }
 0x478   : > { %2086 = vmatprep.subr.bf16.mxu0 %v7309_v48  ;;  %2127 = vmatprep.subr.bf16.mxu1 %v7311_v3 }
 0x47b   : > { %2087 = vmatpush1.bf16.msra.mxu0 %v7315_v5  ;;  %2128 = vmatpush1.bf16.msra.mxu1 %v7317_v6 }
 0x47c   : > { %2088 = vmatprep.subr.bf16.mxu0 %v7321_v7  ;;  %2129 = vmatprep.subr.bf16.mxu1 %v7323_v9 }
 0x47f   : > { %2089 = vmatpush1.bf16.msra.mxu0 %v7327_v10  ;;  %2130 = vmatpush1.bf16.msra.mxu1 %v7329_v11 }
 0x480   : > { %2090 = vmatprep.subr.bf16.mxu0 %v7333_v12  ;;  %2131 = vmatprep.subr.bf16.mxu1 %v7335_v13 }
 0x483   : > { %2091 = vmatpush1.bf16.msra.mxu0 %v7339_v14  ;;  %2132 = vmatpush1.bf16.msra.mxu1 %v7341_v15 }
 0x484   : > { %2092 = vmatprep.subr.bf16.mxu0 %v7345_v16  ;;  %2133 = vmatprep.subr.bf16.mxu1 %v7347_v17 }
 0x487   : > { %2093 = vmatpush1.bf16.msra.mxu0 %v7351_v18  ;;  %2134 = vmatpush1.bf16.msra.mxu1 %v7353_v19 }
 0x488   : > { %2394 = vmatprep.subr.bf16.mxu0 %v7263_v59  ;;  %2435 = vmatprep.subr.bf16.mxu1 %v7265_v60 }
 0x52a   : > { %v1796_v51 = vpop.f32.mrf.mxu0  ;;  %v1837_v53 = vpop.f32.mrf.mxu1 }
 0x52b   : > { %v1844_v54 = vadd.f32 %v1796_v51, %v1566_v8  ;;  %v1846_v52 = vadd.f32 %v1837_v53, %v1568_v34 }
 0x52c   : > { %v1798_v55 = vpop.f32.mrf.mxu0  ;;  %v1839_v57 = vpop.f32.mrf.mxu1 }
 0x52d   : > { %v5723_v20 = vmul.f32 -1.442695, %v1844_v54  ;;  %v1845_v22 = vadd.f32 %v1798_v55, %v1567_v50  ;;  %v1847_v26 = vadd.f32 %v1839_v57, %v1569_v31 }
 0x52e   : > { %v1800_v24 = vpop.f32.mrf.mxu0  ;;  %v1841_v25 = vpop.f32.mrf.mxu1 }
 0x52f   : > { %6389 = vpow2.f32 %v5723_v20  ;;  %v5724_v27 = vmul.f32 -1.442695, %v1845_v22  ;;  %v5725_v36 = vmul.f32 -1.442695, %v1847_v26 }
 0x530   : > { %v1801_v28 = vpop.f32.mrf.mxu0  ;;  %v1842_v30 = vpop.f32.mrf.mxu1 }
 0x531   : > { %6391 = vpow2.f32 %v5724_v27 }
 0x532   : > { %6393 = vpow2.f32 %v5725_v36 }
 0x53c   : > { %v6390_v56 = vpop.eup %6389 }
 0x53d   : > { %v1851_v49 = vadd.f32 1.0, %v6390_v56 }
 0x53e   : > { %v6392_v2 = vpop.eup %6391 }
 0x53f   : > { %6395 = vrcp.f32 %v1851_v49  ;;  %v1857_v8 = vadd.f32 1.0, %v6392_v2  ;;  %v6394_v50 = vpop.eup %6393  ;;  %v5728_v49 = vld [vmem:[%s6986_s29 + $0x58] sm:$0xff] }
 0x540   : > { %6397 = vtanh.f32 %v1846_v52  ;;  %v1864_v20 = vadd.f32 1.0, %v6394_v50 }
 0x541   : > { %6399 = vrcp.f32 %v1857_v8  ;;  %v1881_v8 = vunpack.c.h.bf16 %v5728_v49 }
 0x542   : > { %6401 = vrcp.f32 %v1864_v20  ;;  %v1880_v20 = vunpack.c.l.bf16 %v5728_v49 }
 0x54c   : > { %v6396_v51 = vpop.eup %6395 }
 0x54d   : > { %v6398_v54 = vpop.eup %6397 }
 0x54e   : > { %v6400_v55 = vpop.eup %6399  ;;  %v1868_v21 = vmul.f32 %v6398_v54, %v6396_v51 }
 0x54f   : > { %v1867_v57 = vmul.f32 %v6400_v55, %v7368_v33  ;;  %v6402_v53 = vpop.eup %6401  ;;  %v5727_v33 = vld [vmem:[%s6986_s29 + $0x50] sm:$0xff]  ;;  %v1885_v55 = vadd.f32 %v1881_v8, %v7162_v58 }
 0x550   : > { %v1878_v27 = vunpack.c.l.bf16 %v5727_v33  ;;  %v1879_v28 = vunpack.c.h.bf16 %v5727_v33 }
 0x551   : > { %v7413_v22 = vadd.f32 %v1868_v21, %v1867_v57  ;;  %v1884_v57 = vadd.f32 %v1880_v20, %v7165_v63 }
 0x552   : > { %v1882_v30 = vadd.f32 %v1878_v27, %v7153_v43  ;;  %v1883_v31 = vadd.f32 %v1879_v28, %v7156_v45 }
 0x553   : > { %6403 = vtanh.f32 %v7413_v22 }
 0x560   : > { %v6404_v23 = vpop.eup %6403 }
 0x561   : > { %v1871_v24 = vmul.f32 %v6404_v23, %v6402_v53 }
 0x563   : > { %v1872_v25 = vpack.c.bf16 %v1871_v24, %v1871_v24 }
 0x565   : > { %5726 = vst [vmem:[%s7011_s9 + $0x10] sm:$0xf] %v1872_v25  ;;  %2111 = vmatmul.mubr.bf16.vlgmr.msra.gmra.mxu0 %v1872_v25  ;;  %2152 = vmatmul.mubr.bf16.vlgmr.msra.gmra.mxu1 %v1872_v25 }
 0x566   : > { %2395 = vmatpush1.bf16.msra.mxu0 %v7267_v61  ;;  %2436 = vmatpush1.bf16.msra.mxu1 %v7269_v62 }
 0x567   : > { %2396 = vmatprep.subr.bf16.mxu0 %v7275_v0  ;;  %2437 = vmatprep.subr.bf16.mxu1 %v7277_v32 }
 0x568   : > { %2426 = vmatprep.mubr.bf16.mxu0 %v6849_v4  ;;  %2467 = vmatprep.mubr.bf16.mxu1 %v6849_v4 }
 0x56a   : > { %2397 = vmatpush1.bf16.msra.mxu0 %v7279_v35  ;;  %2438 = vmatpush1.bf16.msra.mxu1 %v7281_v37 }
 0x56b   : > { %2398 = vmatprep.subr.bf16.mxu0 %v7287_v38  ;;  %2439 = vmatprep.subr.bf16.mxu1 %v7289_v40 }
 0x56e   : > { %2399 = vmatpush1.bf16.msra.mxu0 %v7291_v41  ;;  %2440 = vmatpush1.bf16.msra.mxu1 %v7293_v42 }
 0x56f   : > { %2400 = vmatprep.subr.bf16.mxu0 %v7299_v44  ;;  %2441 = vmatprep.subr.bf16.mxu1 %v7301_v39 }
 0x572   : > { %2401 = vmatpush1.bf16.msra.mxu0 %v7303_v46  ;;  %2442 = vmatpush1.bf16.msra.mxu1 %v7305_v47 }
 0x573   : > { %2402 = vmatprep.subr.bf16.mxu0 %v7309_v48  ;;  %2443 = vmatprep.subr.bf16.mxu1 %v7311_v3 }
 0x576   : > { %2403 = vmatpush1.bf16.msra.mxu0 %v7315_v5  ;;  %2444 = vmatpush1.bf16.msra.mxu1 %v7317_v6 }
 0x577   : > { %2404 = vmatprep.subr.bf16.mxu0 %v7321_v7  ;;  %2445 = vmatprep.subr.bf16.mxu1 %v7323_v9 }
 0x57a   : > { %2405 = vmatpush1.bf16.msra.mxu0 %v7327_v10  ;;  %2446 = vmatpush1.bf16.msra.mxu1 %v7329_v11 }
 0x57b   : > { %2406 = vmatprep.subr.bf16.mxu0 %v7333_v12  ;;  %2447 = vmatprep.subr.bf16.mxu1 %v7335_v13 }
 0x57e   : > { %2407 = vmatpush1.bf16.msra.mxu0 %v7339_v14  ;;  %2448 = vmatpush1.bf16.msra.mxu1 %v7341_v15 }
 0x57f   : > { %2408 = vmatprep.subr.bf16.mxu0 %v7345_v16  ;;  %2449 = vmatprep.subr.bf16.mxu1 %v7347_v17 }
 0x582   : > { %2409 = vmatpush1.bf16.msra.mxu0 %v7351_v18  ;;  %2450 = vmatpush1.bf16.msra.mxu1 %v7353_v19 }
 0x583   : > { %2710 = vmatprep.subr.bf16.mxu0 %v7263_v59  ;;  %2751 = vmatprep.subr.bf16.mxu1 %v7265_v60 }
 0x625   : > { %v2112_v29 = vpop.f32.mrf.mxu0  ;;  %v2153_v26 = vpop.f32.mrf.mxu1 }
 0x626   : > { %v2160_v34 = vadd.f32 %v2112_v29, %v1882_v30  ;;  %v2162_v24 = vadd.f32 %v2153_v26, %v1884_v57 }
 0x627   : > { %v2114_v36 = vpop.f32.mrf.mxu0  ;;  %v2155_v56 = vpop.f32.mrf.mxu1 }
 0x628   : > { %v5761_v52 = vmul.f32 -1.442695, %v2160_v34  ;;  %v2161_v2 = vadd.f32 %v2114_v36, %v1883_v31  ;;  %v2163_v21 = vadd.f32 %v2155_v56, %v1885_v55 }
 0x629   : > { %v2116_v50 = vpop.f32.mrf.mxu0  ;;  %v2157_v59 = vpop.f32.mrf.mxu1 }
 0x62a   : > { %6405 = vpow2.f32 %v5761_v52  ;;  %v5762_v60 = vmul.f32 -1.442695, %v2161_v2  ;;  %v5763_v53 = vmul.f32 -1.442695, %v2163_v21 }
 0x62b   : > { %v2117_v51 = vpop.f32.mrf.mxu0  ;;  %v2158_v54 = vpop.f32.mrf.mxu1 }
 0x62c   : > { %6407 = vpow2.f32 %v5762_v60 }
 0x62d   : > { %6409 = vpow2.f32 %v5763_v53  ;;  %v5803_v53 = vld [vmem:[%s6986_s29 + $0x70] sm:$0xff] }
 0x637   : > { %v6406_v23 = vpop.eup %6405 }
 0x638   : > { %v2167_v25 = vadd.f32 1.0, %v6406_v23  ;;  %v2510_v23 = vunpack.c.l.bf16 %v5803_v53 }
 0x639   : > { %v6408_v33 = vpop.eup %6407 }
 0x63a   : > { %6411 = vrcp.f32 %v2167_v25  ;;  %v2173_v27 = vadd.f32 1.0, %v6408_v33  ;;  %v6410_v28 = vpop.eup %6409  ;;  %v2514_v25 = vadd.f32 %v2510_v23, %v7153_v43 }
 0x63b   : > { %6413 = vtanh.f32 %v2162_v24  ;;  %v2180_v34 = vadd.f32 1.0, %v6410_v28  ;;  %v2511_v24 = vunpack.c.h.bf16 %v5803_v53 }
 0x63c   : > { %6415 = vrcp.f32 %v2173_v27 }
 0x63d   : > { %6417 = vrcp.f32 %v2180_v34  ;;  %v2515_v33 = vadd.f32 %v2511_v24, %v7156_v45 }
 0x647   : > { %v6412_v30 = vpop.eup %6411 }
 0x648   : > { %v6414_v31 = vpop.eup %6413 }
 0x649   : > { %v6416_v29 = vpop.eup %6415  ;;  %v2184_v36 = vmul.f32 %v6414_v31, %v6412_v30 }
 0x64a   : > { %v2183_v56 = vmul.f32 %v6416_v29, %v7413_v22  ;;  %v6418_v26 = vpop.eup %6417 }
 0x64c   : > { %v7458_v52 = vadd.f32 %v2184_v36, %v2183_v56  ;;  %v5804_v36 = vld [vmem:[%s6986_s29 + $0x78] sm:$0xff] }
 0x64e   : > { %6419 = vtanh.f32 %v7458_v52 }
 0x65b   : > { %v6420_v49 = vpop.eup %6419 }
 0x65c   : > { %v2187_v2 = vmul.f32 %v6420_v49, %v6418_v26 }
 0x65e   : > { %v2188_v8 = vpack.c.bf16 %v2187_v2, %v2187_v2 }
 0x660   : > { %5764 = vst [vmem:[%s7011_s9 + $0x14] sm:$0xf] %v2188_v8  ;;  %2427 = vmatmul.mubr.bf16.vlgmr.msra.gmra.mxu0 %v2188_v8  ;;  %2468 = vmatmul.mubr.bf16.vlgmr.msra.gmra.mxu1 %v2188_v8 }
 0x661   : > { %2711 = vmatpush1.bf16.msra.mxu0 %v7267_v61  ;;  %2752 = vmatpush1.bf16.msra.mxu1 %v7269_v62 }
 0x662   : > { %2712 = vmatprep.subr.bf16.mxu0 %v7275_v0  ;;  %2753 = vmatprep.subr.bf16.mxu1 %v7277_v32 }
 0x663   : > { %2742 = vmatprep.mubr.bf16.mxu0 %v6849_v4  ;;  %2783 = vmatprep.mubr.bf16.mxu1 %v6849_v4  ;;  %v5765_v4 = vld [vmem:[%s6986_s29 + $0x60] sm:$0xff] }
 0x664   : > { %v2194_v61 = vunpack.c.l.bf16 %v5765_v4  ;;  %v2195_v62 = vunpack.c.h.bf16 %v5765_v4 }
 0x665   : > { %2713 = vmatpush1.bf16.msra.mxu0 %v7279_v35  ;;  %2754 = vmatpush1.bf16.msra.mxu1 %v7281_v37 }
 0x666   : > { %2714 = vmatprep.subr.bf16.mxu0 %v7287_v38  ;;  %2755 = vmatprep.subr.bf16.mxu1 %v7289_v40  ;;  %v2198_v0 = vadd.f32 %v2194_v61, %v7153_v43  ;;  %v2199_v32 = vadd.f32 %v2195_v62, %v7156_v45  ;;  %v2512_v61 = vunpack.c.l.bf16 %v5804_v36 }
 0x668   : > { %v2516_v62 = vadd.f32 %v2512_v61, %v7165_v63 }
 0x669   : > { %2715 = vmatpush1.bf16.msra.mxu0 %v7291_v41  ;;  %2756 = vmatpush1.bf16.msra.mxu1 %v7293_v42 }
 0x66a   : > { %2716 = vmatprep.subr.bf16.mxu0 %v7299_v44  ;;  %2757 = vmatprep.subr.bf16.mxu1 %v7301_v39  ;;  %v5766_v44 = vld [vmem:[%s6986_s29 + $0x68] sm:$0xff] }
 0x66d   : > { %2717 = vmatpush1.bf16.msra.mxu0 %v7303_v46  ;;  %2758 = vmatpush1.bf16.msra.mxu1 %v7305_v47  ;;  %v2197_v46 = vunpack.c.h.bf16 %v5766_v44 }
 0x66e   : > { %2718 = vmatprep.subr.bf16.mxu0 %v7309_v48  ;;  %2759 = vmatprep.subr.bf16.mxu1 %v7311_v3 }
 0x671   : > { %2719 = vmatpush1.bf16.msra.mxu0 %v7315_v5  ;;  %2760 = vmatpush1.bf16.msra.mxu1 %v7317_v6 }
 0x672   : > { %2720 = vmatprep.subr.bf16.mxu0 %v7321_v7  ;;  %2761 = vmatprep.subr.bf16.mxu1 %v7323_v9  ;;  %v2201_v7 = vadd.f32 %v2197_v46, %v7162_v58  ;;  %v2196_v9 = vunpack.c.l.bf16 %v5766_v44 }
 0x675   : > { %2721 = vmatpush1.bf16.msra.mxu0 %v7327_v10  ;;  %2762 = vmatpush1.bf16.msra.mxu1 %v7329_v11  ;;  %v2200_v11 = vadd.f32 %v2196_v9, %v7165_v63 }
 0x676   : > { %2722 = vmatprep.subr.bf16.mxu0 %v7333_v12  ;;  %2763 = vmatprep.subr.bf16.mxu1 %v7335_v13 }
 0x679   : > { %2723 = vmatpush1.bf16.msra.mxu0 %v7339_v14  ;;  %2764 = vmatpush1.bf16.msra.mxu1 %v7341_v15 }
 0x67a   : > { %2724 = vmatprep.subr.bf16.mxu0 %v7345_v16  ;;  %2765 = vmatprep.subr.bf16.mxu1 %v7347_v17 }
 0x67d   : > { %2725 = vmatpush1.bf16.msra.mxu0 %v7351_v18  ;;  %2766 = vmatpush1.bf16.msra.mxu1 %v7353_v19 }
 0x720   : > { %v2428_v35 = vpop.f32.mrf.mxu0  ;;  %v2469_v37 = vpop.f32.mrf.mxu1 }
 0x721   : > { %v2476_v38 = vadd.f32 %v2428_v35, %v2198_v0  ;;  %v2478_v14 = vadd.f32 %v2469_v37, %v2200_v11 }
 0x722   : > { %v2430_v40 = vpop.f32.mrf.mxu0  ;;  %v2471_v41 = vpop.f32.mrf.mxu1 }
 0x723   : > { %v5799_v42 = vmul.f32 -1.442695, %v2476_v38  ;;  %v2477_v39 = vadd.f32 %v2430_v40, %v2199_v32  ;;  %v2479_v10 = vadd.f32 %v2471_v41, %v2201_v7 }
 0x724   : > { %v2432_v47 = vpop.f32.mrf.mxu0  ;;  %v2473_v48 = vpop.f32.mrf.mxu1 }
 0x725   : > { %6421 = vpow2.f32 %v5799_v42  ;;  %v5800_v3 = vmul.f32 -1.442695, %v2477_v39  ;;  %v5801_v12 = vmul.f32 -1.442695, %v2479_v10 }
 0x726   : > { %v2433_v5 = vpop.f32.mrf.mxu0  ;;  %v2474_v6 = vpop.f32.mrf.mxu1 }
 0x727   : > { %6423 = vpow2.f32 %v5800_v3 }
 0x728   : > { %6425 = vpow2.f32 %v5801_v12 }
 0x732   : > { %v6422_v13 = vpop.eup %6421 }
 0x733   : > { %v2483_v15 = vadd.f32 1.0, %v6422_v13 }
 0x734   : > { %v6424_v16 = vpop.eup %6423 }
 0x735   : > { %6427 = vrcp.f32 %v2483_v15  ;;  %v2489_v17 = vadd.f32 1.0, %v6424_v16  ;;  %v6426_v18 = vpop.eup %6425 }
 0x736   : > { %6429 = vtanh.f32 %v2478_v14  ;;  %v2496_v59 = vadd.f32 1.0, %v6426_v18 }
 0x737   : > { %6431 = vrcp.f32 %v2489_v17 }
 0x738   : > { %6433 = vrcp.f32 %v2496_v59 }
 0x742   : > { %v6428_v19 = vpop.eup %6427 }
 0x743   : > { %v6430_v22 = vpop.eup %6429 }
 0x744   : > { %v6432_v50 = vpop.eup %6431  ;;  %v2500_v60 = vmul.f32 %v6430_v22, %v6428_v19 }
 0x745   : > { %v2499_v51 = vmul.f32 %v6432_v50, %v7458_v52  ;;  %v6434_v55 = vpop.eup %6433  ;;  %v2513_v52 = vunpack.c.h.bf16 %v5804_v36 }
 0x747   : > { %v2501_v54 = vadd.f32 %v2500_v60, %v2499_v51  ;;  %v2517_v43 = vadd.f32 %v2513_v52, %v7162_v58 }
 0x749   : > { %6435 = vtanh.f32 %v2501_v54 }
 0x756   : > { %v6436_v20 = vpop.eup %6435 }
 0x757   : > { %v2503_v21 = vmul.f32 %v6436_v20, %v6434_v55 }
 0x759   : > { %v2504_v57 = vpack.c.bf16 %v2503_v21, %v2503_v21 }
 0x75b   : > { %5802 = vst [vmem:[%s7011_s9 + $0x18] sm:$0xf] %v2504_v57  ;;  %2743 = vmatmul.mubr.bf16.vlgmr.msra.gmra.mxu0 %v2504_v57  ;;  %2784 = vmatmul.mubr.bf16.vlgmr.msra.gmra.mxu1 %v2504_v57 }
 0x81b   : > { %v2744_v27 = vpop.f32.mrf.mxu0  ;;  %v2785_v28 = vpop.f32.mrf.mxu1 }
 0x81c   : > { %v2792_v30 = vadd.f32 %v2744_v27, %v2514_v25  ;;  %v2794_v35 = vadd.f32 %v2785_v28, %v2516_v62 }
 0x81d   : > { %v2746_v31 = vpop.f32.mrf.mxu0  ;;  %v2787_v29 = vpop.f32.mrf.mxu1 }
 0x81e   : > { %v5837_v34 = vmul.f32 -1.442695, %v2792_v30  ;;  %v2793_v56 = vadd.f32 %v2746_v31, %v2515_v33  ;;  %v2795_v45 = vadd.f32 %v2787_v29, %v2517_v43 }
 0x81f   : > { %v2748_v26 = vpop.f32.mrf.mxu0  ;;  %v2789_v49 = vpop.f32.mrf.mxu1 }
 0x820   : > { %6437 = vpow2.f32 %v5837_v34  ;;  %v5838_v2 = vmul.f32 -1.442695, %v2793_v56  ;;  %v5839_v0 = vmul.f32 -1.442695, %v2795_v45 }
 0x821   : > { %v2749_v8 = vpop.f32.mrf.mxu0  ;;  %v2790_v4 = vpop.f32.mrf.mxu1 }
 0x822   : > { %6439 = vpow2.f32 %v5838_v2 }
 0x823   : > { %6441 = vpow2.f32 %v5839_v0 }
 0x82d   : > { %v6438_v32 = vpop.eup %6437 }
 0x82e   : > { %v2799_v37 = vadd.f32 1.0, %v6438_v32 }
 0x82f   : > { %v6440_v38 = vpop.eup %6439 }
 0x830   : > { %6443 = vrcp.f32 %v2799_v37  ;;  %v2805_v40 = vadd.f32 1.0, %v6440_v38  ;;  %v6442_v41 = vpop.eup %6441 }
 0x831   : > { %6445 = vtanh.f32 %v2794_v35  ;;  %v2812_v58 = vadd.f32 1.0, %v6442_v41 }
 0x832   : > { %6447 = vrcp.f32 %v2805_v40 }
 0x833   : > { %6449 = vrcp.f32 %v2812_v58 }
 0x83d   : > { %v6444_v42 = vpop.eup %6443 }
 0x83e   : > { %v6446_v44 = vpop.eup %6445 }
 0x83f   : > { %v6448_v39 = vpop.eup %6447  ;;  %v2816_v46 = vmul.f32 %v6446_v44, %v6444_v42 }
 0x840   : > { %v2815_v47 = vmul.f32 %v6448_v39, %v2501_v54  ;;  %v6450_v63 = vpop.eup %6449 }
 0x842   : > { %v2817_v48 = vadd.f32 %v2816_v46, %v2815_v47 }
 0x844   : > { %6451 = vtanh.f32 %v2817_v48  ;;  %2824 = vst [vmem:[#allocation4] sm:$0xff] %v2817_v48 }
 0x851   : > { %v6452_v3 = vpop.eup %6451 }
 0x852   : > { %v2819_v5 = vmul.f32 %v6452_v3, %v6450_v63 }
 0x854   : > { %v2820_v6 = vpack.c.bf16 %v2819_v5, %v2819_v5  ;;  %2823 = vst [vmem:[#allocation3] sm:$0xff] %v2819_v5 }
 0x856   : > { %5840 = vst [vmem:[%s7011_s9 + $0x1c] sm:$0xf] %v2820_v6 }
 0x857 PF: > { %p5841_p0 = scmp.ne.s32.totalorder %s6833_s15, 1 }
 0x859   : > { %2828 = sbr.rel (%p5841_p0) target bundleno = 4185 (0x1059), region = 52 }
 0x85e   : > { %v7510_v7 = vld [vmem:[#allocation2 + $0xe4] ss:$16 sps:$4 sm:$0xff]   ;;  %v7512_v9 = vld [vmem:[#allocation2 + $0xe0] ss:$16 sps:$4 sm:$0xff]   ;;  %v6850_v10 = vmov 0   ;;  %v2839_v52 = vlaneseq  ;;  %v5843_v38 = vld [vmem:[%s6986_s29 + $0x78] sm:$0xff] }
 0x85f   : > { %3088 = vmatprep.mubr.bf16.mxu0 %v6850_v10  ;;  %3129 = vmatprep.mubr.bf16.mxu1 %v6850_v10  ;;  %v7517_v11 = vld [vmem:[#allocation2 + $0xc4] ss:$16 sps:$4 sm:$0xff]   ;;  %v7520_v12 = vld [vmem:[#allocation2 + $0xc0] ss:$16 sps:$4 sm:$0xff]   ;;  %v7525_v14 = vld [vmem:[#allocation2 + $0xec] ss:$16 sps:$4 sm:$0xff]   ;;  %v2837_v58 = vunpack.c.h.bf16 %v5843_v38  ;;  %v2836_v3 = vunpack.c.l.bf16 %v5843_v38 }
 0x860   : > { %3056 = vmatprep.subr.bf16.mxu0 %v7510_v7  ;;  %v7523_v13 = vld [vmem:[#allocation2 + $0xa4] ss:$16 sps:$4 sm:$0xff]   ;;  %v7527_v15 = vld [vmem:[#allocation2 + $0xe8] ss:$16 sps:$4 sm:$0xff]   ;;  %v7530_v16 = vld [vmem:[#allocation2 + $0xa0] ss:$16 sps:$4 sm:$0xff]   ;;  %3097 = vmatprep.subr.bf16.mxu1 %v7525_v14 }
 0x861   : > { %3057 = vmatpush1.bf16.msra.mxu0 %v7512_v9  ;;  %v7534_v17 = vld [vmem:[#allocation2 + $0x84] ss:$16 sps:$4 sm:$0xff]   ;;  %3098 = vmatpush1.bf16.msra.mxu1 %v7527_v15  ;;  %v7537_v18 = vld [vmem:[#allocation2 + $0xcc] ss:$16 sps:$4 sm:$0xff]   ;;  %v7539_v19 = vld [vmem:[#allocation2 + $0xc8] ss:$16 sps:$4 sm:$0xff]  }
 0x862   : > { %3058 = vmatprep.subr.bf16.mxu0 %v7517_v11  ;;  %3099 = vmatprep.subr.bf16.mxu1 %v7537_v18  ;;  %v7543_v22 = vld [vmem:[#allocation2 + $0x80] ss:$16 sps:$4 sm:$0xff]   ;;  %v7545_v50 = vld [vmem:[#allocation2 + $0x64] ss:$16 sps:$4 sm:$0xff]   ;;  %v7547_v59 = vld [vmem:[#allocation2 + $0xac] ss:$16 sps:$4 sm:$0xff]  }
 0x863   : > { %v7551_v60 = vld [vmem:[#allocation2 + $0xa8] ss:$16 sps:$4 sm:$0xff]   ;;  %v7554_v51 = vld [vmem:[#allocation2 + $0x8c] ss:$16 sps:$4 sm:$0xff]   ;;  %v7557_v54 = vld [vmem:[#allocation2 + $0x60] ss:$16 sps:$4 sm:$0xff]  }
 0x864   : > { %v7560_v55 = vld [vmem:[#allocation2 + $0x44] ss:$16 sps:$4 sm:$0xff]   ;;  %v7563_v20 = vld [vmem:[#allocation2 + $0x88] ss:$16 sps:$4 sm:$0xff]   ;;  %v7566_v21 = vld [vmem:[#allocation2 + $0x6c] ss:$16 sps:$4 sm:$0xff]  }
 0x865   : > { %3059 = vmatpush1.bf16.msra.mxu0 %v7520_v12  ;;  %3100 = vmatpush1.bf16.msra.mxu1 %v7539_v19  ;;  %v7568_v57 = vld [vmem:[#allocation2 + $0x40] ss:$16 sps:$4 sm:$0xff]   ;;  %v7571_v53 = vld [vmem:[#allocation2 + $0x24] ss:$16 sps:$4 sm:$0xff]   ;;  %v7575_v23 = vld [vmem:[#allocation2 + $0x68] ss:$16 sps:$4 sm:$0xff]  }
 0x866   : > { %3060 = vmatprep.subr.bf16.mxu0 %v7523_v13  ;;  %3101 = vmatprep.subr.bf16.mxu1 %v7547_v59  ;;  %v7577_v24 = vld [vmem:[#allocation2 + $0x20] ss:$16 sps:$4 sm:$0xff]   ;;  %v7580_v25 = vld [vmem:[#allocation2 + $0x4c] ss:$16 sps:$4 sm:$0xff]   ;;  %v7582_v33 = vld [vmem:[#allocation2 + $0x4] ss:$16 sps:$4 sm:$0xff]  }
 0x867   : > { %v7584_v27 = vld [vmem:[#allocation2 + $0x48] ss:$16 sps:$4 sm:$0xff]   ;;  %v7587_v28 = vld [vmem:[#allocation2 + $0x2c] ss:$16 sps:$4 sm:$0xff]   ;;  %v7591_v30 = vld [vmem:[#allocation2] ss:$16 sps:$4 sm:$0xff]  }
 0x868   : > { %v2829_v31 = vld [vmem:[#allocation3] sm:$0xff]  ;;  %v7594_v29 = vld [vmem:[#allocation2 + $0x28] ss:$16 sps:$4 sm:$0xff]   ;;  %v7597_v34 = vld [vmem:[#allocation2 + $0xc] ss:$16 sps:$4 sm:$0xff]   ;;  %v2840_v26 = vshrl.u32 %v2839_v52, 7 }
 0x869   : > { %3061 = vmatpush1.bf16.msra.mxu0 %v7530_v16  ;;  %3102 = vmatpush1.bf16.msra.mxu1 %v7551_v60  ;;  %v2863_v36 = vpack.c.bf16 %v2829_v31, %v2829_v31  ;;  %v7604_v56 = vld [vmem:[#allocation2 + $0x8] ss:$16 sps:$4 sm:$0xff]   ;;  %v5842_v2 = vld [vmem:[%s6986_s29 + $0x70] sm:$0xff] }
 0x86a   : > { %3062 = vmatprep.subr.bf16.mxu0 %v7534_v17  ;;  %3103 = vmatprep.subr.bf16.mxu1 %v7554_v51  ;;  %v2841_v49 = vsub.s32 0, %v2840_v26  ;;  %v2845_v8 = vsub.s32 1, %v2840_v26  ;;  %v2834_v4 = vunpack.c.l.bf16 %v5842_v2  ;;  %v2835_v61 = vunpack.c.h.bf16 %v5842_v2 }
 0x86b   : > { %v2853_v35 = vsub.s32 3, %v2840_v26  ;;  %v2849_v44 = vsub.s32 2, %v2840_v26 }
 0x86c   : > { %v7646_v43 = vrot.slane %v7014_v1, %v2841_v49  ;;  %v7649_v45 = vrot.slane %v7014_v1, %v2845_v8 }
 0x86d   : > { %3063 = vmatpush1.bf16.msra.mxu0 %v7543_v22  ;;  %3104 = vmatpush1.bf16.msra.mxu1 %v7563_v20  ;;  %v7655_v46 = vrot.slane %v7014_v1, %v2853_v35  ;;  %v7658_v5 = vrot.slane %v7014_v1, %v2849_v44 }
 0x86e   : > { %3064 = vmatprep.subr.bf16.mxu0 %v7545_v50  ;;  %3105 = vmatprep.subr.bf16.mxu1 %v7566_v21  ;;  %v2859_v62 = vadd.f32 %v7646_v43, %v2834_v4  ;;  %v2860_v0 = vadd.f32 %v7649_v45, %v2835_v61 }
 0x86f   : > { %v2862_v31 = vadd.f32 %v7655_v46, %v2837_v58  ;;  %v2861_v52 = vadd.f32 %v7658_v5, %v2836_v3 }
 0x871   : > { %3065 = vmatpush1.bf16.msra.mxu0 %v7557_v54  ;;  %3106 = vmatpush1.bf16.msra.mxu1 %v7575_v23 }
 0x872   : > { %3066 = vmatprep.subr.bf16.mxu0 %v7560_v55  ;;  %3107 = vmatprep.subr.bf16.mxu1 %v7580_v25 }
 0x875   : > { %3067 = vmatpush1.bf16.msra.mxu0 %v7568_v57  ;;  %3108 = vmatpush1.bf16.msra.mxu1 %v7584_v27 }
 0x876   : > { %3068 = vmatprep.subr.bf16.mxu0 %v7571_v53  ;;  %3109 = vmatprep.subr.bf16.mxu1 %v7587_v28 }
 0x879   : > { %3069 = vmatpush1.bf16.msra.mxu0 %v7577_v24  ;;  %3110 = vmatpush1.bf16.msra.mxu1 %v7594_v29 }
 0x87a   : > { %3070 = vmatprep.subr.bf16.mxu0 %v7582_v33  ;;  %3111 = vmatprep.subr.bf16.mxu1 %v7597_v34 }
 0x87d   : > { %3071 = vmatpush1.bf16.msra.mxu0 %v7591_v30  ;;  %3112 = vmatpush1.bf16.msra.mxu1 %v7604_v56 }
 0x87e   : > { %3372 = vmatprep.subr.bf16.mxu0 %v7510_v7  ;;  %3413 = vmatprep.subr.bf16.mxu1 %v7525_v14 }
 0x880   : > { %3089 = vmatmul.mubr.bf16.vlgmr.msra.gmra.mxu0 %v2863_v36  ;;  %3130 = vmatmul.mubr.bf16.vlgmr.msra.gmra.mxu1 %v2863_v36 }
 0x881   : > { %3373 = vmatpush1.bf16.msra.mxu0 %v7512_v9  ;;  %3404 = vmatprep.mubr.bf16.mxu0 %v6850_v10 }
 0x882   : > { %3374 = vmatprep.subr.bf16.mxu0 %v7517_v11  ;;  %3414 = vmatpush1.bf16.msra.mxu1 %v7527_v15 }
 0x883   : > { %3415 = vmatprep.subr.bf16.mxu1 %v7537_v18  ;;  %3445 = vmatprep.mubr.bf16.mxu1 %v6850_v10 }
 0x885   : > { %3375 = vmatpush1.bf16.msra.mxu0 %v7520_v12 }
 0x886   : > { %3376 = vmatprep.subr.bf16.mxu0 %v7523_v13  ;;  %3416 = vmatpush1.bf16.msra.mxu1 %v7539_v19 }
 0x887   : > { %3417 = vmatprep.subr.bf16.mxu1 %v7547_v59 }
 0x889   : > { %3377 = vmatpush1.bf16.msra.mxu0 %v7530_v16 }
 0x88a   : > { %3378 = vmatprep.subr.bf16.mxu0 %v7534_v17  ;;  %3418 = vmatpush1.bf16.msra.mxu1 %v7551_v60 }
 0x88b   : > { %3419 = vmatprep.subr.bf16.mxu1 %v7554_v51 }
 0x88d   : > { %3379 = vmatpush1.bf16.msra.mxu0 %v7543_v22 }
 0x88e   : > { %3380 = vmatprep.subr.bf16.mxu0 %v7545_v50  ;;  %3420 = vmatpush1.bf16.msra.mxu1 %v7563_v20 }
 0x88f   : > { %3421 = vmatprep.subr.bf16.mxu1 %v7566_v21 }
 0x891   : > { %3381 = vmatpush1.bf16.msra.mxu0 %v7557_v54 }
 0x892   : > { %3382 = vmatprep.subr.bf16.mxu0 %v7560_v55  ;;  %3422 = vmatpush1.bf16.msra.mxu1 %v7575_v23 }
 0x893   : > { %3423 = vmatprep.subr.bf16.mxu1 %v7580_v25 }
 0x895   : > { %3383 = vmatpush1.bf16.msra.mxu0 %v7568_v57 }
 0x896   : > { %3384 = vmatprep.subr.bf16.mxu0 %v7571_v53  ;;  %3424 = vmatpush1.bf16.msra.mxu1 %v7584_v27 }
 0x897   : > { %3425 = vmatprep.subr.bf16.mxu1 %v7587_v28 }
 0x899   : > { %3385 = vmatpush1.bf16.msra.mxu0 %v7577_v24 }
 0x89a   : > { %3386 = vmatprep.subr.bf16.mxu0 %v7582_v33  ;;  %3426 = vmatpush1.bf16.msra.mxu1 %v7594_v29 }
 0x89b   : > { %3427 = vmatprep.subr.bf16.mxu1 %v7597_v34 }
 0x89d   : > { %3387 = vmatpush1.bf16.msra.mxu0 %v7591_v30 }
 0x89e   : > { %3688 = vmatprep.subr.bf16.mxu0 %v7510_v7  ;;  %3428 = vmatpush1.bf16.msra.mxu1 %v7604_v56 }
 0x89f   : > { %3729 = vmatprep.subr.bf16.mxu1 %v7525_v14 }
 0x940   : > { %v3090_v32 = vpop.f32.mrf.mxu0  ;;  %v3131_v48 = vpop.f32.mrf.mxu1 }
 0x941   : > { %v3138_v37 = vadd.f32 %v3090_v32, %v2859_v62  ;;  %v3140_v2 = vadd.f32 %v3131_v48, %v2861_v52 }
 0x942   : > { %v3092_v40 = vpop.f32.mrf.mxu0  ;;  %v3133_v6 = vpop.f32.mrf.mxu1 }
 0x943   : > { %v5876_v41 = vmul.f32 -1.442695, %v3138_v37  ;;  %v3139_v42 = vadd.f32 %v3092_v40, %v2860_v0  ;;  %v3141_v49 = vadd.f32 %v3133_v6, %v2862_v31  ;;  %v2830_v37 = vld [vmem:[#allocation4] sm:$0xff] }
 0x944   : > { %v3094_v39 = vpop.f32.mrf.mxu0  ;;  %v3135_v36 = vpop.f32.mrf.mxu1 }
 0x945   : > { %6549 = vpow2.f32 %v5876_v41  ;;  %v5877_v47 = vmul.f32 -1.442695, %v3139_v42  ;;  %v5878_v8 = vmul.f32 -1.442695, %v3141_v49 }
 0x946   : > { %v3095_v63 = vpop.f32.mrf.mxu0  ;;  %v3136_v26 = vpop.f32.mrf.mxu1 }
 0x947   : > { %6551 = vpow2.f32 %v5877_v47  ;;  %v5880_v63 = vld [vmem:[%s6986_s29 + $0x60] sm:$0xff] }
 0x948   : > { %6553 = vtanh.f32 %v3140_v2  ;;  %v3172_v3 = vunpack.c.l.bf16 %v5880_v63  ;;  %v3173_v6 = vunpack.c.h.bf16 %v5880_v63 }
 0x949   : > { %6555 = vpow2.f32 %v5878_v8 }
 0x94a   : > { %v3176_v31 = vadd.f32 %v3172_v3, %v7646_v43  ;;  %v3177_v36 = vadd.f32 %v3173_v6, %v7649_v45 }
 0x952   : > { %v6550_v4 = vpop.eup %6549 }
 0x953   : > { %v3145_v61 = vadd.f32 1.0, %v6550_v4 }
 0x954   : > { %v6552_v62 = vpop.eup %6551 }
 0x955   : > { %6557 = vrcp.f32 %v3145_v61  ;;  %v3151_v0 = vadd.f32 1.0, %v6552_v62  ;;  %v6554_v1 = vpop.eup %6553  ;;  %v5881_v61 = vld [vmem:[%s6986_s29 + $0x68] sm:$0xff] }
 0x956   : > { %v6556_v32 = vpop.eup %6555 }
 0x957   : > { %6559 = vrcp.f32 %v3151_v0  ;;  %v3158_v40 = vadd.f32 1.0, %v6556_v32  ;;  %v3175_v0 = vunpack.c.h.bf16 %v5881_v61 }
 0x959   : > { %6561 = vrcp.f32 %v3158_v40 }
 0x962   : > { %v6558_v35 = vpop.eup %6557 }
 0x963   : > { %v3162_v42 = vmul.f32 %v6558_v35, %v6554_v1 }
 0x964   : > { %v6560_v38 = vpop.eup %6559 }
 0x965   : > { %v3161_v41 = vmul.f32 %v6560_v38, %v2830_v37  ;;  %v3179_v37 = vadd.f32 %v3175_v0, %v7655_v46  ;;  %v3174_v38 = vunpack.c.l.bf16 %v5881_v61 }
 0x966   : > { %v6562_v39 = vpop.eup %6561 }
 0x967   : > { %v7662_v44 = vadd.f32 %v3162_v42, %v3161_v41  ;;  %v3178_v41 = vadd.f32 %v3174_v38, %v7658_v5 }
 0x969   : > { %6563 = vtanh.f32 %v7662_v44 }
 0x976   : > { %v6564_v58 = vpop.eup %6563 }
 0x977   : > { %v3165_v47 = vmul.f32 %v6564_v58, %v6562_v39 }
 0x979   : > { %v3166_v48 = vpack.c.bf16 %v3165_v47, %v3165_v47 }
 0x97b   : > { %5879 = vst [vmem:[%s7011_s9 + $0x1c] sm:$0xf] %v3166_v48  ;;  %3405 = vmatmul.mubr.bf16.vlgmr.msra.gmra.mxu0 %v3166_v48  ;;  %3446 = vmatmul.mubr.bf16.vlgmr.msra.gmra.mxu1 %v3166_v48 }
 0x97c   : > { %3689 = vmatpush1.bf16.msra.mxu0 %v7512_v9  ;;  %3730 = vmatpush1.bf16.msra.mxu1 %v7527_v15 }
 0x97d   : > { %3690 = vmatprep.subr.bf16.mxu0 %v7517_v11  ;;  %3731 = vmatprep.subr.bf16.mxu1 %v7537_v18 }
 0x97e   : > { %3720 = vmatprep.mubr.bf16.mxu0 %v6850_v10  ;;  %3761 = vmatprep.mubr.bf16.mxu1 %v6850_v10 }
 0x980   : > { %3691 = vmatpush1.bf16.msra.mxu0 %v7520_v12  ;;  %3732 = vmatpush1.bf16.msra.mxu1 %v7539_v19 }
 0x981   : > { %3692 = vmatprep.subr.bf16.mxu0 %v7523_v13  ;;  %3733 = vmatprep.subr.bf16.mxu1 %v7547_v59 }
 0x984   : > { %3693 = vmatpush1.bf16.msra.mxu0 %v7530_v16  ;;  %3734 = vmatpush1.bf16.msra.mxu1 %v7551_v60 }
 0x985   : > { %3694 = vmatprep.subr.bf16.mxu0 %v7534_v17  ;;  %3735 = vmatprep.subr.bf16.mxu1 %v7554_v51 }
 0x988   : > { %3695 = vmatpush1.bf16.msra.mxu0 %v7543_v22  ;;  %3736 = vmatpush1.bf16.msra.mxu1 %v7563_v20 }
 0x989   : > { %3696 = vmatprep.subr.bf16.mxu0 %v7545_v50  ;;  %3737 = vmatprep.subr.bf16.mxu1 %v7566_v21 }
 0x98c   : > { %3697 = vmatpush1.bf16.msra.mxu0 %v7557_v54  ;;  %3738 = vmatpush1.bf16.msra.mxu1 %v7575_v23 }
 0x98d   : > { %3698 = vmatprep.subr.bf16.mxu0 %v7560_v55  ;;  %3739 = vmatprep.subr.bf16.mxu1 %v7580_v25 }
 0x990   : > { %3699 = vmatpush1.bf16.msra.mxu0 %v7568_v57  ;;  %3740 = vmatpush1.bf16.msra.mxu1 %v7584_v27 }
 0x991   : > { %3700 = vmatprep.subr.bf16.mxu0 %v7571_v53  ;;  %3741 = vmatprep.subr.bf16.mxu1 %v7587_v28 }
 0x994   : > { %3701 = vmatpush1.bf16.msra.mxu0 %v7577_v24  ;;  %3742 = vmatpush1.bf16.msra.mxu1 %v7594_v29 }
 0x995   : > { %3702 = vmatprep.subr.bf16.mxu0 %v7582_v33  ;;  %3743 = vmatprep.subr.bf16.mxu1 %v7597_v34 }
 0x998   : > { %3703 = vmatpush1.bf16.msra.mxu0 %v7591_v30  ;;  %3744 = vmatpush1.bf16.msra.mxu1 %v7604_v56 }
 0x999   : > { %4004 = vmatprep.subr.bf16.mxu0 %v7510_v7  ;;  %4045 = vmatprep.subr.bf16.mxu1 %v7525_v14 }
 0xa3b   : > { %v3406_v52 = vpop.f32.mrf.mxu0  ;;  %v3447_v26 = vpop.f32.mrf.mxu1 }
 0xa3c   : > { %v3454_v49 = vadd.f32 %v3406_v52, %v3176_v31  ;;  %v3456_v58 = vadd.f32 %v3447_v26, %v3178_v41 }
 0xa3d   : > { %v3408_v2 = vpop.f32.mrf.mxu0  ;;  %v3449_v8 = vpop.f32.mrf.mxu1 }
 0xa3e   : > { %v5914_v4 = vmul.f32 -1.442695, %v3454_v49  ;;  %v3455_v62 = vadd.f32 %v3408_v2, %v3177_v36  ;;  %v3457_v40 = vadd.f32 %v3449_v8, %v3179_v37 }
 0xa3f   : > { %v3410_v1 = vpop.f32.mrf.mxu0  ;;  %v3451_v7 = vpop.f32.mrf.mxu1 }
 0xa40   : > { %6565 = vpow2.f32 %v5914_v4  ;;  %v5915_v14 = vmul.f32 -1.442695, %v3455_v62  ;;  %v5916_v42 = vmul.f32 -1.442695, %v3457_v40 }
 0xa41   : > { %v3411_v32 = vpop.f32.mrf.mxu0  ;;  %v3452_v35 = vpop.f32.mrf.mxu1 }
 0xa42   : > { %6567 = vpow2.f32 %v5915_v14 }
 0xa43   : > { %6569 = vpow2.f32 %v5916_v42  ;;  %v7756_v42 = vld [vmem:[#allocation2 + $0xe4] ss:$16 sps:$4 sm:$0xff]  }
 0xa4d   : > { %v6566_v39 = vpop.eup %6565 }
 0xa4e   : > { %v3461_v47 = vadd.f32 1.0, %v6566_v39  ;;  %v7758_v39 = vld [vmem:[#allocation2 + $0xec] ss:$16 sps:$4 sm:$0xff]  }
 0xa4f   : > { %v6568_v48 = vpop.eup %6567 }
 0xa50   : > { %6571 = vrcp.f32 %v3461_v47  ;;  %v3467_v63 = vadd.f32 1.0, %v6568_v48  ;;  %v6570_v3 = vpop.eup %6569  ;;  %v7762_v47 = vld [vmem:[#allocation2 + $0xe8] ss:$16 sps:$4 sm:$0xff]   ;;  %v7768_v48 = vld [vmem:[#allocation2 + $0xc4] ss:$16 sps:$4 sm:$0xff]  }
 0xa51   : > { %6573 = vtanh.f32 %v3456_v58  ;;  %v3474_v52 = vadd.f32 1.0, %v6570_v3  ;;  %v7760_v58 = vld [vmem:[#allocation2 + $0xe0] ss:$16 sps:$4 sm:$0xff]  }
 0xa52   : > { %6575 = vrcp.f32 %v3467_v63  ;;  %v7770_v63 = vld [vmem:[#allocation2 + $0xcc] ss:$16 sps:$4 sm:$0xff]   ;;  %v7772_v3 = vld [vmem:[#allocation2 + $0xc0] ss:$16 sps:$4 sm:$0xff]  }
 0xa53   : > { %6577 = vrcp.f32 %v3474_v52  ;;  %v7784_v52 = vld [vmem:[#allocation2 + $0xa0] ss:$16 sps:$4 sm:$0xff]  }
 0xa5d   : > { %v6572_v6 = vpop.eup %6571 }
 0xa5e   : > { %v6574_v31 = vpop.eup %6573 }
 0xa5f   : > { %v6576_v36 = vpop.eup %6575  ;;  %v3478_v49 = vmul.f32 %v6574_v31, %v6572_v6  ;;  %v7774_v6 = vld [vmem:[#allocation2 + $0xc8] ss:$16 sps:$4 sm:$0xff]   ;;  %v7780_v31 = vld [vmem:[#allocation2 + $0xa4] ss:$16 sps:$4 sm:$0xff]  }
 0xa60   : > { %v3477_v2 = vmul.f32 %v6576_v36, %v7662_v44  ;;  %v6578_v26 = vpop.eup %6577  ;;  %v7782_v36 = vld [vmem:[#allocation2 + $0xac] ss:$16 sps:$4 sm:$0xff]  }
 0xa62   : > { %v7707_v8 = vadd.f32 %v3478_v49, %v3477_v2  ;;  %v7786_v49 = vld [vmem:[#allocation2 + $0xa8] ss:$16 sps:$4 sm:$0xff]   ;;  %v7792_v2 = vld [vmem:[#allocation2 + $0x84] ss:$16 sps:$4 sm:$0xff]  }
 0xa64   : > { %6579 = vtanh.f32 %v7707_v8 }
 0xa71   : > { %v6580_v4 = vpop.eup %6579 }
 0xa72   : > { %v3481_v61 = vmul.f32 %v6580_v4, %v6578_v26  ;;  %v7796_v26 = vld [vmem:[#allocation2 + $0x80] ss:$16 sps:$4 sm:$0xff]   ;;  %v7798_v4 = vld [vmem:[#allocation2 + $0x88] ss:$16 sps:$4 sm:$0xff]  }
 0xa74   : > { %v3482_v62 = vpack.c.bf16 %v3481_v61, %v3481_v61  ;;  %v7802_v61 = vld [vmem:[#allocation2 + $0x64] ss:$16 sps:$4 sm:$0xff]  }
 0xa76   : > { %5917 = vst [vmem:[%s7011_s9 + $0x18] sm:$0xf] %v3482_v62  ;;  %3721 = vmatmul.mubr.bf16.vlgmr.msra.gmra.mxu0 %v3482_v62  ;;  %3762 = vmatmul.mubr.bf16.vlgmr.msra.gmra.mxu1 %v3482_v62  ;;  %v7804_v62 = vld [vmem:[#allocation2 + $0x6c] ss:$16 sps:$4 sm:$0xff]  }
 0xa77   : > { %4005 = vmatpush1.bf16.msra.mxu0 %v7512_v9  ;;  %4046 = vmatpush1.bf16.msra.mxu1 %v7527_v15  ;;  %v5918_v9 = vld [vmem:[%s6986_s29 + $0x50] sm:$0xff] }
 0xa78   : > { %4006 = vmatprep.subr.bf16.mxu0 %v7517_v11  ;;  %4047 = vmatprep.subr.bf16.mxu1 %v7537_v18  ;;  %v3488_v11 = vunpack.c.l.bf16 %v5918_v9 }
 0xa79   : > { %4036 = vmatprep.mubr.bf16.mxu0 %v6850_v10  ;;  %4077 = vmatprep.mubr.bf16.mxu1 %v6850_v10 }
 0xa7b   : > { %4007 = vmatpush1.bf16.msra.mxu0 %v7520_v12  ;;  %4048 = vmatpush1.bf16.msra.mxu1 %v7539_v19  ;;  %v3489_v12 = vunpack.c.h.bf16 %v5918_v9  ;;  %v7808_v9 = vld [vmem:[#allocation2 + $0x60] ss:$16 sps:$4 sm:$0xff]  }
 0xa7c   : > { %4008 = vmatprep.subr.bf16.mxu0 %v7523_v13  ;;  %4049 = vmatprep.subr.bf16.mxu1 %v7547_v59  ;;  %v3492_v13 = vadd.f32 %v3488_v11, %v7646_v43  ;;  %v5919_v59 = vld [vmem:[%s6986_s29 + $0x58] sm:$0xff] }
 0xa7d   : > { %v3493_v15 = vadd.f32 %v3489_v12, %v7649_v45  ;;  %v7810_v11 = vld [vmem:[#allocation2 + $0x68] ss:$16 sps:$4 sm:$0xff]   ;;  %v7814_v12 = vld [vmem:[#allocation2 + $0x44] ss:$16 sps:$4 sm:$0xff]  }
 0xa7f   : > { %4009 = vmatpush1.bf16.msra.mxu0 %v7530_v16  ;;  %4050 = vmatpush1.bf16.msra.mxu1 %v7551_v60 }
 0xa80   : > { %4010 = vmatprep.subr.bf16.mxu0 %v7534_v17  ;;  %4051 = vmatprep.subr.bf16.mxu1 %v7554_v51  ;;  %v3491_v51 = vunpack.c.h.bf16 %v5919_v59 }
 0xa83   : > { %4011 = vmatpush1.bf16.msra.mxu0 %v7543_v22  ;;  %4052 = vmatpush1.bf16.msra.mxu1 %v7563_v20 }
 0xa84   : > { %4012 = vmatprep.subr.bf16.mxu0 %v7545_v50  ;;  %4053 = vmatprep.subr.bf16.mxu1 %v7566_v21 }
 0xa87   : > { %4013 = vmatpush1.bf16.msra.mxu0 %v7557_v54  ;;  %4054 = vmatpush1.bf16.msra.mxu1 %v7575_v23  ;;  %v3490_v23 = vunpack.c.l.bf16 %v5919_v59  ;;  %v7840_v59 = vld [vmem:[#allocation2 + $0xc] ss:$16 sps:$4 sm:$0xff]  }
 0xa88   : > { %4014 = vmatprep.subr.bf16.mxu0 %v7560_v55  ;;  %4055 = vmatprep.subr.bf16.mxu1 %v7580_v25 }
 0xa89   : > { %v3494_v25 = vadd.f32 %v3490_v23, %v7658_v5 }
 0xa8b   : > { %4015 = vmatpush1.bf16.msra.mxu0 %v7568_v57  ;;  %4056 = vmatpush1.bf16.msra.mxu1 %v7584_v27 }
 0xa8c   : > { %4016 = vmatprep.subr.bf16.mxu0 %v7571_v53  ;;  %4057 = vmatprep.subr.bf16.mxu1 %v7587_v28  ;;  %v3495_v53 = vadd.f32 %v3491_v51, %v7655_v46  ;;  %v7846_v51 = vld [vmem:[#allocation2 + $0x8] ss:$16 sps:$4 sm:$0xff]  }
 0xa8f   : > { %4017 = vmatpush1.bf16.msra.mxu0 %v7577_v24  ;;  %4058 = vmatpush1.bf16.msra.mxu1 %v7594_v29 }
 0xa90   : > { %4018 = vmatprep.subr.bf16.mxu0 %v7582_v33  ;;  %4059 = vmatprep.subr.bf16.mxu1 %v7597_v34 }
 0xa93   : > { %4019 = vmatpush1.bf16.msra.mxu0 %v7591_v30  ;;  %4060 = vmatpush1.bf16.msra.mxu1 %v7604_v56 }
 0xa94   : > { %4320 = vmatprep.subr.bf16.mxu0 %v7756_v42  ;;  %4361 = vmatprep.subr.bf16.mxu1 %v7758_v39 }
 0xb36   : > { %v3722_v16 = vpop.f32.mrf.mxu0  ;;  %v3763_v17 = vpop.f32.mrf.mxu1 }
 0xb37   : > { %v3770_v18 = vadd.f32 %v3722_v16, %v3492_v13  ;;  %v3772_v28 = vadd.f32 %v3763_v17, %v3494_v25  ;;  %v7816_v13 = vld [vmem:[#allocation2 + $0x4c] ss:$16 sps:$4 sm:$0xff]   ;;  %v7822_v16 = vld [vmem:[#allocation2 + $0x48] ss:$16 sps:$4 sm:$0xff]   ;;  %v7826_v17 = vld [vmem:[#allocation2 + $0x24] ss:$16 sps:$4 sm:$0xff]  }
 0xb38   : > { %v3724_v19 = vpop.f32.mrf.mxu0  ;;  %v3765_v22 = vpop.f32.mrf.mxu1 }
 0xb39   : > { %v5952_v50 = vmul.f32 -1.442695, %v3770_v18  ;;  %v3771_v60 = vadd.f32 %v3724_v19, %v3493_v15  ;;  %v3773_v24 = vadd.f32 %v3765_v22, %v3495_v53  ;;  %v7820_v15 = vld [vmem:[#allocation2 + $0x40] ss:$16 sps:$4 sm:$0xff]   ;;  %v7828_v18 = vld [vmem:[#allocation2 + $0x2c] ss:$16 sps:$4 sm:$0xff]  }
 0xb3a   : > { %v3726_v54 = vpop.f32.mrf.mxu0  ;;  %v3767_v55 = vpop.f32.mrf.mxu1  ;;  %v7832_v19 = vld [vmem:[#allocation2 + $0x20] ss:$16 sps:$4 sm:$0xff]   ;;  %v7834_v22 = vld [vmem:[#allocation2 + $0x28] ss:$16 sps:$4 sm:$0xff]  }
 0xb3b   : > { %6581 = vpow2.f32 %v5952_v50  ;;  %v5953_v20 = vmul.f32 -1.442695, %v3771_v60  ;;  %v5954_v33 = vmul.f32 -1.442695, %v3773_v24  ;;  %v7838_v50 = vld [vmem:[#allocation2 + $0x4] ss:$16 sps:$4 sm:$0xff]  }
 0xb3c   : > { %v3727_v21 = vpop.f32.mrf.mxu0  ;;  %v3768_v57 = vpop.f32.mrf.mxu1  ;;  %v7844_v60 = vld [vmem:[#allocation2] ss:$16 sps:$4 sm:$0xff]  }
 0xb3d   : > { %6583 = vpow2.f32 %v5953_v20  ;;  %v5956_v54 = vld [vmem:[%s6986_s29 + $0x40] sm:$0xff] }
 0xb3e   : > { %6585 = vpow2.f32 %v5954_v33  ;;  %v3804_v55 = vunpack.c.l.bf16 %v5956_v54  ;;  %v3805_v20 = vunpack.c.h.bf16 %v5956_v54 }
 0xb40   : > { %v3808_v21 = vadd.f32 %v3804_v55, %v7646_v43  ;;  %v3809_v57 = vadd.f32 %v3805_v20, %v7649_v45 }
 0xb48   : > { %v6582_v27 = vpop.eup %6581 }
 0xb49   : > { %v3777_v30 = vadd.f32 1.0, %v6582_v27 }
 0xb4a   : > { %v6584_v29 = vpop.eup %6583 }
 0xb4b   : > { %6587 = vrcp.f32 %v3777_v30  ;;  %v3783_v34 = vadd.f32 1.0, %v6584_v29  ;;  %v6586_v56 = vpop.eup %6585 }
 0xb4c   : > { %6589 = vtanh.f32 %v3772_v28  ;;  %v3790_v7 = vadd.f32 1.0, %v6586_v56  ;;  %v5957_v28 = vld [vmem:[%s6986_s29 + $0x48] sm:$0xff] }
 0xb4d   : > { %6591 = vrcp.f32 %v3783_v34  ;;  %v3807_v29 = vunpack.c.h.bf16 %v5957_v28 }
 0xb4e   : > { %6593 = vrcp.f32 %v3790_v7 }
 0xb4f   : > { %v3811_v7 = vadd.f32 %v3807_v29, %v7655_v46 }
 0xb58   : > { %v6588_v44 = vpop.eup %6587 }
 0xb59   : > { %v6590_v0 = vpop.eup %6589 }
 0xb5a   : > { %v6592_v1 = vpop.eup %6591  ;;  %v3794_v14 = vmul.f32 %v6590_v0, %v6588_v44 }
 0xb5b   : > { %v3793_v32 = vmul.f32 %v6592_v1, %v7707_v8  ;;  %v6594_v37 = vpop.eup %6593  ;;  %v7794_v8 = vld [vmem:[#allocation2 + $0x8c] ss:$16 sps:$4 sm:$0xff]  }
 0xb5d   : > { %v7750_v35 = vadd.f32 %v3794_v14, %v3793_v32  ;;  %v3806_v14 = vunpack.c.l.bf16 %v5957_v28 }
 0xb5f   : > { %6595 = vtanh.f32 %v7750_v35 }
 0xb6c   : > { %v6596_v38 = vpop.eup %6595 }
 0xb6d   : > { %v3797_v40 = vmul.f32 %v6596_v38, %v6594_v37  ;;  %v3810_v37 = vadd.f32 %v3806_v14, %v7658_v5 }
 0xb6f   : > { %v3798_v41 = vpack.c.bf16 %v3797_v40, %v3797_v40 }
 0xb71   : > { %5955 = vst [vmem:[%s7011_s9 + $0x14] sm:$0xf] %v3798_v41  ;;  %4037 = vmatmul.mubr.bf16.vlgmr.msra.gmra.mxu0 %v3798_v41  ;;  %4078 = vmatmul.mubr.bf16.vlgmr.msra.gmra.mxu1 %v3798_v41 }
 0xb72   : > { %4352 = vmatprep.mubr.bf16.mxu0 %v6850_v10  ;;  %4393 = vmatprep.mubr.bf16.mxu1 %v6850_v10 }
 0xb73   : > { %4321 = vmatpush1.bf16.msra.mxu0 %v7760_v58  ;;  %4362 = vmatpush1.bf16.msra.mxu1 %v7762_v47 }
 0xb74   : > { %4322 = vmatprep.subr.bf16.mxu0 %v7768_v48  ;;  %4363 = vmatprep.subr.bf16.mxu1 %v7770_v63 }
 0xb77   : > { %4323 = vmatpush1.bf16.msra.mxu0 %v7772_v3  ;;  %4364 = vmatpush1.bf16.msra.mxu1 %v7774_v6 }
 0xb78   : > { %4324 = vmatprep.subr.bf16.mxu0 %v7780_v31  ;;  %4365 = vmatprep.subr.bf16.mxu1 %v7782_v36 }
 0xb7b   : > { %4325 = vmatpush1.bf16.msra.mxu0 %v7784_v52  ;;  %4366 = vmatpush1.bf16.msra.mxu1 %v7786_v49 }
 0xb7c   : > { %4326 = vmatprep.subr.bf16.mxu0 %v7792_v2  ;;  %4367 = vmatprep.subr.bf16.mxu1 %v7794_v8 }
 0xb7f   : > { %4327 = vmatpush1.bf16.msra.mxu0 %v7796_v26  ;;  %4368 = vmatpush1.bf16.msra.mxu1 %v7798_v4 }
 0xb80   : > { %4328 = vmatprep.subr.bf16.mxu0 %v7802_v61  ;;  %4369 = vmatprep.subr.bf16.mxu1 %v7804_v62 }
 0xb83   : > { %4329 = vmatpush1.bf16.msra.mxu0 %v7808_v9  ;;  %4370 = vmatpush1.bf16.msra.mxu1 %v7810_v11 }
 0xb84   : > { %4330 = vmatprep.subr.bf16.mxu0 %v7814_v12  ;;  %4371 = vmatprep.subr.bf16.mxu1 %v7816_v13 }
 0xb87   : > { %4331 = vmatpush1.bf16.msra.mxu0 %v7820_v15  ;;  %4372 = vmatpush1.bf16.msra.mxu1 %v7822_v16 }
 0xb88   : > { %4332 = vmatprep.subr.bf16.mxu0 %v7826_v17  ;;  %4373 = vmatprep.subr.bf16.mxu1 %v7828_v18 }
 0xb8b   : > { %4333 = vmatpush1.bf16.msra.mxu0 %v7832_v19  ;;  %4374 = vmatpush1.bf16.msra.mxu1 %v7834_v22 }
 0xb8c   : > { %4334 = vmatprep.subr.bf16.mxu0 %v7838_v50  ;;  %4375 = vmatprep.subr.bf16.mxu1 %v7840_v59 }
 0xb8f   : > { %4335 = vmatpush1.bf16.msra.mxu0 %v7844_v60  ;;  %4376 = vmatpush1.bf16.msra.mxu1 %v7846_v51 }
 0xb90   : > { %4636 = vmatprep.subr.bf16.mxu0 %v7756_v42  ;;  %4677 = vmatprep.subr.bf16.mxu1 %v7758_v39 }
 0xc31   : > { %v4038_v53 = vpop.f32.mrf.mxu0  ;;  %v4079_v23 = vpop.f32.mrf.mxu1 }
 0xc32   : > { %v4086_v24 = vadd.f32 %v4038_v53, %v3808_v21  ;;  %v4088_v41 = vadd.f32 %v4079_v23, %v3810_v37 }
 0xc33   : > { %v4040_v25 = vpop.f32.mrf.mxu0  ;;  %v4081_v33 = vpop.f32.mrf.mxu1 }
 0xc34   : > { %v5990_v27 = vmul.f32 -1.442695, %v4086_v24  ;;  %v4087_v30 = vadd.f32 %v4040_v25, %v3809_v57  ;;  %v4089_v32 = vadd.f32 %v4081_v33, %v3811_v7 }
 0xc35   : > { %v4042_v34 = vpop.f32.mrf.mxu0  ;;  %v4083_v56 = vpop.f32.mrf.mxu1 }
 0xc36   : > { %6597 = vpow2.f32 %v5990_v27  ;;  %v5991_v44 = vmul.f32 -1.442695, %v4087_v30  ;;  %v5992_v38 = vmul.f32 -1.442695, %v4089_v32 }
 0xc37   : > { %v4043_v0 = vpop.f32.mrf.mxu0  ;;  %v4084_v1 = vpop.f32.mrf.mxu1 }
 0xc38   : > { %6599 = vpow2.f32 %v5991_v44 }
 0xc39   : > { %6601 = vpow2.f32 %v5992_v38 }
 0xc43   : > { %v6598_v40 = vpop.eup %6597 }
 0xc44   : > { %v4093_v54 = vadd.f32 1.0, %v6598_v40 }
 0xc45   : > { %v6600_v55 = vpop.eup %6599 }
 0xc46   : > { %6603 = vrcp.f32 %v4093_v54  ;;  %v4099_v20 = vadd.f32 1.0, %v6600_v55  ;;  %v6602_v21 = vpop.eup %6601 }
 0xc47   : > { %6605 = vtanh.f32 %v4088_v41  ;;  %v4106_v25 = vadd.f32 1.0, %v6602_v21  ;;  %v5995_v41 = vld [vmem:[%s6986_s29 + $0x38] sm:$0xff] }
 0xc48   : > { %6607 = vrcp.f32 %v4099_v20  ;;  %v4123_v55 = vunpack.c.h.bf16 %v5995_v41 }
 0xc49   : > { %6609 = vrcp.f32 %v4106_v25 }
 0xc4a   : > { %v4127_v25 = vadd.f32 %v4123_v55, %v7655_v46 }
 0xc53   : > { %v6604_v57 = vpop.eup %6603 }
 0xc54   : > { %v6606_v53 = vpop.eup %6605 }
 0xc55   : > { %v6608_v24 = vpop.eup %6607  ;;  %v4110_v27 = vmul.f32 %v6606_v53, %v6604_v57 }
 0xc56   : > { %v4109_v33 = vmul.f32 %v6608_v24, %v7750_v35  ;;  %v6610_v23 = vpop.eup %6609  ;;  %v5994_v35 = vld [vmem:[%s6986_s29 + $0x30] sm:$0xff] }
 0xc57   : > { %v4120_v56 = vunpack.c.l.bf16 %v5994_v35  ;;  %v4121_v44 = vunpack.c.h.bf16 %v5994_v35 }
 0xc58   : > { %v7861_v28 = vadd.f32 %v4110_v27, %v4109_v33  ;;  %v4122_v27 = vunpack.c.l.bf16 %v5995_v41 }
 0xc59   : > { %v4124_v0 = vadd.f32 %v4120_v56, %v7646_v43  ;;  %v4125_v1 = vadd.f32 %v4121_v44, %v7649_v45 }
 0xc5a   : > { %6611 = vtanh.f32 %v7861_v28 }
 0xc67   : > { %v6612_v30 = vpop.eup %6611 }
 0xc68   : > { %v4113_v29 = vmul.f32 %v6612_v30, %v6610_v23  ;;  %v4126_v23 = vadd.f32 %v4122_v27, %v7658_v5 }
 0xc6a   : > { %v4114_v34 = vpack.c.bf16 %v4113_v29, %v4113_v29 }
 0xc6c   : > { %5993 = vst [vmem:[%s7011_s9 + $0x10] sm:$0xf] %v4114_v34  ;;  %4353 = vmatmul.mubr.bf16.vlgmr.msra.gmra.mxu0 %v4114_v34  ;;  %4394 = vmatmul.mubr.bf16.vlgmr.msra.gmra.mxu1 %v4114_v34 }
 0xc6d   : > { %4637 = vmatpush1.bf16.msra.mxu0 %v7760_v58  ;;  %4678 = vmatpush1.bf16.msra.mxu1 %v7762_v47 }
 0xc6e   : > { %4638 = vmatprep.subr.bf16.mxu0 %v7768_v48  ;;  %4679 = vmatprep.subr.bf16.mxu1 %v7770_v63 }
 0xc6f   : > { %4668 = vmatprep.mubr.bf16.mxu0 %v6850_v10  ;;  %4709 = vmatprep.mubr.bf16.mxu1 %v6850_v10 }
 0xc71   : > { %4639 = vmatpush1.bf16.msra.mxu0 %v7772_v3  ;;  %4680 = vmatpush1.bf16.msra.mxu1 %v7774_v6 }
 0xc72   : > { %4640 = vmatprep.subr.bf16.mxu0 %v7780_v31  ;;  %4681 = vmatprep.subr.bf16.mxu1 %v7782_v36 }
 0xc75   : > { %4641 = vmatpush1.bf16.msra.mxu0 %v7784_v52  ;;  %4682 = vmatpush1.bf16.msra.mxu1 %v7786_v49 }
 0xc76   : > { %4642 = vmatprep.subr.bf16.mxu0 %v7792_v2  ;;  %4683 = vmatprep.subr.bf16.mxu1 %v7794_v8 }
 0xc79   : > { %4643 = vmatpush1.bf16.msra.mxu0 %v7796_v26  ;;  %4684 = vmatpush1.bf16.msra.mxu1 %v7798_v4 }
 0xc7a   : > { %4644 = vmatprep.subr.bf16.mxu0 %v7802_v61  ;;  %4685 = vmatprep.subr.bf16.mxu1 %v7804_v62 }
 0xc7d   : > { %4645 = vmatpush1.bf16.msra.mxu0 %v7808_v9  ;;  %4686 = vmatpush1.bf16.msra.mxu1 %v7810_v11 }
 0xc7e   : > { %4646 = vmatprep.subr.bf16.mxu0 %v7814_v12  ;;  %4687 = vmatprep.subr.bf16.mxu1 %v7816_v13 }
 0xc81   : > { %4647 = vmatpush1.bf16.msra.mxu0 %v7820_v15  ;;  %4688 = vmatpush1.bf16.msra.mxu1 %v7822_v16 }
 0xc82   : > { %4648 = vmatprep.subr.bf16.mxu0 %v7826_v17  ;;  %4689 = vmatprep.subr.bf16.mxu1 %v7828_v18 }
 0xc85   : > { %4649 = vmatpush1.bf16.msra.mxu0 %v7832_v19  ;;  %4690 = vmatpush1.bf16.msra.mxu1 %v7834_v22 }
 0xc86   : > { %4650 = vmatprep.subr.bf16.mxu0 %v7838_v50  ;;  %4691 = vmatprep.subr.bf16.mxu1 %v7840_v59 }
 0xc89   : > { %4651 = vmatpush1.bf16.msra.mxu0 %v7844_v60  ;;  %4692 = vmatpush1.bf16.msra.mxu1 %v7846_v51 }
 0xc8a   : > { %4952 = vmatprep.subr.bf16.mxu0 %v7756_v42  ;;  %4993 = vmatprep.subr.bf16.mxu1 %v7758_v39 }
 0xd2c   : > { %v4354_v7 = vpop.f32.mrf.mxu0  ;;  %v4395_v14 = vpop.f32.mrf.mxu1 }
 0xd2d   : > { %v4402_v32 = vadd.f32 %v4354_v7, %v4124_v0  ;;  %v4404_v34 = vadd.f32 %v4395_v14, %v4126_v23 }
 0xd2e   : > { %v4356_v37 = vpop.f32.mrf.mxu0  ;;  %v4397_v38 = vpop.f32.mrf.mxu1 }
 0xd2f   : > { %v6028_v40 = vmul.f32 -1.442695, %v4402_v32  ;;  %v4403_v54 = vadd.f32 %v4356_v37, %v4125_v1  ;;  %v4405_v33 = vadd.f32 %v4397_v38, %v4127_v25 }
 0xd30   : > { %v4358_v20 = vpop.f32.mrf.mxu0  ;;  %v4399_v21 = vpop.f32.mrf.mxu1 }
 0xd31   : > { %6613 = vpow2.f32 %v6028_v40  ;;  %v6029_v57 = vmul.f32 -1.442695, %v4403_v54  ;;  %v6030_v30 = vmul.f32 -1.442695, %v4405_v33 }
 0xd32   : > { %v4359_v53 = vpop.f32.mrf.mxu0  ;;  %v4400_v24 = vpop.f32.mrf.mxu1 }
 0xd33   : > { %6615 = vpow2.f32 %v6029_v57 }
 0xd34   : > { %6617 = vpow2.f32 %v6030_v30 }
 0xd3e   : > { %v6614_v29 = vpop.eup %6613 }
 0xd3f   : > { %v4409_v35 = vadd.f32 1.0, %v6614_v29 }
 0xd40   : > { %v6616_v56 = vpop.eup %6615 }
 0xd41   : > { %6619 = vrcp.f32 %v4409_v35  ;;  %v4415_v44 = vadd.f32 1.0, %v6616_v56  ;;  %v6618_v0 = vpop.eup %6617 }
 0xd42   : > { %6621 = vtanh.f32 %v4404_v34  ;;  %v4422_v37 = vadd.f32 1.0, %v6618_v0  ;;  %v6033_v34 = vld [vmem:[%s6986_s29 + $0x28] sm:$0xff] }
 0xd43   : > { %6623 = vrcp.f32 %v4415_v44  ;;  %v4439_v56 = vunpack.c.h.bf16 %v6033_v34 }
 0xd44   : > { %6625 = vrcp.f32 %v4422_v37 }
 0xd4e   : > { %v6620_v1 = vpop.eup %6619 }
 0xd4f   : > { %v6622_v7 = vpop.eup %6621 }
 0xd50   : > { %v6624_v32 = vpop.eup %6623  ;;  %v4426_v40 = vmul.f32 %v6622_v7, %v6620_v1  ;;  %v4443_v7 = vadd.f32 %v4439_v56, %v7655_v46 }
 0xd51   : > { %v4425_v38 = vmul.f32 %v6624_v32, %v7861_v28  ;;  %v6626_v14 = vpop.eup %6625  ;;  %v6032_v28 = vld [vmem:[%s6986_s29 + $0x20] sm:$0xff]  ;;  %v4438_v32 = vunpack.c.l.bf16 %v6033_v34 }
 0xd52   : > { %v4436_v21 = vunpack.c.l.bf16 %v6032_v28  ;;  %v4437_v57 = vunpack.c.h.bf16 %v6032_v28 }
 0xd53   : > { %v7906_v41 = vadd.f32 %v4426_v40, %v4425_v38  ;;  %v4442_v40 = vadd.f32 %v4438_v32, %v7658_v5 }
 0xd54   : > { %v4440_v53 = vadd.f32 %v4436_v21, %v7646_v43  ;;  %v4441_v24 = vadd.f32 %v4437_v57, %v7649_v45 }
 0xd55   : > { %6627 = vtanh.f32 %v7906_v41 }
 0xd62   : > { %v6628_v54 = vpop.eup %6627 }
 0xd63   : > { %v4429_v55 = vmul.f32 %v6628_v54, %v6626_v14 }
 0xd65   : > { %v4430_v20 = vpack.c.bf16 %v4429_v55, %v4429_v55 }
 0xd67   : > { %6031 = vst [vmem:[%s7011_s9 + $0xc] sm:$0xf] %v4430_v20  ;;  %4669 = vmatmul.mubr.bf16.vlgmr.msra.gmra.mxu0 %v4430_v20  ;;  %4710 = vmatmul.mubr.bf16.vlgmr.msra.gmra.mxu1 %v4430_v20 }
 0xd68   : > { %4953 = vmatpush1.bf16.msra.mxu0 %v7760_v58  ;;  %4994 = vmatpush1.bf16.msra.mxu1 %v7762_v47 }
 0xd69   : > { %4954 = vmatprep.subr.bf16.mxu0 %v7768_v48  ;;  %4995 = vmatprep.subr.bf16.mxu1 %v7770_v63 }
 0xd6a   : > { %4984 = vmatprep.mubr.bf16.mxu0 %v6850_v10  ;;  %5025 = vmatprep.mubr.bf16.mxu1 %v6850_v10 }
 0xd6c   : > { %4955 = vmatpush1.bf16.msra.mxu0 %v7772_v3  ;;  %4996 = vmatpush1.bf16.msra.mxu1 %v7774_v6 }
 0xd6d   : > { %4956 = vmatprep.subr.bf16.mxu0 %v7780_v31  ;;  %4997 = vmatprep.subr.bf16.mxu1 %v7782_v36 }
 0xd70   : > { %4957 = vmatpush1.bf16.msra.mxu0 %v7784_v52  ;;  %4998 = vmatpush1.bf16.msra.mxu1 %v7786_v49 }
 0xd71   : > { %4958 = vmatprep.subr.bf16.mxu0 %v7792_v2  ;;  %4999 = vmatprep.subr.bf16.mxu1 %v7794_v8 }
 0xd74   : > { %4959 = vmatpush1.bf16.msra.mxu0 %v7796_v26  ;;  %5000 = vmatpush1.bf16.msra.mxu1 %v7798_v4 }
 0xd75   : > { %4960 = vmatprep.subr.bf16.mxu0 %v7802_v61  ;;  %5001 = vmatprep.subr.bf16.mxu1 %v7804_v62 }
 0xd78   : > { %4961 = vmatpush1.bf16.msra.mxu0 %v7808_v9  ;;  %5002 = vmatpush1.bf16.msra.mxu1 %v7810_v11 }
 0xd79   : > { %4962 = vmatprep.subr.bf16.mxu0 %v7814_v12  ;;  %5003 = vmatprep.subr.bf16.mxu1 %v7816_v13 }
 0xd7c   : > { %4963 = vmatpush1.bf16.msra.mxu0 %v7820_v15  ;;  %5004 = vmatpush1.bf16.msra.mxu1 %v7822_v16 }
 0xd7d   : > { %4964 = vmatprep.subr.bf16.mxu0 %v7826_v17  ;;  %5005 = vmatprep.subr.bf16.mxu1 %v7828_v18 }
 0xd80   : > { %4965 = vmatpush1.bf16.msra.mxu0 %v7832_v19  ;;  %5006 = vmatpush1.bf16.msra.mxu1 %v7834_v22 }
 0xd81   : > { %4966 = vmatprep.subr.bf16.mxu0 %v7838_v50  ;;  %5007 = vmatprep.subr.bf16.mxu1 %v7840_v59 }
 0xd84   : > { %4967 = vmatpush1.bf16.msra.mxu0 %v7844_v60  ;;  %5008 = vmatpush1.bf16.msra.mxu1 %v7846_v51 }
 0xd85   : > { %5267 = vmatprep.subr.bf16.mxu0 %v7756_v42  ;;  %5308 = vmatprep.subr.bf16.mxu1 %v7758_v39 }
 0xe27   : > { %v4670_v25 = vpop.f32.mrf.mxu0  ;;  %v4711_v27 = vpop.f32.mrf.mxu1 }
 0xe28   : > { %v4718_v33 = vadd.f32 %v4670_v25, %v4440_v53  ;;  %v4720_v54 = vadd.f32 %v4711_v27, %v4442_v40  ;;  %v5065_v40 = vld [vmem:[%s6986_s29] sm:$0xff] }
 0xe29   : > { %v4672_v23 = vpop.f32.mrf.mxu0  ;;  %v4713_v30 = vpop.f32.mrf.mxu1 }
 0xe2a   : > { %v6066_v29 = vmul.f32 -1.442695, %v4718_v33  ;;  %v4719_v35 = vadd.f32 %v4672_v23, %v4441_v24  ;;  %v4721_v37 = vadd.f32 %v4713_v30, %v4443_v7 }
 0xe2b   : > { %v4674_v44 = vpop.f32.mrf.mxu0  ;;  %v4715_v42 = vpop.f32.mrf.mxu1 }
 0xe2c   : > { %6629 = vpow2.f32 %v6066_v29  ;;  %v6067_v39 = vmul.f32 -1.442695, %v4719_v35  ;;  %v6068_v38 = vmul.f32 -1.442695, %v4721_v37 }
 0xe2d   : > { %v4675_v0 = vpop.f32.mrf.mxu0  ;;  %v4716_v1 = vpop.f32.mrf.mxu1 }
 0xe2e   : > { %6631 = vpow2.f32 %v6067_v39 }
 0xe2f   : > { %6633 = vpow2.f32 %v6068_v38  ;;  %v5067_v38 = vunpack.c.l.bf16 %v5065_v40 }
 0xe39   : > { %v6630_v14 = vpop.eup %6629 }
 0xe3a   : > { %v4725_v55 = vadd.f32 1.0, %v6630_v14  ;;  %v5068_v14 = vunpack.c.h.bf16 %v5065_v40 }
 0xe3b   : > { %v6632_v20 = vpop.eup %6631 }
 0xe3c   : > { %6635 = vrcp.f32 %v4725_v55  ;;  %v4731_v28 = vadd.f32 1.0, %v6632_v20  ;;  %v6634_v21 = vpop.eup %6633  ;;  %v5072_v55 = vadd.f32 %v5068_v14, %v7649_v45 }
 0xe3d   : > { %6637 = vtanh.f32 %v4720_v54  ;;  %v4738_v25 = vadd.f32 1.0, %v6634_v21  ;;  %v5071_v54 = vadd.f32 %v5067_v38, %v7646_v43 }
 0xe3e   : > { %6639 = vrcp.f32 %v4731_v28 }
 0xe3f   : > { %6641 = vrcp.f32 %v4738_v25  ;;  %v5066_v25 = vld [vmem:[%s6986_s29 + $0x8] sm:$0xff] }
 0xe49   : > { %v6636_v57 = vpop.eup %6635 }
 0xe4a   : > { %v6638_v53 = vpop.eup %6637 }
 0xe4b   : > { %v6640_v24 = vpop.eup %6639  ;;  %v4742_v33 = vmul.f32 %v6638_v53, %v6636_v57 }
 0xe4c   : > { %v4741_v23 = vmul.f32 %v6640_v24, %v7906_v41  ;;  %v6642_v27 = vpop.eup %6641 }
 0xe4e   : > { %v7951_v30 = vadd.f32 %v4742_v33, %v4741_v23  ;;  %v5070_v23 = vunpack.c.h.bf16 %v5066_v25 }
 0xe50   : > { %6643 = vtanh.f32 %v7951_v30 }
 0xe5d   : > { %v6644_v29 = vpop.eup %6643 }
 0xe5e   : > { %v4745_v34 = vmul.f32 %v6644_v29, %v6642_v27 }
 0xe60   : > { %v4746_v35 = vpack.c.bf16 %v4745_v34, %v4745_v34 }
 0xe62   : > { %6069 = vst [vmem:[%s7011_s9 + $0x8] sm:$0xf] %v4746_v35  ;;  %4985 = vmatmul.mubr.bf16.vlgmr.msra.gmra.mxu0 %v4746_v35  ;;  %5026 = vmatmul.mubr.bf16.vlgmr.msra.gmra.mxu1 %v4746_v35 }
 0xe63   : > { %5268 = vmatpush1.bf16.msra.mxu0 %v7760_v58  ;;  %5309 = vmatpush1.bf16.msra.mxu1 %v7762_v47 }
 0xe64   : > { %5269 = vmatprep.subr.bf16.mxu0 %v7768_v48  ;;  %5310 = vmatprep.subr.bf16.mxu1 %v7770_v63 }
 0xe65   : > { %5299 = vmatprep.mubr.bf16.mxu0 %v6850_v10  ;;  %5340 = vmatprep.mubr.bf16.mxu1 %v6850_v10  ;;  %v6070_v10 = vld [vmem:[%s6986_s29 + $0x10] sm:$0xff] }
 0xe66   : > { %v4752_v58 = vunpack.c.l.bf16 %v6070_v10  ;;  %v4753_v47 = vunpack.c.h.bf16 %v6070_v10  ;;  %v5069_v10 = vunpack.c.l.bf16 %v5066_v25 }
 0xe67   : > { %5270 = vmatpush1.bf16.msra.mxu0 %v7772_v3  ;;  %5311 = vmatpush1.bf16.msra.mxu1 %v7774_v6 }
 0xe68   : > { %5271 = vmatprep.subr.bf16.mxu0 %v7780_v31  ;;  %5312 = vmatprep.subr.bf16.mxu1 %v7782_v36  ;;  %v4756_v48 = vadd.f32 %v4752_v58, %v7646_v43  ;;  %v4757_v63 = vadd.f32 %v4753_v47, %v7649_v45  ;;  %v5074_v43 = vadd.f32 %v5070_v23, %v7655_v46 }
 0xe69   : > { %v5073_v58 = vadd.f32 %v5069_v10, %v7658_v5 }
 0xe6b   : > { %5272 = vmatpush1.bf16.msra.mxu0 %v7784_v52  ;;  %5313 = vmatpush1.bf16.msra.mxu1 %v7786_v49 }
 0xe6c   : > { %5273 = vmatprep.subr.bf16.mxu0 %v7792_v2  ;;  %5314 = vmatprep.subr.bf16.mxu1 %v7794_v8  ;;  %v6071_v2 = vld [vmem:[%s6986_s29 + $0x18] sm:$0xff] }
 0xe6f   : > { %5274 = vmatpush1.bf16.msra.mxu0 %v7796_v26  ;;  %5315 = vmatpush1.bf16.msra.mxu1 %v7798_v4  ;;  %v4755_v26 = vunpack.c.h.bf16 %v6071_v2 }
 0xe70   : > { %5275 = vmatprep.subr.bf16.mxu0 %v7802_v61  ;;  %5316 = vmatprep.subr.bf16.mxu1 %v7804_v62 }
 0xe73   : > { %5276 = vmatpush1.bf16.msra.mxu0 %v7808_v9  ;;  %5317 = vmatpush1.bf16.msra.mxu1 %v7810_v11 }
 0xe74   : > { %5277 = vmatprep.subr.bf16.mxu0 %v7814_v12  ;;  %5318 = vmatprep.subr.bf16.mxu1 %v7816_v13  ;;  %v4759_v12 = vadd.f32 %v4755_v26, %v7655_v46  ;;  %v4754_v13 = vunpack.c.l.bf16 %v6071_v2 }
 0xe77   : > { %5278 = vmatpush1.bf16.msra.mxu0 %v7820_v15  ;;  %5319 = vmatpush1.bf16.msra.mxu1 %v7822_v16  ;;  %v4758_v16 = vadd.f32 %v4754_v13, %v7658_v5 }
 0xe78   : > { %5279 = vmatprep.subr.bf16.mxu0 %v7826_v17  ;;  %5320 = vmatprep.subr.bf16.mxu1 %v7828_v18 }
 0xe7b   : > { %5280 = vmatpush1.bf16.msra.mxu0 %v7832_v19  ;;  %5321 = vmatpush1.bf16.msra.mxu1 %v7834_v22 }
 0xe7c   : > { %5281 = vmatprep.subr.bf16.mxu0 %v7838_v50  ;;  %5322 = vmatprep.subr.bf16.mxu1 %v7840_v59 }
 0xe7f   : > { %5282 = vmatpush1.bf16.msra.mxu0 %v7844_v60  ;;  %5323 = vmatpush1.bf16.msra.mxu1 %v7846_v51 }
 0xf22   : > { %v4986_v3 = vpop.f32.mrf.mxu0  ;;  %v5027_v6 = vpop.f32.mrf.mxu1 }
 0xf23   : > { %v5034_v31 = vadd.f32 %v4986_v3, %v4756_v48  ;;  %v5036_v19 = vadd.f32 %v5027_v6, %v4758_v16 }
 0xf24   : > { %v4988_v36 = vpop.f32.mrf.mxu0  ;;  %v5029_v52 = vpop.f32.mrf.mxu1 }
 0xf25   : > { %v6104_v49 = vmul.f32 -1.442695, %v5034_v31  ;;  %v5035_v8 = vadd.f32 %v4988_v36, %v4757_v63  ;;  %v5037_v15 = vadd.f32 %v5029_v52, %v4759_v12 }
 0xf26   : > { %v4990_v4 = vpop.f32.mrf.mxu0  ;;  %v5031_v61 = vpop.f32.mrf.mxu1 }
 0xf27   : > { %6645 = vpow2.f32 %v6104_v49  ;;  %v6105_v62 = vmul.f32 -1.442695, %v5035_v8  ;;  %v6106_v17 = vmul.f32 -1.442695, %v5037_v15 }
 0xf28   : > { %v4991_v9 = vpop.f32.mrf.mxu0  ;;  %v5032_v11 = vpop.f32.mrf.mxu1 }
 0xf29   : > { %6647 = vpow2.f32 %v6105_v62 }
 0xf2a   : > { %6649 = vpow2.f32 %v6106_v17 }
 0xf34   : > { %v6646_v18 = vpop.eup %6645 }
 0xf35   : > { %v5041_v22 = vadd.f32 1.0, %v6646_v18 }
 0xf36   : > { %v6648_v50 = vpop.eup %6647 }
 0xf37   : > { %6651 = vrcp.f32 %v5041_v22  ;;  %v5047_v59 = vadd.f32 1.0, %v6648_v50  ;;  %v6650_v60 = vpop.eup %6649 }
 0xf38   : > { %6653 = vtanh.f32 %v5036_v19  ;;  %v5054_v44 = vadd.f32 1.0, %v6650_v60 }
 0xf39   : > { %6655 = vrcp.f32 %v5047_v59 }
 0xf3a   : > { %6657 = vrcp.f32 %v5054_v44 }
 0xf44   : > { %v6652_v51 = vpop.eup %6651 }
 0xf45   : > { %v6654_v41 = vpop.eup %6653 }
 0xf46   : > { %v6656_v56 = vpop.eup %6655  ;;  %v5058_v42 = vmul.f32 %v6654_v41, %v6652_v51 }
 0xf47   : > { %v5057_v39 = vmul.f32 %v6656_v56, %v7951_v30  ;;  %v6658_v1 = vpop.eup %6657 }
 0xf49   : > { %v5059_v0 = vadd.f32 %v5058_v42, %v5057_v39 }
 0xf4b   : > { %6659 = vtanh.f32 %v5059_v0 }
 0xf58   : > { %v6660_v7 = vpop.eup %6659 }
 0xf59   : > { %v5061_v32 = vmul.f32 %v6660_v7, %v6658_v1 }
 0xf5b   : > { %v5062_v37 = vpack.c.bf16 %v5061_v32, %v5061_v32 }
 0xf5d   : > { %6107 = vst [vmem:[%s7011_s9 + $0x4] sm:$0xf] %v5062_v37  ;;  %5300 = vmatmul.mubr.bf16.vlgmr.msra.gmra.mxu0 %v5062_v37  ;;  %5341 = vmatmul.mubr.bf16.vlgmr.msra.gmra.mxu1 %v5062_v37 }
0x101d   : > { %v5301_v20 = vpop.f32.mrf.mxu0  ;;  %v5342_v28 = vpop.f32.mrf.mxu1 }
0x101e   : > { %v5349_v21 = vadd.f32 %v5301_v20, %v5071_v54  ;;  %v5351_v63 = vadd.f32 %v5342_v28, %v5073_v58 }
0x101f   : > { %v5303_v57 = vpop.f32.mrf.mxu0  ;;  %v5344_v53 = vpop.f32.mrf.mxu1 }
0x1020   : > { %v6140_v24 = vmul.f32 -1.442695, %v5349_v21  ;;  %v5350_v33 = vadd.f32 %v5303_v57, %v5072_v55  ;;  %v5352_v45 = vadd.f32 %v5344_v53, %v5074_v43 }
0x1021   : > { %v5305_v30 = vpop.f32.mrf.mxu0  ;;  %v5346_v27 = vpop.f32.mrf.mxu1 }
0x1022   : > { %6661 = vpow2.f32 %v6140_v24  ;;  %v6141_v29 = vmul.f32 -1.442695, %v5350_v33  ;;  %v6142_v47 = vmul.f32 -1.442695, %v5352_v45 }
0x1023   : > { %v5306_v34 = vpop.f32.mrf.mxu0  ;;  %v5347_v35 = vpop.f32.mrf.mxu1 }
0x1024   : > { %6663 = vpow2.f32 %v6141_v29 }
0x1025   : > { %6665 = vpow2.f32 %v6142_v47 }
0x102f   : > { %v6662_v48 = vpop.eup %6661 }
0x1030   : > { %v5356_v3 = vadd.f32 1.0, %v6662_v48 }
0x1031   : > { %v6664_v6 = vpop.eup %6663 }
0x1032   : > { %6667 = vrcp.f32 %v5356_v3  ;;  %v5362_v31 = vadd.f32 1.0, %v6664_v6  ;;  %v6666_v36 = vpop.eup %6665 }
0x1033   : > { %6669 = vtanh.f32 %v5351_v63  ;;  %v5369_v46 = vadd.f32 1.0, %v6666_v36 }
0x1034   : > { %6671 = vrcp.f32 %v5362_v31 }
0x1035   : > { %6673 = vrcp.f32 %v5369_v46 }
0x103f   : > { %v6668_v52 = vpop.eup %6667 }
0x1040   : > { %v6670_v49 = vpop.eup %6669 }
0x1041   : > { %v6672_v2 = vpop.eup %6671  ;;  %v5373_v8 = vmul.f32 %v6670_v49, %v6668_v52 }
0x1042   : > { %v5372_v26 = vmul.f32 %v6672_v2, %v5059_v0  ;;  %v6674_v5 = vpop.eup %6673 }
0x1044   : > { %v5374_v4 = vadd.f32 %v5373_v8, %v5372_v26 }
0x1046   : > { %6675 = vtanh.f32 %v5374_v4  ;;  %5380 = vst [vmem:[#allocation4] sm:$0xff] %v5374_v4 }
0x1053   : > { %v6676_v61 = vpop.eup %6675 }
0x1054   : > { %v5376_v62 = vmul.f32 %v6676_v61, %v6674_v5 }
0x1056   : > { %v5377_v9 = vpack.c.bf16 %v5376_v62, %v5376_v62  ;;  %5379 = vst [vmem:[#allocation3] sm:$0xff] %v5376_v62 }
0x1058   : > { %5378 = vst [vmem:[%s7011_s9] sm:$0xf] %v5377_v9 }
0x1059 PF: > { %s6153_s29 = sshll.u32 %s6833_s15, 9  ;;  %s5400_s7 = sshll.u32 %s7011_s9, 4  ;;  %s8009_s7 = int_to_ptr.vmem [resolvable:$true] %s5400_s7 }
0x105a   : > { %s8006_s5 = scalar_lea.hbm %s8060_s3, %s6153_s29  ;;  %s5382_s11 = scalar_lea.sflag [#allocation8], %s6982_s28 }
0x105b   : > { %s6755_s18 = scalar_lea.vmem %s8009_s7, 512  ;;  %s6851_s19 = smov [#allocation11]  }
0x105c   : > { %p6756_p8 = scmp.ne.s32.totalorder %s8009_s7, %s6755_s18  ;;  %s6759_s21 = sshll.u32 %s6851_s19, 4  ;;  %s6760_s21 = int_to_ptr.vmem [resolvable:$false] %s6759_s21 }
0x105d   : > { %s6761_s15 = scalar_lea.vmem %s6760_s21, 1024  ;;  %p6762_p6 = scmp.lt.s32.totalorder %s8009_s7, %s6760_s21 }
0x105e   : > { %p6757_p2 = pnand %p6756_p8, %p6925_p9  ;;  %p6763_p4 = scmp.lt.s32.totalorder %s6761_s15, %s6755_s18 }
0x1060   : > { %p6758_p5 = pneg %p6757_p2  ;;  %p6764_p7 = por %p6763_p4, %p6762_p6 }
0x1062   : > { %p6765_p1 = pnand %p6764_p7, %p6758_p5 }
0x1064   : > { %6768 = shalt.err (!%p6765_p1)
}
0x1065   : > { %s6769_s6 = scalar_lea.hbm %s8006_s5, 512  ;;  %s6773_s22 = scalar_lea.hbm %s8060_s3, 1024 }
0x1066   : > { %p6770_p10 = scmp.ne.s32.totalorder %s8006_s5, %s6769_s6  ;;  %p6774_p0 = scmp.lt.s32.totalorder %s8006_s5, %s8060_s3 }
0x1067   : > { %p6775_p8 = scmp.lt.s32.totalorder %s6773_s22, %s6769_s6 }
0x1068   : > { %p6771_p13 = pnand %p6770_p10, %p6925_p9 }
0x1069   : > { %p6776_p2 = por %p6775_p8, %p6774_p0 }
0x106a   : > { %p6772_p3 = pneg %p6771_p13 }
0x106c   : > { %p6777_p5 = pnand %p6776_p2, %p6772_p3 }
0x106e   : > { %6780 = shalt.err (!%p6777_p5)
}
0x106f   : > { %s6852_s0 = smov 64   ;;  %s6853_s9 = smov 4  }
0x1070   : > { %6158 = dma.vmem_to_hbm [thread:$0]  (%p6925_p9), %s8009_s7, 512, %s8006_s5, %s5382_s11, %s6852_s0, %s6852_s0, %s6853_s9  }
0x1071 PF: > { %s5415_s29 = sand.u32 1, %s6821_s12   ;;  %p6168_p6 = pnand %p5525_p12, %p6932_p11 }
0x1072   : > { %s5416_s30 = scalar_lea.sflag [#allocation8], %s5415_s29 }
0x1073   : > { %p6169_p4 = pneg %p6168_p6 }
0x1075   : > { %6816 = dma.done.wait (%p6169_p4), %s5416_s30, 512  }
0x1076   : > { %6818 = vsyncadd (%p6169_p4), %s5416_s30, 4294966784  ;;  %s22_s17 = sadd.s32 1, %s6841_s17   ;;  %s8069_s12 = smov %s6825_s13 }
0x1077   : > { %p19_p7 = scmp.ge.s32.totalorder %s22_s17, 4   ;;  %s8070_s13 = smov %s6829_s14 }
0x1078   : > { %s8071_s14 = smov %s6930_s26  ;;  %s8072_s15 = smov %s6837_s16 }
0x1079   : > { %s8073_s16 = smov %s8075_s20  ;;  %21 = sbr.rel (!%p19_p7) target bundleno = 10 (0xa), region = 131 }
0x107e   :  { %5421 = vsyncpa [#allocation7], 1 }
0x107f   :  { %5423 = vsyncpa [#allocation7 + $0x1], 1 }
0x1080   :  { %5424 = vsyncpa [#allocation10], 1 }
0x1081   :  { %5426 = vsyncpa [#allocation10 + $0x1], 1 }
0x1082   :  { %5427 = vsyncpa [#allocation8], 1 }
0x1083   :  { %5429 = vsyncpa [#allocation8 + $0x1], 1 }
0x1084   :  { %5430 = vsyncmov [#allocation5] }
0x1087   :  { %s5431_s25 = vpop.sfrf %5430 }
0x1088   :  { %p6149_p9 = scmp.ne.s32.totalorder %s5431_s25, 0 }
0x108a   :  { %5435 = shalt.err (%p6149_p9)  }

</bundles_post_ra>
